<compile_context>
chip_gen: v6e
topology: v6e:2x2x1
jax: 0.10.0
libtpu: 0.0.40
codegen_flags: <defaults>
</compile_context>

<pallas_src>
import functools

import jax
import jax.numpy as jnp
import numpy as np
from jax.experimental import pallas as pl
from jax.experimental.pallas import tpu as pltpu

BN_EPS = 1e-5
LANE = 128  # pad channel (lane) dims to the 128-lane vreg width


def _round_up(x, m):
    return (x + m - 1) // m * m


def _vmem_limit_bytes():
    """~75% of physical VMEM (48 MiB on v7x, ~96 MiB on v5e/v6e)."""
    try:
        return int(pltpu.get_tpu_info().vmem_capacity_bytes * 0.75)
    except Exception:
        return 48 * 1024 * 1024


# ----------------------------- fused Pallas kernel ----------------------------- #

def _make_fused_kernel(*, stride, Ho, Wo, Cin_p, Cout_p, has_proj):
    """conv1(3x3, stride) + bn2 + relu + conv2(3x3, 1) + shortcut; one sample/step.

    3x3 taps are gathered in-kernel from the (phase-decomposed) zero-padded
    activation, so no im2col slab ever exists in HBM, and the intermediate a2
    activation stays in a VMEM scratch (with its zero halo) between the convs.
    """
    s = stride
    n_phase = s * s
    M = Ho * Wo

    def kernel(*refs):
        phase_refs = refs[:n_phase]
        w1_ref, s2_ref, b2_ref, w2_ref = refs[n_phase:n_phase + 4]
        if has_proj:
            xs_ref, wsc_ref = refs[n_phase + 4], refs[n_phase + 5]
            o_ref, a2_pad = refs[n_phase + 6], refs[n_phase + 7]
        else:
            xs_ref = refs[n_phase + 4]
            o_ref, a2_pad = refs[n_phase + 5], refs[n_phase + 6]

        # ---- conv1: 9 shifted unit-stride tap slices x per-tap weights, f32 acc ----
        acc1 = jnp.zeros((M, Cout_p), jnp.float32)
        for kh in range(3):
            for kw in range(3):
                ph = phase_refs[(kh % s) * s + (kw % s)]
                r0, c0 = kh // s, kw // s
                tap = ph[r0:r0 + Ho, c0:c0 + Wo, :].reshape(M, Cin_p)
                acc1 = acc1 + jnp.dot(tap, w1_ref[kh * 3 + kw],
                                      preferred_element_type=jnp.float32)

        # ---- bn2 affine + relu (Dropout2d is identity in eval mode) ----
        a2 = jnp.maximum(acc1 * s2_ref[...] + b2_ref[...], 0.0).astype(jnp.bfloat16)

        # Stage a2 with a 1-pixel zero halo in VMEM (conv2's padding); never HBM.
        a2_pad[...] = jnp.zeros((Ho + 2, Wo + 2, Cout_p), jnp.bfloat16)
        a2_pad[1:Ho + 1, 1:Wo + 1, :] = a2.reshape(Ho, Wo, Cout_p)

        # ---- shortcut initializes the conv2 accumulator ----
        if has_proj:
            acc2 = jnp.dot(xs_ref[...].reshape(M, Cin_p), wsc_ref[...],
                           preferred_element_type=jnp.float32)
        else:
            acc2 = xs_ref[...].reshape(M, Cout_p)          # identity residual, f32

        # ---- conv2: 9 shifted tap slices of the VMEM-resident a2 ----
        for kh in range(3):
            for kw in range(3):
                tap = a2_pad[kh:kh + Ho, kw:kw + Wo, :].reshape(M, Cout_p)
                acc2 = acc2 + jnp.dot(tap, w2_ref[kh * 3 + kw],
                                      preferred_element_type=jnp.float32)

        o_ref[...] = acc2.reshape(Ho, Wo, Cout_p)

    return kernel


# ------------------------------- JAX glue ---------------------------------- #

def _bn_scale_bias(gamma, beta, mean, var):
    scale = gamma / jnp.sqrt(var + BN_EPS)
    bias = beta - mean * scale
    return scale.astype(jnp.float32), bias.astype(jnp.float32)


def _conv3x3_w_taps(w_oihw, cin_pad, cout_pad):
    """PyTorch OIHW 3x3 weight -> [9, Cin_pad, Cout_pad] bf16 per-tap matrices."""
    Cout, Cin, KH, KW = w_oihw.shape
    w = jnp.transpose(w_oihw, (2, 3, 1, 0)).reshape(KH * KW, Cin, Cout)
    w = jnp.pad(w, ((0, 0), (0, cin_pad - Cin), (0, cout_pad - Cout)))
    return w.astype(jnp.bfloat16)


@functools.partial(jax.jit, static_argnames=("stride",))
def plain_v2_block_forward(x_nchw, params, stride=1):
    N, Cin, H, W = x_nchw.shape
    Cout = params["conv1_w"].shape[0]
    has_proj = Cin != Cout
    s = stride
    Ho = (H - 1) // s + 1
    Wo = (W - 1) // s + 1
    Cin_p = _round_up(Cin, LANE)
    Cout_p = _round_up(Cout, LANE)

    # NCHW -> NHWC; fold the bn1 affine AND its ReLU into the glue (relu(0)==0
    # keeps the subsequent zero spatial padding exact); bf16 MXU operand.
    x = jnp.transpose(x_nchw, (0, 2, 3, 1)).astype(jnp.float32)
    s1, b1 = _bn_scale_bias(params["bn1_gamma"], params["bn1_beta"],
                            params["bn1_mean"], params["bn1_var"])
    a_pre = jnp.maximum(x * s1 + b1, 0.0).astype(jnp.bfloat16)

    # Zero-pad by 1 (conv1 padding), pad channels to the lane width, and round
    # the padded spatial extent up to a multiple of the stride so the s*s
    # stride-phase slabs share one shape. Phase decomposition turns every
    # strided conv1 tap into a unit-stride in-kernel slice.
    Hpp = _round_up(H + 2, s)
    Wpp = _round_up(W + 2, s)
    ap = jnp.pad(a_pre, ((0, 0), (1, Hpp - H - 1), (1, Wpp - W - 1),
                         (0, Cin_p - Cin)))
    phases = [ap[:, a::s, b::s, :] for a in range(s) for b in range(s)]
    PHh, PHw = Hpp // s, Wpp // s

    w1 = _conv3x3_w_taps(params["conv1_w"], Cin_p, Cout_p)     # [9, Cin_p, Cout_p]
    w2 = _conv3x3_w_taps(params["conv2_w"], Cout_p, Cout_p)    # [9, Cout_p, Cout_p]
    s2, b2 = _bn_scale_bias(params["bn2_gamma"], params["bn2_beta"],
                            params["bn2_mean"], params["bn2_var"])
    s2 = jnp.pad(s2.reshape(1, Cout), ((0, 0), (0, Cout_p - Cout)))
    b2 = jnp.pad(b2.reshape(1, Cout), ((0, 0), (0, Cout_p - Cout)))

    x_str = x[:, ::s, ::s, :][:, :Ho, :Wo, :]                   # f32 [N,Ho,Wo,Cin]

    def sample_spec(shp):          # one sample per grid step
        return pl.BlockSpec((None,) + shp, lambda n: (n, 0, 0, 0))

    def resident3(shp):            # constant index_map -> VMEM-resident
        return pl.BlockSpec(shp, lambda n: (0, 0, 0))

    def resident2(shp):
        return pl.BlockSpec(shp, lambda n: (0, 0))

    in_specs = [sample_spec((PHh, PHw, Cin_p)) for _ in phases]
    in_specs += [resident3((9, Cin_p, Cout_p)),      # w1
                 resident2((1, Cout_p)),             # s2
                 resident2((1, Cout_p)),             # b2
                 resident3((9, Cout_p, Cout_p))]     # w2

    if has_proj:
        xs = jnp.pad(x_str, ((0, 0), (0, 0), (0, 0),
                             (0, Cin_p - Cin))).astype(jnp.bfloat16)
        wsc = jnp.transpose(params["sc_w"][:, :, 0, 0], (1, 0))           # [Cin,Cout]
        wsc = jnp.pad(wsc, ((0, Cin_p - Cin),
                            (0, Cout_p - Cout))).astype(jnp.bfloat16)
        in_specs += [sample_spec((Ho, Wo, Cin_p)), resident2((Cin_p, Cout_p))]
        args = (*phases, w1, s2, b2, w2, xs, wsc)
    else:
        xs = jnp.pad(x_str, ((0, 0), (0, 0), (0, 0), (0, Cout_p - Cout)))  # f32
        in_specs += [sample_spec((Ho, Wo, Cout_p))]
        args = (*phases, w1, s2, b2, w2, xs)

    kernel = _make_fused_kernel(stride=s, Ho=Ho, Wo=Wo, Cin_p=Cin_p,
                                Cout_p=Cout_p, has_proj=has_proj)

    flops = 2 * N * Ho * Wo * (9 * Cin_p * Cout_p + 9 * Cout_p * Cout_p
                               + (Cin_p * Cout_p if has_proj else 0))
    bytes_accessed = (sum(int(a.size) * a.dtype.itemsize for a in args)
                      + N * Ho * Wo * Cout_p * 4)

    out_p = pl.pallas_call(
        kernel,
        out_shape=jax.ShapeDtypeStruct((N, Ho, Wo, Cout_p), jnp.float32),
        grid=(N,),
        in_specs=in_specs,
        out_specs=sample_spec((Ho, Wo, Cout_p)),
        scratch_shapes=[pltpu.VMEM((Ho + 2, Wo + 2, Cout_p), jnp.bfloat16)],
        compiler_params=pltpu.CompilerParams(
            dimension_semantics=("parallel",),
            vmem_limit_bytes=_vmem_limit_bytes()),
        cost_estimate=pl.CostEstimate(flops=flops, transcendentals=0,
                                      bytes_accessed=bytes_accessed),
    )(*args)

    out = out_p[:, :, :, :Cout]
    return jnp.transpose(out, (0, 3, 1, 2))                     # back to NCHW


# --------------------------- pure-JAX reference ----------------------------- #

def _ref_forward(x, params, stride):
    def bn(t, g, b, m, v):
        g, b, m, v = (a[None, :, None, None] for a in (g, b, m, v))
        return (t - m) / jnp.sqrt(v + BN_EPS) * g + b

    def conv(t, w, s, pad):
        return jax.lax.conv_general_dilated(
            t, w, (s, s), [(pad, pad), (pad, pad)],
            dimension_numbers=("NCHW", "OIHW", "NCHW"),
            precision=jax.lax.Precision.HIGHEST)

    out = jnp.maximum(bn(x, params["bn1_gamma"], params["bn1_beta"],
                         params["bn1_mean"], params["bn1_var"]), 0.0)
    out = conv(out, params["conv1_w"], stride, 1)
    out = jnp.maximum(bn(out, params["bn2_gamma"], params["bn2_beta"],
                         params["bn2_mean"], params["bn2_var"]), 0.0)
    out = conv(out, params["conv2_w"], 1, 1)
    if x.shape[1] != params["conv1_w"].shape[0]:
        sc = conv(x, params["sc_w"], stride, 0)
    else:
        sc = x[:, :, ::stride, ::stride]
    return out + sc


# --------------------------------- main ------------------------------------ #

def _init_params(key, in_d, out_d):
    ks = jax.random.split(key, 8)
    p = {
        "bn1_gamma": 1.0 + 0.1 * jax.random.normal(ks[0], (in_d,), jnp.float32),
        "bn1_beta": 0.1 * jax.random.normal(ks[1], (in_d,), jnp.float32),
        "bn1_mean": 0.05 * jax.random.normal(ks[2], (in_d,), jnp.float32),
        "bn1_var": jax.random.uniform(ks[3], (in_d,), jnp.float32, 0.5, 1.5),
        "conv1_w": 0.1 * jax.random.normal(ks[4], (out_d, in_d, 3, 3), jnp.float32),
        "bn2_gamma": 1.0 + 0.1 * jax.random.normal(ks[5], (out_d,), jnp.float32),
        "bn2_beta": 0.1 * jax.random.normal(ks[6], (out_d,), jnp.float32),
        "bn2_mean": jnp.zeros((out_d,), jnp.float32),
        "bn2_var": jnp.ones((out_d,), jnp.float32),
        "conv2_w": 0.1 * jax.random.normal(ks[7], (out_d, out_d, 3, 3), jnp.float32),
    }
    if in_d != out_d:
        p["sc_w"] = 0.1 * jax.random.normal(
            jax.random.PRNGKey(123), (out_d, in_d, 1, 1), jnp.float32)
    return p


if __name__ == "__main__":
    N, H, W = 2, 16, 16
    configs = [
        (4, 8, 2),   # projection shortcut, strided conv1 (phase-decomposed taps)
        (8, 8, 1),   # identity shortcut, stride 1
    ]

    key = jax.random.PRNGKey(0)
    for in_d, out_d, stride in configs:
        kx, kp, key = jax.random.split(key, 3)
        x = jax.random.normal(kx, (N, in_d, H, W), jnp.float32)
        params = _init_params(kp, in_d, out_d)

        out = jax.block_until_ready(plain_v2_block_forward(x, params, stride=stride))
        ref = jax.block_until_ready(_ref_forward(x, params, stride))

        assert out.shape == ref.shape, (out.shape, ref.shape)
        # bf16 MXU operands with f32 accumulation vs. f32 HIGHEST reference.
        np.testing.assert_allclose(np.asarray(out), np.asarray(ref),
                                   rtol=3e-2, atol=3e-2)

    print("KERNEL_OK")
</pallas_src>

<mosaic_0001>
module attributes {stable_mosaic.version = 11 : i64} {
  func.func @kernel(%arg0: i32, %arg1: memref<1x9x9x128xbf16, #tpu.memory_space<vmem>>, %arg2: memref<1x9x9x128xbf16, #tpu.memory_space<vmem>>, %arg3: memref<1x9x9x128xbf16, #tpu.memory_space<vmem>>, %arg4: memref<1x9x9x128xbf16, #tpu.memory_space<vmem>>, %arg5: memref<9x128x128xbf16, #tpu.memory_space<vmem>>, %arg6: memref<1x128xf32, #tpu.memory_space<vmem>>, %arg7: memref<1x128xf32, #tpu.memory_space<vmem>>, %arg8: memref<9x128x128xbf16, #tpu.memory_space<vmem>>, %arg9: memref<1x8x8x128xbf16, #tpu.memory_space<vmem>>, %arg10: memref<128x128xbf16, #tpu.memory_space<vmem>>, %arg11: memref<1x8x8x128xf32, #tpu.memory_space<vmem>>, %arg12: memref<10x10x128xbf16, #tpu.memory_space<vmem>>) attributes {dimension_semantics = [#tpu.dimension_semantics<parallel>], iteration_bounds = array<i64: 2>, scalar_prefetch = 0 : i64, scratch_operands = 1 : i64, tpu.core_type = #tpu.core_type<tc>, window_params = [{transform_indices = @transform_0, window_bounds = array<i64: 1, 9, 9, 128>}, {transform_indices = @transform_1, window_bounds = array<i64: 1, 9, 9, 128>}, {transform_indices = @transform_2, window_bounds = array<i64: 1, 9, 9, 128>}, {transform_indices = @transform_3, window_bounds = array<i64: 1, 9, 9, 128>}, {pipeline_mode = #tpu.pipeline_mode<synchronous>, transform_indices = @transform_4, window_bounds = array<i64: 9, 128, 128>}, {pipeline_mode = #tpu.pipeline_mode<synchronous>, transform_indices = @transform_5, window_bounds = array<i64: 1, 128>}, {pipeline_mode = #tpu.pipeline_mode<synchronous>, transform_indices = @transform_6, window_bounds = array<i64: 1, 128>}, {pipeline_mode = #tpu.pipeline_mode<synchronous>, transform_indices = @transform_7, window_bounds = array<i64: 9, 128, 128>}, {transform_indices = @transform_8, window_bounds = array<i64: 1, 8, 8, 128>}, {pipeline_mode = #tpu.pipeline_mode<synchronous>, transform_indices = @transform_9, window_bounds = array<i64: 128, 128>}, {transform_indices = @transform_10, window_bounds = array<i64: 1, 8, 8, 128>}]} {
    %cst = arith.constant 0.000000e+00 : f32
    %0 = vector.broadcast %cst : f32 to vector<64x128xf32>
    %c0 = arith.constant 0 : index
    %c0_0 = arith.constant 0 : index
    %c0_1 = arith.constant 0 : index
    %c0_2 = arith.constant 0 : index
    %1 = vector.load %arg1[%c0, %c0_0, %c0_1, %c0_2] : memref<1x9x9x128xbf16, #tpu.memory_space<vmem>>, vector<1x8x8x128xbf16>
    %2 = vector.shape_cast %1 : vector<1x8x8x128xbf16> to vector<8x8x128xbf16>
    %3 = vector.shape_cast %2 : vector<8x8x128xbf16> to vector<64x128xbf16>
    %c0_3 = arith.constant 0 : index
    %c0_4 = arith.constant 0 : index
    %c0_5 = arith.constant 0 : index
    %4 = vector.load %arg5[%c0_3, %c0_4, %c0_5] : memref<9x128x128xbf16, #tpu.memory_space<vmem>>, vector<1x128x128xbf16>
    %5 = vector.shape_cast %4 : vector<1x128x128xbf16> to vector<128x128xbf16>
    %cst_6 = arith.constant dense<0.000000e+00> : vector<64x128xf32>
    %6 = tpu.matmul %3, %5, %cst_6 {dimension_numbers = #tpu.dot_dimension_numbers<[1], [0], [0], [1], [0, 0, 1, 1], [], []>} : vector<64x128xbf16>, vector<128x128xbf16>, vector<64x128xf32> -> vector<64x128xf32>
    %7 = arith.addf %0, %6 : vector<64x128xf32>
    %c0_7 = arith.constant 0 : index
    %c0_8 = arith.constant 0 : index
    %c0_9 = arith.constant 0 : index
    %c0_10 = arith.constant 0 : index
    %8 = vector.load %arg2[%c0_7, %c0_8, %c0_9, %c0_10] : memref<1x9x9x128xbf16, #tpu.memory_space<vmem>>, vector<1x8x8x128xbf16>
    %9 = vector.shape_cast %8 : vector<1x8x8x128xbf16> to vector<8x8x128xbf16>
    %10 = vector.shape_cast %9 : vector<8x8x128xbf16> to vector<64x128xbf16>
    %c1 = arith.constant 1 : index
    %c0_11 = arith.constant 0 : index
    %c0_12 = arith.constant 0 : index
    %11 = vector.load %arg5[%c1, %c0_11, %c0_12] : memref<9x128x128xbf16, #tpu.memory_space<vmem>>, vector<1x128x128xbf16>
    %12 = vector.shape_cast %11 : vector<1x128x128xbf16> to vector<128x128xbf16>
    %cst_13 = arith.constant dense<0.000000e+00> : vector<64x128xf32>
    %13 = tpu.matmul %10, %12, %cst_13 {dimension_numbers = #tpu.dot_dimension_numbers<[1], [0], [0], [1], [0, 0, 1, 1], [], []>} : vector<64x128xbf16>, vector<128x128xbf16>, vector<64x128xf32> -> vector<64x128xf32>
    %14 = arith.addf %7, %13 : vector<64x128xf32>
    %c0_14 = arith.constant 0 : index
    %c0_15 = arith.constant 0 : index
    %c1_16 = arith.constant 1 : index
    %c0_17 = arith.constant 0 : index
    %15 = vector.load %arg1[%c0_14, %c0_15, %c1_16, %c0_17] : memref<1x9x9x128xbf16, #tpu.memory_space<vmem>>, vector<1x8x8x128xbf16>
    %16 = vector.shape_cast %15 : vector<1x8x8x128xbf16> to vector<8x8x128xbf16>
    %17 = vector.shape_cast %16 : vector<8x8x128xbf16> to vector<64x128xbf16>
    %c2 = arith.constant 2 : index
    %c0_18 = arith.constant 0 : index
    %c0_19 = arith.constant 0 : index
    %18 = vector.load %arg5[%c2, %c0_18, %c0_19] : memref<9x128x128xbf16, #tpu.memory_space<vmem>>, vector<1x128x128xbf16>
    %19 = vector.shape_cast %18 : vector<1x128x128xbf16> to vector<128x128xbf16>
    %cst_20 = arith.constant dense<0.000000e+00> : vector<64x128xf32>
    %20 = tpu.matmul %17, %19, %cst_20 {dimension_numbers = #tpu.dot_dimension_numbers<[1], [0], [0], [1], [0, 0, 1, 1], [], []>} : vector<64x128xbf16>, vector<128x128xbf16>, vector<64x128xf32> -> vector<64x128xf32>
    %21 = arith.addf %14, %20 : vector<64x128xf32>
    %c0_21 = arith.constant 0 : index
    %c0_22 = arith.constant 0 : index
    %c0_23 = arith.constant 0 : index
    %c0_24 = arith.constant 0 : index
    %22 = vector.load %arg3[%c0_21, %c0_22, %c0_23, %c0_24] : memref<1x9x9x128xbf16, #tpu.memory_space<vmem>>, vector<1x8x8x128xbf16>
    %23 = vector.shape_cast %22 : vector<1x8x8x128xbf16> to vector<8x8x128xbf16>
    %24 = vector.shape_cast %23 : vector<8x8x128xbf16> to vector<64x128xbf16>
    %c3 = arith.constant 3 : index
    %c0_25 = arith.constant 0 : index
    %c0_26 = arith.constant 0 : index
    %25 = vector.load %arg5[%c3, %c0_25, %c0_26] : memref<9x128x128xbf16, #tpu.memory_space<vmem>>, vector<1x128x128xbf16>
    %26 = vector.shape_cast %25 : vector<1x128x128xbf16> to vector<128x128xbf16>
    %cst_27 = arith.constant dense<0.000000e+00> : vector<64x128xf32>
    %27 = tpu.matmul %24, %26, %cst_27 {dimension_numbers = #tpu.dot_dimension_numbers<[1], [0], [0], [1], [0, 0, 1, 1], [], []>} : vector<64x128xbf16>, vector<128x128xbf16>, vector<64x128xf32> -> vector<64x128xf32>
    %28 = arith.addf %21, %27 : vector<64x128xf32>
    %c0_28 = arith.constant 0 : index
    %c0_29 = arith.constant 0 : index
    %c0_30 = arith.constant 0 : index
    %c0_31 = arith.constant 0 : index
    %29 = vector.load %arg4[%c0_28, %c0_29, %c0_30, %c0_31] : memref<1x9x9x128xbf16, #tpu.memory_space<vmem>>, vector<1x8x8x128xbf16>
    %30 = vector.shape_cast %29 : vector<1x8x8x128xbf16> to vector<8x8x128xbf16>
    %31 = vector.shape_cast %30 : vector<8x8x128xbf16> to vector<64x128xbf16>
    %c4 = arith.constant 4 : index
    %c0_32 = arith.constant 0 : index
    %c0_33 = arith.constant 0 : index
    %32 = vector.load %arg5[%c4, %c0_32, %c0_33] : memref<9x128x128xbf16, #tpu.memory_space<vmem>>, vector<1x128x128xbf16>
    %33 = vector.shape_cast %32 : vector<1x128x128xbf16> to vector<128x128xbf16>
    %cst_34 = arith.constant dense<0.000000e+00> : vector<64x128xf32>
    %34 = tpu.matmul %31, %33, %cst_34 {dimension_numbers = #tpu.dot_dimension_numbers<[1], [0], [0], [1], [0, 0, 1, 1], [], []>} : vector<64x128xbf16>, vector<128x128xbf16>, vector<64x128xf32> -> vector<64x128xf32>
    %35 = arith.addf %28, %34 : vector<64x128xf32>
    %c0_35 = arith.constant 0 : index
    %c0_36 = arith.constant 0 : index
    %c1_37 = arith.constant 1 : index
    %c0_38 = arith.constant 0 : index
    %36 = vector.load %arg3[%c0_35, %c0_36, %c1_37, %c0_38] : memref<1x9x9x128xbf16, #tpu.memory_space<vmem>>, vector<1x8x8x128xbf16>
    %37 = vector.shape_cast %36 : vector<1x8x8x128xbf16> to vector<8x8x128xbf16>
    %38 = vector.shape_cast %37 : vector<8x8x128xbf16> to vector<64x128xbf16>
    %c5 = arith.constant 5 : index
    %c0_39 = arith.constant 0 : index
    %c0_40 = arith.constant 0 : index
    %39 = vector.load %arg5[%c5, %c0_39, %c0_40] : memref<9x128x128xbf16, #tpu.memory_space<vmem>>, vector<1x128x128xbf16>
    %40 = vector.shape_cast %39 : vector<1x128x128xbf16> to vector<128x128xbf16>
    %cst_41 = arith.constant dense<0.000000e+00> : vector<64x128xf32>
    %41 = tpu.matmul %38, %40, %cst_41 {dimension_numbers = #tpu.dot_dimension_numbers<[1], [0], [0], [1], [0, 0, 1, 1], [], []>} : vector<64x128xbf16>, vector<128x128xbf16>, vector<64x128xf32> -> vector<64x128xf32>
    %42 = arith.addf %35, %41 : vector<64x128xf32>
    %c0_42 = arith.constant 0 : index
    %c1_43 = arith.constant 1 : index
    %c0_44 = arith.constant 0 : index
    %c0_45 = arith.constant 0 : index
    %43 = vector.load %arg1[%c0_42, %c1_43, %c0_44, %c0_45] : memref<1x9x9x128xbf16, #tpu.memory_space<vmem>>, vector<1x8x8x128xbf16>
    %44 = vector.shape_cast %43 : vector<1x8x8x128xbf16> to vector<8x8x128xbf16>
    %45 = vector.shape_cast %44 : vector<8x8x128xbf16> to vector<64x128xbf16>
    %c6 = arith.constant 6 : index
    %c0_46 = arith.constant 0 : index
    %c0_47 = arith.constant 0 : index
    %46 = vector.load %arg5[%c6, %c0_46, %c0_47] : memref<9x128x128xbf16, #tpu.memory_space<vmem>>, vector<1x128x128xbf16>
    %47 = vector.shape_cast %46 : vector<1x128x128xbf16> to vector<128x128xbf16>
    %cst_48 = arith.constant dense<0.000000e+00> : vector<64x128xf32>
    %48 = tpu.matmul %45, %47, %cst_48 {dimension_numbers = #tpu.dot_dimension_numbers<[1], [0], [0], [1], [0, 0, 1, 1], [], []>} : vector<64x128xbf16>, vector<128x128xbf16>, vector<64x128xf32> -> vector<64x128xf32>
    %49 = arith.addf %42, %48 : vector<64x128xf32>
    %c0_49 = arith.constant 0 : index
    %c1_50 = arith.constant 1 : index
    %c0_51 = arith.constant 0 : index
    %c0_52 = arith.constant 0 : index
    %50 = vector.load %arg2[%c0_49, %c1_50, %c0_51, %c0_52] : memref<1x9x9x128xbf16, #tpu.memory_space<vmem>>, vector<1x8x8x128xbf16>
    %51 = vector.shape_cast %50 : vector<1x8x8x128xbf16> to vector<8x8x128xbf16>
    %52 = vector.shape_cast %51 : vector<8x8x128xbf16> to vector<64x128xbf16>
    %c7 = arith.constant 7 : index
    %c0_53 = arith.constant 0 : index
    %c0_54 = arith.constant 0 : index
    %53 = vector.load %arg5[%c7, %c0_53, %c0_54] : memref<9x128x128xbf16, #tpu.memory_space<vmem>>, vector<1x128x128xbf16>
    %54 = vector.shape_cast %53 : vector<1x128x128xbf16> to vector<128x128xbf16>
    %cst_55 = arith.constant dense<0.000000e+00> : vector<64x128xf32>
    %55 = tpu.matmul %52, %54, %cst_55 {dimension_numbers = #tpu.dot_dimension_numbers<[1], [0], [0], [1], [0, 0, 1, 1], [], []>} : vector<64x128xbf16>, vector<128x128xbf16>, vector<64x128xf32> -> vector<64x128xf32>
    %56 = arith.addf %49, %55 : vector<64x128xf32>
    %c0_56 = arith.constant 0 : index
    %c1_57 = arith.constant 1 : index
    %c1_58 = arith.constant 1 : index
    %c0_59 = arith.constant 0 : index
    %57 = vector.load %arg1[%c0_56, %c1_57, %c1_58, %c0_59] : memref<1x9x9x128xbf16, #tpu.memory_space<vmem>>, vector<1x8x8x128xbf16>
    %58 = vector.shape_cast %57 : vector<1x8x8x128xbf16> to vector<8x8x128xbf16>
    %59 = vector.shape_cast %58 : vector<8x8x128xbf16> to vector<64x128xbf16>
    %c8 = arith.constant 8 : index
    %c0_60 = arith.constant 0 : index
    %c0_61 = arith.constant 0 : index
    %60 = vector.load %arg5[%c8, %c0_60, %c0_61] : memref<9x128x128xbf16, #tpu.memory_space<vmem>>, vector<1x128x128xbf16>
    %61 = vector.shape_cast %60 : vector<1x128x128xbf16> to vector<128x128xbf16>
    %cst_62 = arith.constant dense<0.000000e+00> : vector<64x128xf32>
    %62 = tpu.matmul %59, %61, %cst_62 {dimension_numbers = #tpu.dot_dimension_numbers<[1], [0], [0], [1], [0, 0, 1, 1], [], []>} : vector<64x128xbf16>, vector<128x128xbf16>, vector<64x128xf32> -> vector<64x128xf32>
    %63 = arith.addf %56, %62 : vector<64x128xf32>
    %c0_63 = arith.constant 0 : index
    %c0_64 = arith.constant 0 : index
    %64 = vector.load %arg6[%c0_63, %c0_64] : memref<1x128xf32, #tpu.memory_space<vmem>>, vector<1x128xf32>
    %65 = vector.broadcast %64 : vector<1x128xf32> to vector<64x128xf32>
    %66 = arith.mulf %63, %65 : vector<64x128xf32>
    %c0_65 = arith.constant 0 : index
    %c0_66 = arith.constant 0 : index
    %67 = vector.load %arg7[%c0_65, %c0_66] : memref<1x128xf32, #tpu.memory_space<vmem>>, vector<1x128xf32>
    %68 = vector.broadcast %67 : vector<1x128xf32> to vector<64x128xf32>
    %69 = arith.addf %66, %68 : vector<64x128xf32>
    %cst_67 = arith.constant 0.000000e+00 : f32
    %70 = vector.broadcast %cst_67 : f32 to vector<64x128xf32>
    %71 = arith.maximumf %69, %70 : vector<64x128xf32>
    %72 = arith.truncf %71 : vector<64x128xf32> to vector<64x128xbf16>
    %cst_68 = arith.constant 0.000000e+00 : bf16
    %73 = vector.broadcast %cst_68 : bf16 to vector<10x10x128xbf16>
    %c0_69 = arith.constant 0 : index
    %c0_70 = arith.constant 0 : index
    %c0_71 = arith.constant 0 : index
    %74 = vector.load %arg12[%c0_69, %c0_70, %c0_71] : memref<10x10x128xbf16, #tpu.memory_space<vmem>>, vector<10x10x128xbf16>
    tpu.vector_store %arg12[%c0_69, %c0_70, %c0_71], %73 {strides = array<i32>} : memref<10x10x128xbf16, #tpu.memory_space<vmem>>, vector<10x10x128xbf16>,
    %75 = vector.shape_cast %72 : vector<64x128xbf16> to vector<8x8x128xbf16>
    %c1_72 = arith.constant 1 : index
    %c1_73 = arith.constant 1 : index
    %c0_74 = arith.constant 0 : index
    %76 = vector.load %arg12[%c1_72, %c1_73, %c0_74] : memref<10x10x128xbf16, #tpu.memory_space<vmem>>, vector<8x8x128xbf16>
    tpu.vector_store %arg12[%c1_72, %c1_73, %c0_74], %75 {strides = array<i32>} : memref<10x10x128xbf16, #tpu.memory_space<vmem>>, vector<8x8x128xbf16>,
    %c0_75 = arith.constant 0 : index
    %c0_76 = arith.constant 0 : index
    %c0_77 = arith.constant 0 : index
    %c0_78 = arith.constant 0 : index
    %77 = vector.load %arg9[%c0_75, %c0_76, %c0_77, %c0_78] : memref<1x8x8x128xbf16, #tpu.memory_space<vmem>>, vector<1x8x8x128xbf16>
    %78 = vector.shape_cast %77 : vector<1x8x8x128xbf16> to vector<8x8x128xbf16>
    %79 = vector.shape_cast %78 : vector<8x8x128xbf16> to vector<64x128xbf16>
    %c0_79 = arith.constant 0 : index
    %c0_80 = arith.constant 0 : index
    %80 = vector.load %arg10[%c0_79, %c0_80] : memref<128x128xbf16, #tpu.memory_space<vmem>>, vector<128x128xbf16>
    %cst_81 = arith.constant dense<0.000000e+00> : vector<64x128xf32>
    %81 = tpu.matmul %79, %80, %cst_81 {dimension_numbers = #tpu.dot_dimension_numbers<[1], [0], [0], [1], [0, 0, 1, 1], [], []>} : vector<64x128xbf16>, vector<128x128xbf16>, vector<64x128xf32> -> vector<64x128xf32>
    %c0_82 = arith.constant 0 : index
    %c0_83 = arith.constant 0 : index
    %c0_84 = arith.constant 0 : index
    %82 = vector.load %arg12[%c0_82, %c0_83, %c0_84] : memref<10x10x128xbf16, #tpu.memory_space<vmem>>, vector<8x8x128xbf16>
    %83 = vector.shape_cast %82 : vector<8x8x128xbf16> to vector<64x128xbf16>
    %c0_85 = arith.constant 0 : index
    %c0_86 = arith.constant 0 : index
    %c0_87 = arith.constant 0 : index
    %84 = vector.load %arg8[%c0_85, %c0_86, %c0_87] : memref<9x128x128xbf16, #tpu.memory_space<vmem>>, vector<1x128x128xbf16>
    %85 = vector.shape_cast %84 : vector<1x128x128xbf16> to vector<128x128xbf16>
    %cst_88 = arith.constant dense<0.000000e+00> : vector<64x128xf32>
    %86 = tpu.matmul %83, %85, %cst_88 {dimension_numbers = #tpu.dot_dimension_numbers<[1], [0], [0], [1], [0, 0, 1, 1], [], []>} : vector<64x128xbf16>, vector<128x128xbf16>, vector<64x128xf32> -> vector<64x128xf32>
    %87 = arith.addf %81, %86 : vector<64x128xf32>
    %c0_89 = arith.constant 0 : index
    %c1_90 = arith.constant 1 : index
    %c0_91 = arith.constant 0 : index
    %88 = vector.load %arg12[%c0_89, %c1_90, %c0_91] : memref<10x10x128xbf16, #tpu.memory_space<vmem>>, vector<8x8x128xbf16>
    %89 = vector.shape_cast %88 : vector<8x8x128xbf16> to vector<64x128xbf16>
    %c1_92 = arith.constant 1 : index
    %c0_93 = arith.constant 0 : index
    %c0_94 = arith.constant 0 : index
    %90 = vector.load %arg8[%c1_92, %c0_93, %c0_94] : memref<9x128x128xbf16, #tpu.memory_space<vmem>>, vector<1x128x128xbf16>
    %91 = vector.shape_cast %90 : vector<1x128x128xbf16> to vector<128x128xbf16>
    %cst_95 = arith.constant dense<0.000000e+00> : vector<64x128xf32>
    %92 = tpu.matmul %89, %91, %cst_95 {dimension_numbers = #tpu.dot_dimension_numbers<[1], [0], [0], [1], [0, 0, 1, 1], [], []>} : vector<64x128xbf16>, vector<128x128xbf16>, vector<64x128xf32> -> vector<64x128xf32>
    %93 = arith.addf %87, %92 : vector<64x128xf32>
    %c0_96 = arith.constant 0 : index
    %c2_97 = arith.constant 2 : index
    %c0_98 = arith.constant 0 : index
    %94 = vector.load %arg12[%c0_96, %c2_97, %c0_98] : memref<10x10x128xbf16, #tpu.memory_space<vmem>>, vector<8x8x128xbf16>
    %95 = vector.shape_cast %94 : vector<8x8x128xbf16> to vector<64x128xbf16>
    %c2_99 = arith.constant 2 : index
    %c0_100 = arith.constant 0 : index
    %c0_101 = arith.constant 0 : index
    %96 = vector.load %arg8[%c2_99, %c0_100, %c0_101] : memref<9x128x128xbf16, #tpu.memory_space<vmem>>, vector<1x128x128xbf16>
    %97 = vector.shape_cast %96 : vector<1x128x128xbf16> to vector<128x128xbf16>
    %cst_102 = arith.constant dense<0.000000e+00> : vector<64x128xf32>
    %98 = tpu.matmul %95, %97, %cst_102 {dimension_numbers = #tpu.dot_dimension_numbers<[1], [0], [0], [1], [0, 0, 1, 1], [], []>} : vector<64x128xbf16>, vector<128x128xbf16>, vector<64x128xf32> -> vector<64x128xf32>
    %99 = arith.addf %93, %98 : vector<64x128xf32>
    %c1_103 = arith.constant 1 : index
    %c0_104 = arith.constant 0 : index
    %c0_105 = arith.constant 0 : index
    %100 = vector.load %arg12[%c1_103, %c0_104, %c0_105] : memref<10x10x128xbf16, #tpu.memory_space<vmem>>, vector<8x8x128xbf16>
    %101 = vector.shape_cast %100 : vector<8x8x128xbf16> to vector<64x128xbf16>
    %c3_106 = arith.constant 3 : index
    %c0_107 = arith.constant 0 : index
    %c0_108 = arith.constant 0 : index
    %102 = vector.load %arg8[%c3_106, %c0_107, %c0_108] : memref<9x128x128xbf16, #tpu.memory_space<vmem>>, vector<1x128x128xbf16>
    %103 = vector.shape_cast %102 : vector<1x128x128xbf16> to vector<128x128xbf16>
    %cst_109 = arith.constant dense<0.000000e+00> : vector<64x128xf32>
    %104 = tpu.matmul %101, %103, %cst_109 {dimension_numbers = #tpu.dot_dimension_numbers<[1], [0], [0], [1], [0, 0, 1, 1], [], []>} : vector<64x128xbf16>, vector<128x128xbf16>, vector<64x128xf32> -> vector<64x128xf32>
    %105 = arith.addf %99, %104 : vector<64x128xf32>
    %c1_110 = arith.constant 1 : index
    %c1_111 = arith.constant 1 : index
    %c0_112 = arith.constant 0 : index
    %106 = vector.load %arg12[%c1_110, %c1_111, %c0_112] : memref<10x10x128xbf16, #tpu.memory_space<vmem>>, vector<8x8x128xbf16>
    %107 = vector.shape_cast %106 : vector<8x8x128xbf16> to vector<64x128xbf16>
    %c4_113 = arith.constant 4 : index
    %c0_114 = arith.constant 0 : index
    %c0_115 = arith.constant 0 : index
    %108 = vector.load %arg8[%c4_113, %c0_114, %c0_115] : memref<9x128x128xbf16, #tpu.memory_space<vmem>>, vector<1x128x128xbf16>
    %109 = vector.shape_cast %108 : vector<1x128x128xbf16> to vector<128x128xbf16>
    %cst_116 = arith.constant dense<0.000000e+00> : vector<64x128xf32>
    %110 = tpu.matmul %107, %109, %cst_116 {dimension_numbers = #tpu.dot_dimension_numbers<[1], [0], [0], [1], [0, 0, 1, 1], [], []>} : vector<64x128xbf16>, vector<128x128xbf16>, vector<64x128xf32> -> vector<64x128xf32>
    %111 = arith.addf %105, %110 : vector<64x128xf32>
    %c1_117 = arith.constant 1 : index
    %c2_118 = arith.constant 2 : index
    %c0_119 = arith.constant 0 : index
    %112 = vector.load %arg12[%c1_117, %c2_118, %c0_119] : memref<10x10x128xbf16, #tpu.memory_space<vmem>>, vector<8x8x128xbf16>
    %113 = vector.shape_cast %112 : vector<8x8x128xbf16> to vector<64x128xbf16>
    %c5_120 = arith.constant 5 : index
    %c0_121 = arith.constant 0 : index
    %c0_122 = arith.constant 0 : index
    %114 = vector.load %arg8[%c5_120, %c0_121, %c0_122] : memref<9x128x128xbf16, #tpu.memory_space<vmem>>, vector<1x128x128xbf16>
    %115 = vector.shape_cast %114 : vector<1x128x128xbf16> to vector<128x128xbf16>
    %cst_123 = arith.constant dense<0.000000e+00> : vector<64x128xf32>
    %116 = tpu.matmul %113, %115, %cst_123 {dimension_numbers = #tpu.dot_dimension_numbers<[1], [0], [0], [1], [0, 0, 1, 1], [], []>} : vector<64x128xbf16>, vector<128x128xbf16>, vector<64x128xf32> -> vector<64x128xf32>
    %117 = arith.addf %111, %116 : vector<64x128xf32>
    %c2_124 = arith.constant 2 : index
    %c0_125 = arith.constant 0 : index
    %c0_126 = arith.constant 0 : index
    %118 = vector.load %arg12[%c2_124, %c0_125, %c0_126] : memref<10x10x128xbf16, #tpu.memory_space<vmem>>, vector<8x8x128xbf16>
    %119 = vector.shape_cast %118 : vector<8x8x128xbf16> to vector<64x128xbf16>
    %c6_127 = arith.constant 6 : index
    %c0_128 = arith.constant 0 : index
    %c0_129 = arith.constant 0 : index
    %120 = vector.load %arg8[%c6_127, %c0_128, %c0_129] : memref<9x128x128xbf16, #tpu.memory_space<vmem>>, vector<1x128x128xbf16>
    %121 = vector.shape_cast %120 : vector<1x128x128xbf16> to vector<128x128xbf16>
    %cst_130 = arith.constant dense<0.000000e+00> : vector<64x128xf32>
    %122 = tpu.matmul %119, %121, %cst_130 {dimension_numbers = #tpu.dot_dimension_numbers<[1], [0], [0], [1], [0, 0, 1, 1], [], []>} : vector<64x128xbf16>, vector<128x128xbf16>, vector<64x128xf32> -> vector<64x128xf32>
    %123 = arith.addf %117, %122 : vector<64x128xf32>
    %c2_131 = arith.constant 2 : index
    %c1_132 = arith.constant 1 : index
    %c0_133 = arith.constant 0 : index
    %124 = vector.load %arg12[%c2_131, %c1_132, %c0_133] : memref<10x10x128xbf16, #tpu.memory_space<vmem>>, vector<8x8x128xbf16>
    %125 = vector.shape_cast %124 : vector<8x8x128xbf16> to vector<64x128xbf16>
    %c7_134 = arith.constant 7 : index
    %c0_135 = arith.constant 0 : index
    %c0_136 = arith.constant 0 : index
    %126 = vector.load %arg8[%c7_134, %c0_135, %c0_136] : memref<9x128x128xbf16, #tpu.memory_space<vmem>>, vector<1x128x128xbf16>
    %127 = vector.shape_cast %126 : vector<1x128x128xbf16> to vector<128x128xbf16>
    %cst_137 = arith.constant dense<0.000000e+00> : vector<64x128xf32>
    %128 = tpu.matmul %125, %127, %cst_137 {dimension_numbers = #tpu.dot_dimension_numbers<[1], [0], [0], [1], [0, 0, 1, 1], [], []>} : vector<64x128xbf16>, vector<128x128xbf16>, vector<64x128xf32> -> vector<64x128xf32>
    %129 = arith.addf %123, %128 : vector<64x128xf32>
    %c2_138 = arith.constant 2 : index
    %c2_139 = arith.constant 2 : index
    %c0_140 = arith.constant 0 : index
    %130 = vector.load %arg12[%c2_138, %c2_139, %c0_140] : memref<10x10x128xbf16, #tpu.memory_space<vmem>>, vector<8x8x128xbf16>
    %131 = vector.shape_cast %130 : vector<8x8x128xbf16> to vector<64x128xbf16>
    %c8_141 = arith.constant 8 : index
    %c0_142 = arith.constant 0 : index
    %c0_143 = arith.constant 0 : index
    %132 = vector.load %arg8[%c8_141, %c0_142, %c0_143] : memref<9x128x128xbf16, #tpu.memory_space<vmem>>, vector<1x128x128xbf16>
    %133 = vector.shape_cast %132 : vector<1x128x128xbf16> to vector<128x128xbf16>
    %cst_144 = arith.constant dense<0.000000e+00> : vector<64x128xf32>
    %134 = tpu.matmul %131, %133, %cst_144 {dimension_numbers = #tpu.dot_dimension_numbers<[1], [0], [0], [1], [0, 0, 1, 1], [], []>} : vector<64x128xbf16>, vector<128x128xbf16>, vector<64x128xf32> -> vector<64x128xf32>
    %135 = arith.addf %129, %134 : vector<64x128xf32>
    %136 = vector.shape_cast %135 : vector<64x128xf32> to vector<8x8x128xf32>
    %c0_145 = arith.constant 0 : index
    %c0_146 = arith.constant 0 : index
    %c0_147 = arith.constant 0 : index
    %c0_148 = arith.constant 0 : index
    %137 = vector.load %arg11[%c0_145, %c0_146, %c0_147, %c0_148] : memref<1x8x8x128xf32, #tpu.memory_space<vmem>>, vector<1x8x8x128xf32>
    %138 = vector.shape_cast %137 : vector<1x8x8x128xf32> to vector<8x8x128xf32>
    %139 = vector.shape_cast %136 : vector<8x8x128xf32> to vector<1x8x8x128xf32>
    tpu.vector_store %arg11[%c0_145, %c0_146, %c0_147, %c0_148], %139 {strides = array<i32>} : memref<1x8x8x128xf32, #tpu.memory_space<vmem>>, vector<1x8x8x128xf32>,
    return
  }
  func.func @transform_0(%arg0: i32) -> (i32, i32, i32, i32) {
    %c0_i32 = arith.constant 0 : i32
    %c0_i32_0 = arith.constant 0 : i32
    %c0_i32_1 = arith.constant 0 : i32
    %c0_i32_2 = arith.constant 0 : i32
    return %arg0, %c0_i32, %c0_i32_0, %c0_i32_1 : i32, i32, i32, i32
  }
  func.func @transform_1(%arg0: i32) -> (i32, i32, i32, i32) {
    %c0_i32 = arith.constant 0 : i32
    %c0_i32_0 = arith.constant 0 : i32
    %c0_i32_1 = arith.constant 0 : i32
    %c0_i32_2 = arith.constant 0 : i32
    return %arg0, %c0_i32, %c0_i32_0, %c0_i32_1 : i32, i32, i32, i32
  }
  func.func @transform_2(%arg0: i32) -> (i32, i32, i32, i32) {
    %c0_i32 = arith.constant 0 : i32
    %c0_i32_0 = arith.constant 0 : i32
    %c0_i32_1 = arith.constant 0 : i32
    %c0_i32_2 = arith.constant 0 : i32
    return %arg0, %c0_i32, %c0_i32_0, %c0_i32_1 : i32, i32, i32, i32
  }
  func.func @transform_3(%arg0: i32) -> (i32, i32, i32, i32) {
    %c0_i32 = arith.constant 0 : i32
    %c0_i32_0 = arith.constant 0 : i32
    %c0_i32_1 = arith.constant 0 : i32
    %c0_i32_2 = arith.constant 0 : i32
    return %arg0, %c0_i32, %c0_i32_0, %c0_i32_1 : i32, i32, i32, i32
  }
  func.func @transform_4(%arg0: i32) -> (i32, i32, i32) {
    %c0_i32 = arith.constant 0 : i32
    %c0_i32_0 = arith.constant 0 : i32
    %c0_i32_1 = arith.constant 0 : i32
    %c0_i32_2 = arith.constant 0 : i32
    return %c0_i32, %c0_i32_0, %c0_i32_1 : i32, i32, i32
  }
  func.func @transform_5(%arg0: i32) -> (i32, i32) {
    %c0_i32 = arith.constant 0 : i32
    %c0_i32_0 = arith.constant 0 : i32
    %c0_i32_1 = arith.constant 0 : i32
    return %c0_i32, %c0_i32_0 : i32, i32
  }
  func.func @transform_6(%arg0: i32) -> (i32, i32) {
    %c0_i32 = arith.constant 0 : i32
    %c0_i32_0 = arith.constant 0 : i32
    %c0_i32_1 = arith.constant 0 : i32
    return %c0_i32, %c0_i32_0 : i32, i32
  }
  func.func @transform_7(%arg0: i32) -> (i32, i32, i32) {
    %c0_i32 = arith.constant 0 : i32
    %c0_i32_0 = arith.constant 0 : i32
    %c0_i32_1 = arith.constant 0 : i32
    %c0_i32_2 = arith.constant 0 : i32
    return %c0_i32, %c0_i32_0, %c0_i32_1 : i32, i32, i32
  }
  func.func @transform_8(%arg0: i32) -> (i32, i32, i32, i32) {
    %c0_i32 = arith.constant 0 : i32
    %c0_i32_0 = arith.constant 0 : i32
    %c0_i32_1 = arith.constant 0 : i32
    %c0_i32_2 = arith.constant 0 : i32
    return %arg0, %c0_i32, %c0_i32_0, %c0_i32_1 : i32, i32, i32, i32
  }
  func.func @transform_9(%arg0: i32) -> (i32, i32) {
    %c0_i32 = arith.constant 0 : i32
    %c0_i32_0 = arith.constant 0 : i32
    %c0_i32_1 = arith.constant 0 : i32
    return %c0_i32, %c0_i32_0 : i32, i32
  }
  func.func @transform_10(%arg0: i32) -> (i32, i32, i32, i32) {
    %c0_i32 = arith.constant 0 : i32
    %c0_i32_0 = arith.constant 0 : i32
    %c0_i32_1 = arith.constant 0 : i32
    %c0_i32_2 = arith.constant 0 : i32
    return %arg0, %c0_i32, %c0_i32_0, %c0_i32_1 : i32, i32, i32, i32
  }
}

</mosaic_0001>

<bundles_post_ra>
// kernel: plain_v2_block_forward.1
= control target key start
LH: loop header
LB: loop body
LE: loop exit
PB: predicated region body
PF: predicated region fallthrough
CT: control target
= control target key end

     0   :  { %s6306_s13 = smov 0   ;;  %s7453_s0 = inlined_call_operand.vmem [shape: bf16[2,9,9,128], index: 0, kind: input, shape index: {}]   ;;  %s7454_s1 = inlined_call_operand.vmem [shape: bf16[2,9,9,128], index: 1, kind: input, shape index: {}]   ;;  %s7455_s2 = inlined_call_operand.vmem [shape: bf16[2,9,9,128], index: 2, kind: input, shape index: {}]   ;;  %s7456_s3 = inlined_call_operand.vmem [shape: bf16[2,9,9,128], index: 3, kind: input, shape index: {}]   ;;  %s7457_s4 = inlined_call_operand.vmem [shape: bf16[9,128,128], index: 4, kind: input, shape index: {}]   ;;  %s7458_s5 = inlined_call_operand.vmem [shape: f32[1,128], index: 5, kind: input, shape index: {}]   ;;  %s7459_s6 = inlined_call_operand.vmem [shape: f32[1,128], index: 6, kind: input, shape index: {}]   ;;  %s7460_s7 = inlined_call_operand.vmem [shape: bf16[9,128,128], index: 7, kind: input, shape index: {}]   ;;  %s7461_s8 = inlined_call_operand.vmem [shape: bf16[2,8,8,128], index: 8, kind: input, shape index: {}]   ;;  %s7462_s9 = inlined_call_operand.vmem [shape: bf16[128,128], index: 9, kind: input, shape index: {}]   ;;  %s7463_s10 = inlined_call_operand.vmem [shape: f32[2,8,8,128], index: 10, kind: output, shape index: {}]  }
   0x1 LB: > { %s4765_s14 = sadd.s32 4294967295, %s6248_s13   ;;  %p4769_p0 = scmp.ge.s32.totalorder %s6248_s13, 1  ;;  %s6248_s13 = sphi %s6306_s13, %s20_s13  }
   0x2   : > { %p352_p1 = scmp.lt.s32.totalorder %s6248_s13, 3 }
   0x4   : > { %p353_p2 = pnand %p4769_p0, %p352_p1 }
   0x6   : > { %356 = sbr.rel (%p353_p2) target bundleno = 762 (0x2fa), region = 60 }
   0xb   : > { %v6050_v0 = vld [vmem:[%s7457_s4 + $0x78] sm:$0xff]   ;;  %p410_p3 = scmp.lt.s32.totalorder %s4765_s14, 1  ;;  %v6052_v2 = vld [vmem:[%s7457_s4 + $0x70] sm:$0xff]   ;;  %v6054_v4 = vld [vmem:[%s7457_s4 + $0x68] sm:$0xff]   ;;  %vm780_vm0 = vsmask.f32 3328 }
   0xc   : > { %v6051_v1 = vld [vmem:[%s7457_s4 + $0x38] sm:$0xff]   ;;  %5568 = vmatprep.subr.bf16.mxu0 %v6050_v0  ;;  %v6053_v3 = vld [vmem:[%s7457_s4 + $0x30] sm:$0xff]   ;;  %v6055_v5 = vld [vmem:[%s7457_s4 + $0x28] sm:$0xff]   ;;  %vm781_vm1 = vsmask.f32 7440  ;;  %v7468_v60 = vmov 0 }
   0xd   : > { %5592 = vmatprep.subr.bf16.mxu1 %v6051_v1  ;;  %5569 = vmatpush3.bf16.msra.mxu0 %v6050_v0  ;;  %s7497_s14 = smov (!%p410_p3, %s4765_s14), 1  ;;  %v6056_v6 = vld [vmem:[%s7457_s4 + $0x60] sm:$0xff]   ;;  %v6058_v8 = vld [vmem:[%s7457_s4 + $0x58] sm:$0xff]   ;;  %v6060_v10 = vld [vmem:[%s7457_s4 + $0x50] sm:$0xff]   ;;  %vm2458_vm3 = vcmask 1043456   ;;  %vm2464_vm5 = vcmask 1040384  }
   0xe   : > { %5593 = vmatpush3.bf16.msra.mxu1 %v6051_v1  ;;  %5570 = vmatprep.subr.bf16.mxu0 %v6052_v2  ;;  %v6057_v7 = vld [vmem:[%s7457_s4 + $0x20] sm:$0xff]   ;;  %s6341_s11 = smul.u32 72, %s7497_s14  ;;  %v6059_v9 = vld [vmem:[%s7457_s4 + $0x18] sm:$0xff]   ;;  %v6061_v11 = vld [vmem:[%s7457_s4 + $0x10] sm:$0xff]   ;;  %vm2459_vm4 = vsmask.f32 7938 }
   0xf   : > { %5594 = vmatprep.subr.bf16.mxu1 %v6053_v3  ;;  %v6062_v14 = vld [vmem:[%s7457_s4 + $0x48] sm:$0xff]   ;;  %v6064_v16 = vld [vmem:[%s7457_s4 + $0x40] sm:$0xff]   ;;  %v6070_v19 = vld [vmem:[%s7457_s4 + $0xb8] sm:$0xff]   ;;  %vm2465_vm6 = vsmask.f32 256  ;;  %vm3140_vm9 = vcmask 1042432  }
  0x10   : > { %s6353_s20 = scalar_lea.vmem %s7454_s1, %s6341_s11  ;;  %s6362_s25 = scalar_lea.vmem %s7453_s0, %s6341_s11  ;;  %v6063_v15 = vld [vmem:[%s7457_s4 + $0x8] sm:$0xff]   ;;  %v6065_v17 = vld [vmem:[%s7457_s4] sm:$0xff]   ;;  %v6071_v20 = vld [vmem:[%s7457_s4 + $0xf8] sm:$0xff]   ;;  %vm3141_vm10 = vcmask 1046532  }
  0x11   : > { %5571 = vmatpush3.bf16.msra.mxu0 %v6052_v2  ;;  %v6066_v12 = vld [vmem:[%s6353_s20] ss:$8 sps:$4 sm:$0xff]   ;;  %v6068_v18 = vld [vmem:[%s6353_s20 + $0x10] ss:$8 sps:$4 sm:$0xff]   ;;  %v765_v33 = vld [vmem:[%s6362_s25 + $0x4] sm:$0x1]  ;;  %s6429_s28 = scalar_lea.vmem %s7455_s2, %s6341_s11  ;;  %s6508_s26 = scalar_lea.vmem %s7456_s3, %s6341_s11 }
  0x12   : > { %5595 = vmatpush3.bf16.msra.mxu1 %v6053_v3  ;;  %5572 = vmatprep.subr.bf16.mxu0 %v6054_v4  ;;  %v6067_v13 = vld [vmem:[%s6362_s25] ss:$8 sps:$4 sm:$0xff]   ;;  %v6069_v21 = vld [vmem:[%s6362_s25 + $0x10] ss:$8 sps:$4 sm:$0xff]   ;;  %v767_v35 = vld [vmem:[%s6362_s25 + $0xc] sm:$0x1] }
  0x13   : > { %5596 = vmatprep.subr.bf16.mxu1 %v6055_v5  ;;  %5584 = vmatprep.mubr.bf16.mxu0 %v6066_v12  ;;  %v6072_v22 = vld [vmem:[%s7457_s4 + $0xb0] sm:$0xff]   ;;  %v6079_v24 = vld [vmem:[%s6353_s20 + $0x20] ss:$8 sps:$4 sm:$0xff]   ;;  %v6078_v36 = vld [vmem:[%s7457_s4 + $0x98] sm:$0xff]   ;;  %v793_v39 = vshll.u32 %v765_v33, 16  ;;  %v807_v44 = vshll.u32 %v767_v35, 16 }
  0x14   : > { %5608 = vmatprep.mubr.bf16.mxu1 %v6067_v13  ;;  %v6073_v23 = vld [vmem:[%s7457_s4 + $0xf0] sm:$0xff]   ;;  %v6080_v25 = vld [vmem:[%s6362_s25 + $0x20] ss:$8 sps:$4 sm:$0xff]   ;;  %v6081_v42 = vld [vmem:[%s7457_s4 + $0xd8] sm:$0xff]   ;;  %s5330_s11 = sshll.u32 %s7497_s14, 5  ;;  %s5331_s22 = sshll.u32 %s7497_s14, 6 }
  0x15   : > { %5573 = vmatpush3.bf16.msra.mxu0 %v6054_v4  ;;  %v6074_v26 = vld [vmem:[%s7457_s4 + $0xa8] sm:$0xff]   ;;  %v6076_v28 = vld [vmem:[%s7457_s4 + $0xa0] sm:$0xff]   ;;  %v6082_v29 = vld [vmem:[%s6353_s20 + $0x30] ss:$8 sps:$4 sm:$0xff]   ;;  %v795_v49 = vrot.slane %v793_v39, 5  ;;  %v809_v53 = vrot.slane %v807_v44, 5  ;;  %s6725_s17 = scalar_lea.vmem %s7461_s8, %s5330_s11 }
  0x16   : > { %5597 = vmatpush3.bf16.msra.mxu1 %v6055_v5  ;;  %5574 = vmatprep.subr.bf16.mxu0 %v6056_v6  ;;  %v6075_v27 = vld [vmem:[%s7457_s4 + $0xe8] sm:$0xff]   ;;  %v6077_v30 = vld [vmem:[%s7457_s4 + $0xe0] sm:$0xff]   ;;  %v6083_v31 = vld [vmem:[%s6362_s25 + $0x30] ss:$8 sps:$4 sm:$0xff]  }
  0x17   : > { %5598 = vmatprep.subr.bf16.mxu1 %v6057_v7  ;;  %v764_v32 = vld [vmem:[%s6362_s25] sm:$0xf]  ;;  %v766_v34 = vld [vmem:[%s6362_s25 + $0x8] sm:$0xf]  ;;  %v768_v41 = vld [vmem:[%s6362_s25 + $0x10] sm:$0xf] }
  0x18   : > { %v784_v37 = vshrl.u32 %v764_v32, 16  ;;  %v787_v38 = vshll.u32 %v764_v32, 16  ;;  %v798_v40 = vshrl.u32 %v766_v34, 16  ;;  %v801_v43 = vshll.u32 %v766_v34, 16  ;;  %v769_v45 = vld [vmem:[%s6362_s25 + $0x14] sm:$0x1]  ;;  %vm6433_vm2 = vmor %vm780_vm0, %vm781_vm1 }
  0x19   : > { %5575 = vmatpush3.bf16.msra.mxu0 %v6056_v6  ;;  %v770_v46 = vld [vmem:[%s6362_s25 + $0x18] sm:$0xf]  ;;  %v771_v51 = vld [vmem:[%s6362_s25 + $0x1c] sm:$0x1]  ;;  %v812_v54 = vshrl.u32 %v768_v41, 16  ;;  %v815_v55 = vshll.u32 %v768_v41, 16  ;;  %vm6880_vm7 = vmand %vm2458_vm3, %vm2459_vm4 }
  0x1a   : > { %5599 = vmatpush3.bf16.msra.mxu1 %v6057_v7  ;;  %5576 = vmatprep.subr.bf16.mxu0 %v6058_v8  ;;  %v786_v47 = vrot.slane %v784_v37, 4  ;;  %v789_v48 = vrot.slane %v787_v38, 5  ;;  %v800_v50 = vrot.slane %v798_v40, 4  ;;  %v803_v52 = vrot.slane %v801_v43, 5  ;;  %v6084_v1 = vld [vmem:[%s7457_s4 + $0x90] sm:$0xff]   ;;  %vm6886_vm8 = vmand %vm2464_vm5, %vm2465_vm6 }
  0x1b   : > { %5600 = vmatprep.subr.bf16.mxu1 %v6059_v9  ;;  %v821_v57 = vshll.u32 %v769_v45, 16  ;;  %v826_v58 = vshrl.u32 %v770_v46, 16  ;;  %v829_v59 = vshll.u32 %v770_v46, 16  ;;  %v7469_v60 = vsel %vm6433_vm2, 4294967295, %v7468_v60  ;;  %v6085_v5 = vld [vmem:[%s7457_s4 + $0xd0] sm:$0xff]   ;;  %vm6941_vm11 = vmor %vm3140_vm9, %vm3141_vm10 }
  0x1c   : > { %v790_v56 = vor.u32 %v789_v48, %v786_v47  ;;  %7470 = vst [vmem:[#allocation3_spill] sm:$0xff] %v7469_v60  ;;  %v804_v61 = vor.u32 %v803_v52, %v800_v50  ;;  %v814_v62 = vrot.slane %v812_v54, 4  ;;  %v817_v63 = vrot.slane %v815_v55, 5  ;;  %v776_v32 = vld [vmem:[%s6362_s25 + $0x30] sm:$0xf]  ;;  %v6090_v52 = vld [vmem:[%s7457_s4 + $0x138] sm:$0xff]  }
  0x1d   : > { %5577 = vmatpush3.bf16.msra.mxu0 %v6058_v8  ;;  %v835_v0 = vshll.u32 %v771_v51, 16  ;;  %v828_v3 = vrot.slane %v826_v58, 4  ;;  %v831_v4 = vrot.slane %v829_v59, 5  ;;  %v6091_v8 = vld [vmem:[%s6429_s28] ss:$8 sps:$4 sm:$0xff]   ;;  %v868_v37 = vshrl.u32 %v776_v32, 16 }
  0x1e   : > { %5601 = vmatpush3.bf16.msra.mxu1 %v6059_v9  ;;  %5578 = vmatprep.subr.bf16.mxu0 %v6060_v10  ;;  %v791_v2 = vrot.slane %v790_v56, 4  ;;  %v805_v6 = vrot.slane %v804_v61, 4  ;;  %v818_v7 = vor.u32 %v817_v63, %v814_v62  ;;  %v6086_v9 = vld [vmem:[%s7457_s4 + $0x88] sm:$0xff]   ;;  %v778_v41 = vld [vmem:[%s6362_s25 + $0x38] sm:$0xf]  ;;  %v6094_v63 = vld [vmem:[%s7457_s4 + $0x130] sm:$0xff]  }
  0x1f   : > { %5602 = vmatprep.subr.bf16.mxu1 %v6061_v11  ;;  %v832_v12 = vor.u32 %v831_v4, %v828_v3  ;;  %v779_v45 = vld [vmem:[%s6362_s25 + $0x3c] sm:$0x1]  ;;  %v870_v46 = vrot.slane %v868_v37, 4  ;;  %v882_v50 = vshrl.u32 %v778_v41, 16  ;;  %v885_v51 = vshll.u32 %v778_v41, 16 }
  0x20   : > { %v810_v13 = vsel %vm6433_vm2, %v805_v6, %v809_v53  ;;  %v891_v54 = vshll.u32 %v779_v45, 16  ;;  %v6093_v55 = vld [vmem:[%s7457_s4 + $0x178] sm:$0xff]   ;;  %v6097_v6 = vld [vmem:[%s6429_s28 + $0x20] ss:$8 sps:$4 sm:$0xff]  }
  0x21   : > { %5579 = vmatpush3.bf16.msra.mxu0 %v6060_v10  ;;  %v796_v10 = vsel %vm6433_vm2, %v791_v2, %v795_v49  ;;  %v884_v58 = vrot.slane %v882_v50, 4  ;;  %v887_v59 = vrot.slane %v885_v51, 5  ;;  %v6092_v62 = vld [vmem:[%s6429_s28 + $0x10] ss:$8 sps:$4 sm:$0xff]   ;;  %v1396_v41 = vld [vmem:[%s6429_s28 + $0x1c] sm:$0x1] }
  0x22   : > { %5603 = vmatpush3.bf16.msra.mxu1 %v6061_v11  ;;  %5580 = vmatprep.subr.bf16.mxu0 %v6062_v14  ;;  %v6449_v11 = vrot.slane %v821_v57, 5  ;;  %v1457_v50 = vshll.u32 %v1396_v41, 16 }
  0x23   : > { %5604 = vmatprep.subr.bf16.mxu1 %v6063_v15  ;;  %v888_v4 = vor.u32 %v887_v59, %v884_v58  ;;  %v6107_v58 = vld [vmem:[%s7457_s4 + $0x148] sm:$0xff]  }
  0x25   : > { %5581 = vmatpush3.bf16.msra.mxu0 %v6062_v14  ;;  %v819_v14 = vrot.slane %v818_v7, 4  ;;  %v6095_v7 = vld [vmem:[%s7457_s4 + $0x170] sm:$0xff]  }
  0x26   : > { %5605 = vmatpush3.bf16.msra.mxu1 %v6063_v15  ;;  %5582 = vmatprep.subr.bf16.mxu0 %v6064_v16  ;;  %v837_v15 = vrot.slane %v835_v0, 5 }
  0x27   : > { %5606 = vmatprep.subr.bf16.mxu1 %v6065_v17 }
  0x29   : > { %5583 = vmatpush3.bf16.msra.mxu0 %v6064_v16  ;;  %v6087_v16 = vld [vmem:[%s7457_s4 + $0xc8] sm:$0xff]  }
  0x2a   : > { %5607 = vmatpush3.bf16.msra.mxu1 %v6065_v17  ;;  %5616 = vmatprep.subr.bf16.mxu0 %v6070_v19  ;;  %v4834_v17 = vcombine.low %v796_v10, %v810_v13  ;;  %v6096_v10 = vld [vmem:[%s7457_s4 + $0x128] sm:$0xff]  }
  0x2b   : > { %5640 = vmatprep.subr.bf16.mxu1 %v6071_v20  ;;  %v6099_v13 = vld [vmem:[%s7457_s4 + $0x168] sm:$0xff]  }
  0x2c   : > { %5585 = vmatmul.mubr.bf16.vlgmr.msra.gmra.mxu0 %v6068_v18  ;;  %v833_v18 = vrot.slane %v832_v12, 4 }
  0x2d   : > { %5609 = vmatmul.mubr.bf16.vlgmr.msra.gmra.mxu1 %v6069_v21  ;;  %5617 = vmatpush3.bf16.msra.mxu0 %v6070_v19  ;;  %v772_v19 = vld [vmem:[%s6362_s25 + $0x20] sm:$0xf] }
  0x2e   : > { %5641 = vmatpush3.bf16.msra.mxu1 %v6071_v20  ;;  %5618 = vmatprep.subr.bf16.mxu0 %v6072_v22  ;;  %v773_v20 = vld [vmem:[%s6362_s25 + $0x24] sm:$0x1] }
  0x2f   : > { %5642 = vmatprep.subr.bf16.mxu1 %v6073_v23  ;;  %5588 = vmatprep.mubr.bf16.mxu0 %v6079_v24  ;;  %v6088_v21 = vld [vmem:[%s7457_s4 + $0x80] sm:$0xff]   ;;  %v775_v24 = vld [vmem:[%s6362_s25 + $0x2c] sm:$0x1] }
  0x30   : > { %5612 = vmatprep.mubr.bf16.mxu1 %v6080_v25  ;;  %v840_v25 = vshrl.u32 %v772_v19, 16  ;;  %v863_v35 = vshll.u32 %v775_v24, 16  ;;  %v1392_v24 = vld [vmem:[%s6429_s28 + $0xc] sm:$0x1] }
  0x31   : > { %5619 = vmatpush3.bf16.msra.mxu0 %v6072_v22  ;;  %v824_v22 = vsel %vm6433_vm2, %v819_v14, %v6449_v11 }
  0x32   : > { %5643 = vmatpush3.bf16.msra.mxu1 %v6073_v23  ;;  %5620 = vmatprep.subr.bf16.mxu0 %v6074_v26  ;;  %v774_v23 = vld [vmem:[%s6362_s25 + $0x28] sm:$0xf]  ;;  %v842_v33 = vrot.slane %v840_v25, 4  ;;  %v865_v44 = vrot.slane %v863_v35, 5  ;;  %v1394_v35 = vld [vmem:[%s6429_s28 + $0x14] sm:$0x1] }
  0x33   : > { %5644 = vmatprep.subr.bf16.mxu1 %v6075_v27 }
  0x34   : > { %5589 = vmatmul.mubr.bf16.gmra.mxu0 %v6082_v29  ;;  %v849_v29 = vshll.u32 %v773_v20, 16  ;;  %v6103_v20 = vld [vmem:[%s7457_s4 + $0x158] sm:$0xff]  }
  0x35   : > { %5621 = vmatpush3.bf16.msra.mxu0 %v6074_v26  ;;  %5613 = vmatmul.mubr.bf16.gmra.mxu1 %v6083_v31  ;;  %v843_v26 = vshll.u32 %v772_v19, 16  ;;  %v857_v31 = vshll.u32 %v774_v23, 16  ;;  %v6102_v19 = vld [vmem:[%s7457_s4 + $0x118] sm:$0xff]  }
  0x36   : > { %5645 = vmatpush3.bf16.msra.mxu1 %v6075_v27  ;;  %5622 = vmatprep.subr.bf16.mxu0 %v6076_v28  ;;  %v6089_v27 = vld [vmem:[%s7457_s4 + $0xc0] sm:$0xff]   ;;  %v851_v38 = vrot.slane %v849_v29, 5 }
  0x37   : > { %5646 = vmatprep.subr.bf16.mxu1 %v6077_v30  ;;  %5656 = vmatprep.mubr.bf16.mxu1 %v6091_v8  ;;  %v845_v34 = vrot.slane %v843_v26, 5  ;;  %v859_v40 = vrot.slane %v857_v31, 5  ;;  %v1429_v31 = vshll.u32 %v1392_v24, 16 }
  0x38   : > { %5632 = vmatprep.mubr.bf16.mxu0 %v4834_v17  ;;  %v6101_v17 = vld [vmem:[%s7457_s4 + $0x160] sm:$0xff]  }
  0x39   : > { %5623 = vmatpush3.bf16.msra.mxu0 %v6076_v28  ;;  %v838_v28 = vsel %vm6433_vm2, %v833_v18, %v837_v15  ;;  %v846_v43 = vor.u32 %v845_v34, %v842_v33  ;;  %v6098_v15 = vld [vmem:[%s6429_s28 + $0x30] ss:$8 sps:$4 sm:$0xff]   ;;  %v6110_v18 = vld [vmem:[%s6508_s26] ss:$8 sps:$4 sm:$0xff]  }
  0x3a   : > { %5647 = vmatpush3.bf16.msra.mxu1 %v6077_v30  ;;  %5624 = vmatprep.subr.bf16.mxu0 %v6078_v36  ;;  %v854_v30 = vshrl.u32 %v774_v23, 16  ;;  %v4835_v61 = vcombine.low %v824_v22, %v838_v28  ;;  %v1390_v22 = vld [vmem:[%s6429_s28 + $0x4] sm:$0x1]  ;;  %v1391_v23 = vld [vmem:[%s6429_s28 + $0x8] sm:$0xf] }
  0x3b   : > { %5648 = vmatprep.subr.bf16.mxu1 %v6081_v42  ;;  %v847_v53 = vrot.slane %v846_v43, 4  ;;  %v1415_v28 = vshll.u32 %v1390_v22, 16  ;;  %v1420_v29 = vshrl.u32 %v1391_v23, 16  ;;  %v6111_v22 = vld [vmem:[%s6508_s26 + $0x10] ss:$8 sps:$4 sm:$0xff]  }
  0x3c   : > { %v856_v39 = vrot.slane %v854_v30, 4  ;;  %v1423_v30 = vshll.u32 %v1391_v23, 16 }
  0x3d   : > { %5625 = vmatpush3.bf16.msra.mxu0 %v6078_v36  ;;  %v777_v36 = vld [vmem:[%s6362_s25 + $0x34] sm:$0x1]  ;;  %v852_v0 = vsel %vm6433_vm2, %v847_v53, %v851_v38  ;;  %v1417_v37 = vrot.slane %v1415_v28, 5  ;;  %v1422_v38 = vrot.slane %v1420_v29, 4 }
  0x3e   : > { %5649 = vmatpush3.bf16.msra.mxu1 %v6081_v42  ;;  %5626 = vmatprep.subr.bf16.mxu0 %v6084_v1  ;;  %v871_v42 = vshll.u32 %v776_v32, 16  ;;  %v877_v47 = vshll.u32 %v777_v36, 16  ;;  %v860_v48 = vor.u32 %v859_v40, %v856_v39  ;;  %v1393_v32 = vld [vmem:[%s6429_s28 + $0x10] sm:$0xf]  ;;  %v1395_v36 = vld [vmem:[%s6429_s28 + $0x18] sm:$0xf] }
  0x3f   : > { %5650 = vmatprep.subr.bf16.mxu1 %v6085_v5  ;;  %v1425_v39 = vrot.slane %v1423_v30, 5  ;;  %v1431_v40 = vrot.slane %v1429_v31, 5  ;;  %v1437_v45 = vshll.u32 %v1393_v32, 16  ;;  %v1403_v31 = vld [vmem:[%s6429_s28 + $0x38] sm:$0xf] }
  0x40   : > { %v873_v49 = vrot.slane %v871_v42, 5  ;;  %v861_v56 = vrot.slane %v860_v48, 4  ;;  %v6105_v42 = vld [vmem:[%s7457_s4 + $0x150] sm:$0xff]   ;;  %v1448_v48 = vshrl.u32 %v1395_v36, 16  ;;  %v1504_v41 = vshrl.u32 %v1403_v31, 16 }
  0x41   : > { %5627 = vmatpush3.bf16.msra.mxu0 %v6084_v1  ;;  %v879_v1 = vrot.slane %v877_v47, 5  ;;  %v1426_v47 = vor.u32 %v1425_v39, %v1422_v38  ;;  %v1439_v53 = vrot.slane %v1437_v45, 5  ;;  %v6116_v38 = vld [vmem:[%s6508_s26 + $0x20] ss:$8 sps:$4 sm:$0xff]  }
  0x42   : > { %5651 = vmatpush3.bf16.msra.mxu1 %v6085_v5  ;;  %5628 = vmatprep.subr.bf16.mxu0 %v6086_v9  ;;  %v874_v57 = vor.u32 %v873_v49, %v870_v46  ;;  %v866_v2 = vsel %vm6433_vm2, %v861_v56, %v865_v44  ;;  %v893_v5 = vrot.slane %v891_v54, 5  ;;  %v1434_v44 = vshrl.u32 %v1393_v32, 16  ;;  %v6106_v54 = vld [vmem:[%s7457_s4 + $0x108] sm:$0xff]  }
  0x43   : > { %5652 = vmatprep.subr.bf16.mxu1 %v6087_v16  ;;  %v4836_v8 = vcombine.low %v852_v0, %v866_v2  ;;  %v1443_v46 = vshll.u32 %v1394_v35, 16  ;;  %v1451_v49 = vshll.u32 %v1395_v36, 16  ;;  %v1450_v56 = vrot.slane %v1448_v48, 4  ;;  %v1404_v35 = vld [vmem:[%s6429_s28 + $0x3c] sm:$0x1] }
  0x44   : > { %v875_v3 = vrot.slane %v874_v57, 4 }
  0x45   : > { %5629 = vmatpush3.bf16.msra.mxu0 %v6086_v9  ;;  %v889_v9 = vrot.slane %v888_v4, 4  ;;  %v1453_v57 = vrot.slane %v1451_v49, 5  ;;  %v6108_v4 = vld [vmem:[%s7457_s4 + $0x100] sm:$0xff]  }
  0x46   : > { %5653 = vmatpush3.bf16.msra.mxu1 %v6087_v16  ;;  %5630 = vmatprep.subr.bf16.mxu0 %v6088_v21  ;;  %v880_v11 = vsel %vm6433_vm2, %v875_v3, %v879_v1  ;;  %v6100_v16 = vld [vmem:[%s7457_s4 + $0x120] sm:$0xff]   ;;  %v1459_v1 = vrot.slane %v1457_v50, 5  ;;  %v1506_v50 = vrot.slane %v1504_v41, 4 }
  0x47   : > { %5654 = vmatprep.subr.bf16.mxu1 %v6089_v27  ;;  %v894_v12 = vsel %vm6433_vm2, %v889_v9, %v893_v5  ;;  %v1454_v0 = vor.u32 %v1453_v57, %v1450_v56  ;;  %v6109_v5 = vld [vmem:[%s7457_s4 + $0x140] sm:$0xff]  }
  0x48   : > { %v4837_v14 = vcombine.low %v880_v11, %v894_v12  ;;  %v1398_v9 = vld [vmem:[%s6429_s28 + $0x24] sm:$0x1]  ;;  %v1399_v12 = vld [vmem:[%s6429_s28 + $0x28] sm:$0xf] }
  0x49   : > { %5631 = vmatpush3.bf16.msra.mxu0 %v6088_v21  ;;  %v1389_v21 = vld [vmem:[%s6429_s28] sm:$0xf] }
  0x4a   : > { %5655 = vmatpush3.bf16.msra.mxu1 %v6089_v27  ;;  %5664 = vmatprep.subr.bf16.mxu0 %v6090_v52  ;;  %v1406_v25 = vshrl.u32 %v1389_v21, 16  ;;  %v1409_v26 = vshll.u32 %v1389_v21, 16  ;;  %v6104_v27 = vld [vmem:[%s7457_s4 + $0x110] sm:$0xff]  }
  0x4b   : > { %5688 = vmatprep.subr.bf16.mxu1 %v6093_v55  ;;  %v1401_v21 = vld [vmem:[%s6429_s28 + $0x30] sm:$0xf] }
  0x4c   : > { %5633 = vmatmul.mubr.bf16.vlgmr.msra.gmra.mxu0 %v4835_v61  ;;  %v1408_v33 = vrot.slane %v1406_v25, 4  ;;  %v1411_v34 = vrot.slane %v1409_v26, 5  ;;  %v1402_v26 = vld [vmem:[%s6429_s28 + $0x34] sm:$0x1]  ;;  %v1493_v32 = vshll.u32 %v1401_v21, 16 }
  0x4d   : > { %5665 = vmatpush3.bf16.msra.mxu0 %v6090_v52  ;;  %5657 = vmatmul.mubr.bf16.vlgmr.msra.gmra.mxu1 %v6092_v62  ;;  %v1436_v52 = vrot.slane %v1434_v44, 4  ;;  %v1445_v62 = vrot.slane %v1443_v46, 5  ;;  %v1513_v46 = vshll.u32 %v1404_v35, 16 }
  0x4e   : > { %5689 = vmatpush3.bf16.msra.mxu1 %v6093_v55  ;;  %5666 = vmatprep.subr.bf16.mxu0 %v6094_v63  ;;  %v1412_v43 = vor.u32 %v1411_v34, %v1408_v33  ;;  %v1427_v55 = vrot.slane %v1426_v47, 4  ;;  %v6115_v47 = vld [vmem:[%s7457_s4 + $0x1f0] sm:$0xff]  }
  0x4f   : > { %5690 = vmatprep.subr.bf16.mxu1 %v6095_v7  ;;  %5636 = vmatprep.mubr.bf16.mxu0 %v4836_v8  ;;  %v1440_v61 = vor.u32 %v1439_v53, %v1436_v52  ;;  %v1397_v8 = vld [vmem:[%s6429_s28 + $0x20] sm:$0xf]  ;;  %v6118_v52 = vld [vmem:[%s7457_s4 + $0x1a8] sm:$0xff]   ;;  %v1515_v57 = vrot.slane %v1513_v46, 5 }
  0x50   : > { %5660 = vmatprep.mubr.bf16.mxu1 %v6097_v6  ;;  %v1413_v51 = vrot.slane %v1412_v43, 4  ;;  %v1455_v6 = vrot.slane %v1454_v0, 4  ;;  %v6114_v43 = vld [vmem:[%s7457_s4 + $0x1b0] sm:$0xff]  }
  0x51   : > { %5667 = vmatpush3.bf16.msra.mxu0 %v6094_v63  ;;  %v1432_v63 = vsel %vm6433_vm2, %v1427_v55, %v1431_v40  ;;  %v1441_v3 = vrot.slane %v1440_v61, 4  ;;  %v1495_v40 = vrot.slane %v1493_v32, 5  ;;  %v5008_v32 = vld [vmem:[%s6362_s25 + $0x20] sm:$0xf] }
  0x52   : > { %5691 = vmatpush3.bf16.msra.mxu1 %v6095_v7  ;;  %5668 = vmatprep.subr.bf16.mxu0 %v6096_v10  ;;  %v1418_v59 = vsel %vm6433_vm2, %v1413_v51, %v1417_v37  ;;  %v1460_v11 = vsel %vm6433_vm2, %v1455_v6, %v1459_v1  ;;  %v1499_v37 = vshll.u32 %v1402_v26, 16  ;;  %v6123_v6 = vld [vmem:[%s7457_s4 + $0x1d8] sm:$0xff]   ;;  %v2072_v41 = vshrl.u32 %v5008_v32, 16 }
  0x53   : > { %5692 = vmatprep.subr.bf16.mxu1 %v6099_v13  ;;  %v4918_v2 = vcombine.low %v1418_v59, %v1432_v63  ;;  %v1446_v7 = vsel %vm6433_vm2, %v1441_v3, %v1445_v62  ;;  %v6119_v63 = vld [vmem:[%s7457_s4 + $0x1e8] sm:$0xff]   ;;  %v6121_v3 = vld [vmem:[%s7457_s4 + $0x1e0] sm:$0xff]   ;;  %v5007_v26 = vld [vmem:[%s6362_s25 + $0x1c] sm:$0x1] }
  0x54   : > { %5637 = vmatmul.mubr.bf16.gmra.mxu0 %v4837_v14  ;;  %v1462_v14 = vshrl.u32 %v1397_v8, 16  ;;  %v1501_v45 = vrot.slane %v1499_v37, 5 }
  0x55   : > { %5669 = vmatpush3.bf16.msra.mxu0 %v6096_v10  ;;  %5661 = vmatmul.mubr.bf16.gmra.mxu1 %v6098_v15  ;;  %v6112_v10 = vld [vmem:[%s7457_s4 + $0x1b8] sm:$0xff]   ;;  %v1465_v15 = vshll.u32 %v1397_v8, 16  ;;  %v6124_v8 = vld [vmem:[%s7457_s4 + $0x190] sm:$0xff]  }
  0x56   : > { %5693 = vmatpush3.bf16.msra.mxu1 %v6099_v13  ;;  %5670 = vmatprep.subr.bf16.mxu0 %v6100_v16  ;;  %v1400_v13 = vld [vmem:[%s6429_s28 + $0x2c] sm:$0x1]  ;;  %v1464_v23 = vrot.slane %v1462_v14, 4  ;;  %v5002_v14 = vld [vmem:[%s6362_s25 + $0x8] sm:$0xf] }
  0x57   : > { %5694 = vmatprep.subr.bf16.mxu1 %v6101_v17  ;;  %5680 = vmatprep.mubr.bf16.mxu0 %v6110_v18  ;;  %v1471_v18 = vshll.u32 %v1398_v9, 16  ;;  %v1467_v24 = vrot.slane %v1465_v15, 5  ;;  %v1485_v25 = vshll.u32 %v1400_v13, 16  ;;  %v6125_v9 = vld [vmem:[%s7457_s4 + $0x1d0] sm:$0xff]   ;;  %v6129_v13 = vld [vmem:[%s7457_s4 + $0x1c0] sm:$0xff]  }
  0x58   : > { %5704 = vmatprep.mubr.bf16.mxu1 %v4918_v2  ;;  %v6120_v2 = vld [vmem:[%s7457_s4 + $0x1a0] sm:$0xff]   ;;  %v5003_v15 = vld [vmem:[%s6362_s25 + $0xc] sm:$0x1] }
  0x59   : > { %5671 = vmatpush3.bf16.msra.mxu0 %v6100_v16  ;;  %v4919_v16 = vcombine.low %v1446_v7, %v1460_v11  ;;  %v1473_v28 = vrot.slane %v1471_v18, 5  ;;  %v1468_v33 = vor.u32 %v1467_v24, %v1464_v23  ;;  %v1487_v34 = vrot.slane %v1485_v25, 5  ;;  %v6133_v7 = vld [vmem:[%s6353_s20 + $0x8] ss:$8 sps:$4 sm:$0xff]   ;;  %v6132_v23 = vld [vmem:[%s7457_s4 + $0x238] sm:$0xff]  }
  0x5a   : > { %5695 = vmatpush3.bf16.msra.mxu1 %v6101_v17  ;;  %5672 = vmatprep.subr.bf16.mxu0 %v6102_v19  ;;  %v6113_v17 = vld [vmem:[%s7457_s4 + $0x1f8] sm:$0xff]   ;;  %v6127_v11 = vld [vmem:[%s7457_s4 + $0x1c8] sm:$0xff]   ;;  %v2030_v18 = vshrl.u32 %v5002_v14, 16 }
  0x5b   : > { %5696 = vmatprep.subr.bf16.mxu1 %v6103_v20  ;;  %v1469_v44 = vrot.slane %v1468_v33, 4  ;;  %v5006_v25 = vld [vmem:[%s6362_s25 + $0x18] sm:$0xf]  ;;  %v6136_v33 = vld [vmem:[%s6362_s25 + $0x28] ss:$8 sps:$4 sm:$0xff]  }
  0x5c   : > { %v2058_v37 = vshrl.u32 %v5006_v25, 16 }
  0x5d   : > { %5673 = vmatpush3.bf16.msra.mxu0 %v6102_v19  ;;  %v1476_v19 = vshrl.u32 %v1399_v12, 16  ;;  %v1474_v53 = vsel %vm6433_vm2, %v1469_v44, %v1473_v28  ;;  %v2032_v28 = vrot.slane %v2030_v18, 4  ;;  %v6135_v44 = vld [vmem:[%s7457_s4 + $0x230] sm:$0xff]  }
  0x5e   : > { %5697 = vmatpush3.bf16.msra.mxu1 %v6103_v20  ;;  %5674 = vmatprep.subr.bf16.mxu0 %v6104_v27  ;;  %v1479_v20 = vshll.u32 %v1399_v12, 16  ;;  %v6128_v12 = vld [vmem:[%s7457_s4 + $0x180] sm:$0xff]  }
  0x5f   : > { %5698 = vmatprep.subr.bf16.mxu1 %v6105_v42  ;;  %v1478_v29 = vrot.slane %v1476_v19, 4  ;;  %v2033_v19 = vshll.u32 %v5002_v14, 16 }
  0x60   : > { %v1481_v30 = vrot.slane %v1479_v20, 5  ;;  %v2039_v20 = vshll.u32 %v5003_v15, 16 }
  0x61   : > { %5675 = vmatpush3.bf16.msra.mxu0 %v6104_v27  ;;  %v1490_v27 = vshrl.u32 %v1401_v21, 16 }
  0x62   : > { %5699 = vmatpush3.bf16.msra.mxu1 %v6105_v42  ;;  %5676 = vmatprep.subr.bf16.mxu0 %v6106_v54  ;;  %v1482_v39 = vor.u32 %v1481_v30, %v1478_v29  ;;  %v1507_v42 = vshll.u32 %v1403_v31, 16  ;;  %v2035_v29 = vrot.slane %v2033_v19, 5 }
  0x63   : > { %5700 = vmatprep.subr.bf16.mxu1 %v6107_v58  ;;  %v1492_v36 = vrot.slane %v1490_v27, 4  ;;  %v6134_v27 = vld [vmem:[%s6353_s20 + $0x18] ss:$8 sps:$4 sm:$0xff]  }
  0x64   : > { %v1483_v48 = vrot.slane %v1482_v39, 4  ;;  %v1509_v51 = vrot.slane %v1507_v42, 5  ;;  %v2036_v39 = vor.u32 %v2035_v29, %v2032_v28  ;;  %v2075_v42 = vshll.u32 %v5008_v32, 16 }
  0x65   : > { %5677 = vmatpush3.bf16.msra.mxu0 %v6106_v54  ;;  %v1496_v49 = vor.u32 %v1495_v40, %v1492_v36  ;;  %v5009_v36 = vld [vmem:[%s6362_s25 + $0x24] sm:$0x1]  ;;  %v2067_v40 = vshll.u32 %v5007_v26, 16 }
  0x66   : > { %5701 = vmatpush3.bf16.msra.mxu1 %v6107_v58  ;;  %5678 = vmatprep.subr.bf16.mxu0 %v6108_v4  ;;  %v1488_v54 = vsel %vm6433_vm2, %v1483_v48, %v1487_v34  ;;  %v1510_v56 = vor.u32 %v1509_v51, %v1506_v50  ;;  %v6117_v58 = vld [vmem:[%s6508_s26 + $0x30] ss:$8 sps:$4 sm:$0xff]   ;;  %v2041_v34 = vrot.slane %v2039_v20, 5  ;;  %v2037_v50 = vrot.slane %v2036_v39, 4  ;;  %v6141_v20 = vld [vmem:[%s7457_s4 + $0x220] sm:$0xff]  }
  0x67   : > { %5702 = vmatprep.subr.bf16.mxu1 %v6109_v5  ;;  %v1497_v55 = vrot.slane %v1496_v49, 4  ;;  %v4920_v59 = vcombine.low %v1474_v53, %v1488_v54  ;;  %v2081_v49 = vshll.u32 %v5009_v36, 16  ;;  %v2077_v53 = vrot.slane %v2075_v42, 5  ;;  %v5012_v54 = vld [vmem:[%s6362_s25 + $0x30] sm:$0xf] }
  0x68   : > { %v1511_v62 = vrot.slane %v1510_v56, 4  ;;  %v6143_v42 = vld [vmem:[%s7457_s4 + $0x210] sm:$0xff]  }
  0x69   : > { %5679 = vmatpush3.bf16.msra.mxu0 %v6108_v4  ;;  %v1502_v61 = vsel %vm6433_vm2, %v1497_v55, %v1501_v45  ;;  %v6130_v4 = vld [vmem:[%s6362_s25 + $0x8] ss:$8 sps:$4 sm:$0xff]  }
  0x6a   : > { %5703 = vmatpush3.bf16.msra.mxu1 %v6109_v5  ;;  %5712 = vmatprep.subr.bf16.mxu0 %v6112_v10  ;;  %v1516_v0 = vsel %vm6433_vm2, %v1511_v62, %v1515_v57  ;;  %v6122_v5 = vld [vmem:[%s7457_s4 + $0x198] sm:$0xff]   ;;  %v6139_v45 = vld [vmem:[%s6353_s20 + $0x28] ss:$8 sps:$4 sm:$0xff]   ;;  %v5011_v57 = vld [vmem:[%s6362_s25 + $0x2c] sm:$0x1]  ;;  %v6652_v62 = vrot.slane %v2081_v49, 5 }
  0x6b   : > { %5736 = vmatprep.subr.bf16.mxu1 %v6113_v17  ;;  %v4921_v1 = vcombine.low %v1502_v61, %v1516_v0  ;;  %v6650_v61 = vrot.slane %v2067_v40, 5 }
  0x6c   : > { %5681 = vmatmul.mubr.bf16.vlgmr.msra.gmra.mxu0 %v6111_v22  ;;  %v6131_v22 = vld [vmem:[%s6362_s25 + $0x18] ss:$8 sps:$4 sm:$0xff]  }
  0x6d   : > { %5713 = vmatpush3.bf16.msra.mxu0 %v6112_v10  ;;  %5705 = vmatmul.mubr.bf16.vlgmr.msra.gmra.mxu1 %v4919_v16  ;;  %v6126_v10 = vld [vmem:[%s7457_s4 + $0x188] sm:$0xff]   ;;  %v5004_v16 = vld [vmem:[%s6362_s25 + $0x10] sm:$0xf] }
  0x6e   : > { %5737 = vmatpush3.bf16.msra.mxu1 %v6113_v17  ;;  %5714 = vmatprep.subr.bf16.mxu0 %v6114_v43  ;;  %v5005_v17 = vld [vmem:[%s6362_s25 + $0x14] sm:$0x1]  ;;  %v2044_v21 = vshrl.u32 %v5004_v16, 16  ;;  %v2047_v24 = vshll.u32 %v5004_v16, 16  ;;  %v2103_v16 = vshll.u32 %v5012_v54, 16 }
  0x6f   : > { %5738 = vmatprep.subr.bf16.mxu1 %v6115_v47  ;;  %5684 = vmatprep.mubr.bf16.mxu0 %v6116_v38  ;;  %v2053_v31 = vshll.u32 %v5005_v17, 16  ;;  %v2061_v38 = vshll.u32 %v5006_v25, 16 }
  0x70   : > { %5708 = vmatprep.mubr.bf16.mxu1 %v4920_v59  ;;  %v2046_v30 = vrot.slane %v2044_v21, 4  ;;  %v2049_v35 = vrot.slane %v2047_v24, 5  ;;  %v6138_v59 = vld [vmem:[%s7457_s4 + $0x228] sm:$0xff]  }
  0x71   : > { %5715 = vmatpush3.bf16.msra.mxu0 %v6114_v43  ;;  %v5010_v43 = vld [vmem:[%s6362_s25 + $0x28] sm:$0xf]  ;;  %v2063_v48 = vrot.slane %v2061_v38, 5  ;;  %v2055_v51 = vrot.slane %v2053_v31, 5 }
  0x72   : > { %5739 = vmatpush3.bf16.msra.mxu1 %v6115_v47  ;;  %5716 = vmatprep.subr.bf16.mxu0 %v6118_v52  ;;  %v2050_v46 = vor.u32 %v2049_v35, %v2046_v30  ;;  %v2060_v47 = vrot.slane %v2058_v37, 4  ;;  %v2089_v0 = vshll.u32 %v5010_v43, 16  ;;  %v6142_v35 = vld [vmem:[%s7457_s4 + $0x218] sm:$0xff]  }
  0x73   : > { %5740 = vmatprep.subr.bf16.mxu1 %v6119_v63 }
  0x74   : > { %5685 = vmatmul.mubr.bf16.gmra.mxu0 %v6117_v58  ;;  %v2051_v55 = vrot.slane %v2050_v46, 4  ;;  %v2064_v56 = vor.u32 %v2063_v48, %v2060_v47  ;;  %v2086_v58 = vshrl.u32 %v5010_v43, 16  ;;  %v6144_v46 = vld [vmem:[%s7457_s4 + $0x208] sm:$0xff]   ;;  %v6145_v47 = vld [vmem:[%s7457_s4 + $0x200] sm:$0xff]  }
  0x75   : > { %5717 = vmatpush3.bf16.msra.mxu0 %v6118_v52  ;;  %5709 = vmatmul.mubr.bf16.gmra.mxu1 %v4921_v1  ;;  %v2074_v52 = vrot.slane %v2072_v41, 4  ;;  %v6137_v1 = vld [vmem:[%s6362_s25 + $0x38] ss:$8 sps:$4 sm:$0xff]  }
  0x76   : > { %5741 = vmatpush3.bf16.msra.mxu1 %v6119_v63  ;;  %5718 = vmatprep.subr.bf16.mxu0 %v6120_v2  ;;  %v5013_v63 = vld [vmem:[%s6362_s25 + $0x34] sm:$0x1]  ;;  %v2065_v14 = vrot.slane %v2064_v56, 4 }
  0x77   : > { %5742 = vmatprep.subr.bf16.mxu1 %v6121_v3  ;;  %5728 = vmatprep.mubr.bf16.mxu0 %v6130_v4  ;;  %v2100_v4 = vshrl.u32 %v5012_v54, 16  ;;  %v2109_v17 = vshll.u32 %v5013_v63, 16  ;;  %v6151_v63 = vld [vmem:[%s7462_s9 + $0x10] sm:$0xff]  }
  0x78   : > { %5752 = vmatprep.mubr.bf16.mxu1 %v6133_v7  ;;  %v6140_v7 = vld [vmem:[%s6353_s20 + $0x38] ss:$8 sps:$4 sm:$0xff]   ;;  %v2070_v48 = vsel %vm6433_vm2, %v2065_v14, %v6650_v61  ;;  %s7411_s20 = scalar_lea.vmem %s7463_s10, %s5331_s22 }
  0x79   : > { %5719 = vmatpush3.bf16.msra.mxu0 %v6120_v2  ;;  %v2042_v2 = vsel %vm6433_vm2, %v2037_v50, %v2041_v34  ;;  %v2102_v15 = vrot.slane %v2100_v4, 4  ;;  %v6149_v61 = vld [vmem:[%s7462_s9 + $0x20] sm:$0xff]   ;;  %v6156_v4 = vld [vmem:[%s7460_s7 + $0xb8] sm:$0xff]  }
  0x7a   : > { %5743 = vmatpush3.bf16.msra.mxu1 %v6121_v3  ;;  %5720 = vmatprep.subr.bf16.mxu0 %v6122_v5  ;;  %v2088_v3 = vrot.slane %v2086_v58, 4  ;;  %v6147_v58 = vld [vmem:[%s7462_s9 + $0x30] sm:$0xff]  }
  0x7b   : > { %5744 = vmatprep.subr.bf16.mxu1 %v6123_v6 }
  0x7d   : > { %5721 = vmatpush3.bf16.msra.mxu0 %v6122_v5  ;;  %v5014_v5 = vld [vmem:[%s6362_s25 + $0x38] sm:$0xf] }
  0x7e   : > { %5745 = vmatpush3.bf16.msra.mxu1 %v6123_v6  ;;  %5722 = vmatprep.subr.bf16.mxu0 %v6124_v8  ;;  %v5015_v6 = vld [vmem:[%s6362_s25 + $0x3c] sm:$0x1]  ;;  %v2114_v18 = vshrl.u32 %v5014_v5, 16  ;;  %v2117_v19 = vshll.u32 %v5014_v5, 16  ;;  %v6157_v5 = vld [vmem:[%s7460_s7 + $0x30] sm:$0xff]  }
  0x7f   : > { %5746 = vmatprep.subr.bf16.mxu1 %v6125_v9  ;;  %v2123_v24 = vshll.u32 %v5015_v6, 16  ;;  %v6158_v6 = vld [vmem:[%s6725_s17 + $0x8] sm:$0xff]  }
  0x80   : > { %v2116_v26 = vrot.slane %v2114_v18, 4 }
  0x81   : > { %5723 = vmatpush3.bf16.msra.mxu0 %v6124_v8  ;;  %v2056_v8 = vsel %vm6433_vm2, %v2051_v55, %v2055_v51  ;;  %v2125_v38 = vrot.slane %v2123_v24, 5 }
  0x82   : > { %5747 = vmatpush3.bf16.msra.mxu1 %v6125_v9  ;;  %5724 = vmatprep.subr.bf16.mxu0 %v6126_v10  ;;  %v2078_v9 = vor.u32 %v2077_v53, %v2074_v52  ;;  %v5034_v21 = vcombine.low %v2042_v2, %v2056_v8  ;;  %v6154_v2 = vld [vmem:[%s7460_s7 + $0x38] sm:$0xff]   ;;  %v6159_v8 = vld [vmem:[%s7460_s7 + $0xb0] sm:$0xff]  }
  0x83   : > { %5748 = vmatprep.subr.bf16.mxu1 %v6127_v11 }
  0x84   : > { %v2079_v25 = vrot.slane %v2078_v9, 4  ;;  %v6160_v9 = vld [vmem:[%s7460_s7 + $0x28] sm:$0xff]  }
  0x85   : > { %5725 = vmatpush3.bf16.msra.mxu0 %v6126_v10  ;;  %v2091_v10 = vrot.slane %v2089_v0, 5  ;;  %v6152_v0 = vld [vmem:[%s7462_s9 + $0x8] sm:$0xff]  }
  0x86   : > { %5749 = vmatpush3.bf16.msra.mxu1 %v6127_v11  ;;  %5726 = vmatprep.subr.bf16.mxu0 %v6128_v12  ;;  %v2095_v11 = vshll.u32 %v5011_v57, 16  ;;  %v2084_v49 = vsel %vm6433_vm2, %v2079_v25, %v6652_v62  ;;  %v6146_v57 = vld [vmem:[%s7462_s9 + $0x38] sm:$0xff]   ;;  %v6167_v25 = vld [vmem:[%s7460_s7 + $0x90] sm:$0xff]  }
  0x87   : > { %5750 = vmatprep.subr.bf16.mxu1 %v6129_v13  ;;  %v5035_v52 = vcombine.low %v2070_v48, %v2084_v49  ;;  %v6150_v62 = vld [vmem:[%s7462_s9 + $0x18] sm:$0xff]  }
  0x88   : > { %v2097_v29 = vrot.slane %v2095_v11, 5 }
  0x89   : > { %5727 = vmatpush3.bf16.msra.mxu0 %v6128_v12  ;;  %v5016_v12 = vld [vmem:[%s6362_s25 + $0x40] sm:$0xf] }
  0x8a   : > { %5751 = vmatpush3.bf16.msra.mxu1 %v6129_v13  ;;  %5760 = vmatprep.subr.bf16.mxu0 %v6132_v23  ;;  %v5017_v13 = vld [vmem:[%s6362_s25 + $0x44] sm:$0x1]  ;;  %v2128_v28 = vshrl.u32 %v5016_v12, 16  ;;  %v2131_v31 = vshll.u32 %v5016_v12, 16  ;;  %v6161_v12 = vld [vmem:[%s7460_s7 + $0xa8] sm:$0xff]  }
  0x8b   : > { %v2137_v32 = vshll.u32 %v5017_v13, 16  ;;  %5784 = vmatprep.subr.bf16.mxu1 %v6154_v2  ;;  %v6162_v13 = vld [vmem:[%s7460_s7 + $0x20] sm:$0xff]  }
  0x8c   : > { %5729 = vmatmul.mubr.bf16.vlgmr.msra.gmra.mxu0 %v6131_v22  ;;  %v2092_v22 = vor.u32 %v2091_v10, %v2088_v3  ;;  %v2130_v34 = vrot.slane %v2128_v28, 4  ;;  %v2133_v39 = vrot.slane %v2131_v31, 5  ;;  %v6155_v3 = vld [vmem:[%s6725_s17] sm:$0xff]  }
  0x8d   : > { %5761 = vmatpush3.bf16.msra.mxu0 %v6132_v23  ;;  %5753 = vmatmul.mubr.bf16.vlgmr.msra.gmra.mxu1 %v6134_v27  ;;  %v2105_v23 = vrot.slane %v2103_v16, 5  ;;  %v2119_v27 = vrot.slane %v2117_v19, 5  ;;  %v2139_v41 = vrot.slane %v2137_v32, 5  ;;  %v6163_v16 = vld [vmem:[%s7460_s7 + $0xa0] sm:$0xff]  }
  0x8e   : > { %5762 = vmatprep.subr.bf16.mxu0 %v6135_v44  ;;  %5732 = vmatprep.mubr.bf16.mxu0 %v6136_v33  ;;  %v2111_v33 = vrot.slane %v2109_v17, 5  ;;  %v2093_v36 = vrot.slane %v2092_v22, 4  ;;  %v2134_v43 = vor.u32 %v2133_v39, %v2130_v34  ;;  %v6164_v17 = vld [vmem:[%s7460_s7 + $0x18] sm:$0xff]   ;;  %v6166_v22 = vld [vmem:[%s7460_s7 + $0x10] sm:$0xff]   ;;  %v6171_v32 = vld [vmem:[%s7460_s7] sm:$0xff]  }
  0x8f   : > { %5756 = vmatprep.mubr.bf16.mxu1 %v6139_v45  ;;  %v2106_v30 = vor.u32 %v2105_v23, %v2102_v15  ;;  %v2120_v37 = vor.u32 %v2119_v27, %v2116_v26  ;;  %5785 = vmatpush3.bf16.msra.mxu1 %v6154_v2  ;;  %v6168_v26 = vld [vmem:[%s7460_s7 + $0x8] sm:$0xff]   ;;  %v6813_v39 = vld [vmem:[%s7460_s7 + $0x138] sm:$0xff]  }
  0x90   : > { %v2135_v45 = vrot.slane %v2134_v43, 4  ;;  %v2098_v50 = vsel %vm6433_vm2, %v2093_v36, %v2097_v29  ;;  %5786 = vmatprep.subr.bf16.mxu1 %v6157_v5  ;;  %v6169_v29 = vld [vmem:[%s6725_s17 + $0x10] sm:$0xff]   ;;  %v6805_v36 = vld [vmem:[%s7460_s7 + $0x78] sm:$0xff]   ;;  %7472 = vst [vmem:[#allocation5_spill] sm:$0xff] %v6813_v39 }
  0x91   : > { %5763 = vmatpush3.bf16.msra.mxu0 %v6135_v44  ;;  %v2107_v40 = vrot.slane %v2106_v30, 4  ;;  %v2121_v44 = vrot.slane %v2120_v37, 4  ;;  %v6170_v30 = vld [vmem:[%s7460_s7 + $0x88] sm:$0xff]   ;;  %7471 = vst [vmem:[#allocation4_spill] sm:$0xff] %v6805_v36 }
  0x92   : > { %5764 = vmatprep.subr.bf16.mxu0 %v6138_v59  ;;  %v2140_v55 = vsel %vm6433_vm2, %v2135_v45, %v2139_v41 }
  0x93   : > { %v2112_v51 = vsel %vm6433_vm2, %v2107_v40, %v2111_v33  ;;  %v2126_v54 = vsel %vm6433_vm2, %v2121_v44, %v2125_v38  ;;  %5787 = vmatpush3.bf16.msra.mxu1 %v6157_v5  ;;  %v6172_v33 = vld [vmem:[%s6725_s17 + $0x18] sm:$0xff]  }
  0x94   : > { %5733 = vmatmul.mubr.bf16.gmra.mxu0 %v6137_v1  ;;  %v5036_v53 = vcombine.low %v2098_v50, %v2112_v51  ;;  %v5037_v56 = vcombine.low %v2126_v54, %v2140_v55  ;;  %v6153_v1 = vld [vmem:[%s7462_s9] sm:$0xff]   ;;  %5788 = vmatprep.subr.bf16.mxu1 %v6160_v9 }
  0x95   : > { %5765 = vmatpush3.bf16.msra.mxu0 %v6138_v59  ;;  %5757 = vmatmul.mubr.bf16.gmra.mxu1 %v6140_v7  ;;  %v6148_v59 = vld [vmem:[%s7462_s9 + $0x28] sm:$0xff]   ;;  %v6250_v7 = vmov 0  }
  0x96   : > { %5766 = vmatprep.subr.bf16.mxu0 %v6141_v20  ;;  %5776 = vmatprep.mubr.bf16.mxu0 %v5034_v21  ;;  %2343 = vst [vmem:[#allocation2 + $0x18] sm:$0xf] %v6250_v7  ;;  %2344 = vst [vmem:[#allocation2 + $0x1c] sm:$0x1] %v6250_v7  ;;  %v6165_v21 = vld [vmem:[%s7460_s7 + $0x98] sm:$0xff]  }
  0x97   : > { %2337 = vst [vmem:[#allocation2] sm:$0xf] %v6250_v7  ;;  %2338 = vst [vmem:[#allocation2 + $0x4] sm:$0x1] %v6250_v7  ;;  %5789 = vmatpush3.bf16.msra.mxu1 %v6160_v9 }
  0x98   : > { %2339 = vst [vmem:[#allocation2 + $0x8] sm:$0xf] %v6250_v7  ;;  %2340 = vst [vmem:[#allocation2 + $0xc] sm:$0x1] %v6250_v7  ;;  %5790 = vmatprep.subr.bf16.mxu1 %v6162_v13 }
  0x99   : > { %5767 = vmatpush3.bf16.msra.mxu0 %v6141_v20  ;;  %2341 = vst [vmem:[#allocation2 + $0x10] sm:$0xf] %v6250_v7  ;;  %2342 = vst [vmem:[#allocation2 + $0x14] sm:$0x1] %v6250_v7 }
  0x9a   : > { %5768 = vmatprep.subr.bf16.mxu0 %v6142_v35  ;;  %2345 = vst [vmem:[#allocation2 + $0x20] sm:$0xf] %v6250_v7  ;;  %2346 = vst [vmem:[#allocation2 + $0x24] sm:$0x1] %v6250_v7 }
  0x9b   : > { %2347 = vst [vmem:[#allocation2 + $0x28] sm:$0xf] %v6250_v7  ;;  %2348 = vst [vmem:[#allocation2 + $0x2c] sm:$0x1] %v6250_v7  ;;  %5791 = vmatpush3.bf16.msra.mxu1 %v6162_v13 }
  0x9c   : > { %2349 = vst [vmem:[#allocation2 + $0x30] sm:$0xf] %v6250_v7  ;;  %2350 = vst [vmem:[#allocation2 + $0x34] sm:$0x1] %v6250_v7  ;;  %5792 = vmatprep.subr.bf16.mxu1 %v6164_v17 }
  0x9d   : > { %5769 = vmatpush3.bf16.msra.mxu0 %v6142_v35  ;;  %2351 = vst [vmem:[#allocation2 + $0x38] sm:$0xf] %v6250_v7  ;;  %2352 = vst [vmem:[#allocation2 + $0x3c] sm:$0x1] %v6250_v7  ;;  %v6174_v35 = vld [vmem:[%s7460_s7 + $0x80] sm:$0xff]  }
  0x9e   : > { %5770 = vmatprep.subr.bf16.mxu0 %v6143_v42  ;;  %2353 = vst [vmem:[#allocation2 + $0x40] sm:$0xf] %v6250_v7  ;;  %2354 = vst [vmem:[#allocation2 + $0x44] sm:$0x1] %v6250_v7 }
  0x9f   : > { %2355 = vst [vmem:[#allocation2 + $0x48] sm:$0xf] %v6250_v7  ;;  %2356 = vst [vmem:[#allocation2 + $0x4c] sm:$0x1] %v6250_v7  ;;  %5793 = vmatpush3.bf16.msra.mxu1 %v6164_v17 }
  0xa0   : > { %5794 = vmatprep.subr.bf16.mxu1 %v6166_v22 }
  0xa1   : > { %5771 = vmatpush3.bf16.msra.mxu0 %v6143_v42 }
  0xa2   : > { %5772 = vmatprep.subr.bf16.mxu0 %v6144_v46 }
  0xa3   : > { %5795 = vmatpush3.bf16.msra.mxu1 %v6166_v22 }
  0xa4   : > { %5796 = vmatprep.subr.bf16.mxu1 %v6168_v26 }
  0xa5   : > { %5773 = vmatpush3.bf16.msra.mxu0 %v6144_v46 }
  0xa6   : > { %5774 = vmatprep.subr.bf16.mxu0 %v6145_v47 }
  0xa7   : > { %5797 = vmatpush3.bf16.msra.mxu1 %v6168_v26 }
  0xa8   : > { %5798 = vmatprep.subr.bf16.mxu1 %v6171_v32 }
  0xa9   : > { %5775 = vmatpush3.bf16.msra.mxu0 %v6145_v47 }
  0xaa   : > { %5808 = vmatprep.subr.bf16.mxu0 %v6146_v57 }
  0xab   : > { %5799 = vmatpush3.bf16.msra.mxu1 %v6171_v32 }
  0xac   : > { %5777 = vmatmul.mubr.bf16.vlgmr.msra.gmra.mxu0 %v5035_v52  ;;  %5832 = vmatprep.subr.bf16.mxu1 %v6805_v36 }
  0xad   : > { %5780 = vmatprep.mubr.bf16.mxu0 %v5036_v53  ;;  %5809 = vmatpush3.bf16.msra.mxu0 %v6146_v57 }
  0xae   : > { %5810 = vmatprep.subr.bf16.mxu0 %v6147_v58 }
  0xb1   : > { %5811 = vmatpush3.bf16.msra.mxu0 %v6147_v58 }
  0xb2   : > { %5812 = vmatprep.subr.bf16.mxu0 %v6148_v59 }
  0xb4   : > { %5781 = vmatmul.mubr.bf16.gmra.mxu0 %v5037_v56 }
  0xb5   : > { %5813 = vmatpush3.bf16.msra.mxu0 %v6148_v59  ;;  %5824 = vmatprep.mubr.bf16.mxu0 %v6155_v3 }
  0xb6   : > { %5814 = vmatprep.subr.bf16.mxu0 %v6149_v61 }
  0xb9   : > { %5815 = vmatpush3.bf16.msra.mxu0 %v6149_v61 }
  0xba   : > { %5816 = vmatprep.subr.bf16.mxu0 %v6150_v62 }
  0xbd   : > { %5817 = vmatpush3.bf16.msra.mxu0 %v6150_v62 }
  0xbe   : > { %5818 = vmatprep.subr.bf16.mxu0 %v6151_v63 }
  0xc1   : > { %5819 = vmatpush3.bf16.msra.mxu0 %v6151_v63 }
  0xc2   : > { %5820 = vmatprep.subr.bf16.mxu0 %v6152_v0 }
  0xc5   : > { %5821 = vmatpush3.bf16.msra.mxu0 %v6152_v0 }
  0xc6   : > { %5822 = vmatprep.subr.bf16.mxu0 %v6153_v1 }
  0xc9   : > { %5823 = vmatpush3.bf16.msra.mxu0 %v6153_v1 }
  0xca   : > { %5856 = vmatprep.subr.bf16.mxu0 %v6156_v4 }
  0xcc   : > { %5825 = vmatmul.mubr.bf16.vlgmr.msra.gmra.mxu0 %v6158_v6 }
  0xcd   : > { %5857 = vmatpush3.bf16.msra.mxu0 %v6156_v4  ;;  %5828 = vmatprep.mubr.bf16.mxu0 %v6169_v29 }
  0xce   : > { %5858 = vmatprep.subr.bf16.mxu0 %v6159_v8 }
  0xd1   : > { %5859 = vmatpush3.bf16.msra.mxu0 %v6159_v8 }
  0xd2   : > { %5860 = vmatprep.subr.bf16.mxu0 %v6161_v12 }
  0xd4   : > { %5829 = vmatmul.mubr.bf16.gmra.mxu0 %v6172_v33 }
  0xd5   : > { %5861 = vmatpush3.bf16.msra.mxu0 %v6161_v12 }
  0xd6   : > { %5862 = vmatprep.subr.bf16.mxu0 %v6163_v16 }
  0xd9   : > { %5863 = vmatpush3.bf16.msra.mxu0 %v6163_v16 }
  0xda   : > { %5864 = vmatprep.subr.bf16.mxu0 %v6165_v21 }
  0xdd   : > { %5865 = vmatpush3.bf16.msra.mxu0 %v6165_v21 }
  0xde   : > { %5866 = vmatprep.subr.bf16.mxu0 %v6167_v25 }
  0xe1   : > { %5867 = vmatpush3.bf16.msra.mxu0 %v6167_v25 }
  0xe2   : > { %5868 = vmatprep.subr.bf16.mxu0 %v6170_v30 }
  0xe5   : > { %5869 = vmatpush3.bf16.msra.mxu0 %v6170_v30 }
  0xe6   : > { %5870 = vmatprep.subr.bf16.mxu0 %v6174_v35 }
  0xe9   : > { %5871 = vmatpush3.bf16.msra.mxu0 %v6174_v35 }
  0xea   : > { %5904 = vmatprep.subr.bf16.mxu0 %v6813_v39 }
  0xec   : > { %v6741_v10 = vpop.f32.mrf.mxu0 }
  0xed   : > { %v6753_v15 = vpop.f32.mrf.mxu1 }
  0xee   : > { %v6743_v11 = vpop.f32.mrf.mxu0  ;;  %v742_v21 = vadd.f32 %v6753_v15, %v6741_v10 }
  0xef   : > { %v6763_v19 = vpop.f32.mrf.mxu1 }
  0xf0   : > { %v6751_v14 = vpop.f32.mrf.mxu0  ;;  %v734_v25 = vadd.f32 %v6763_v19, %v6743_v11 }
  0xf1   : > { %v6773_v23 = vpop.f32.mrf.mxu1 }
  0xf2   : > { %v6761_v18 = vpop.f32.mrf.mxu0  ;;  %v745_v30 = vadd.f32 %v6773_v23, %v6751_v14 }
  0xf3   : > { %v6783_v27 = vpop.f32.mrf.mxu1 }
  0xf4   : > { %v6765_v20 = vpop.f32.mrf.mxu0  ;;  %v737_v35 = vadd.f32 %v6783_v27, %v6761_v18 }
  0xf5   : > { %v6791_v31 = vpop.f32.mrf.mxu1 }
  0xf6   : > { %v6775_v24 = vpop.f32.mrf.mxu0  ;;  %v758_v11 = vadd.f32 %v6791_v31, %v6765_v20 }
  0xf7   : > { %v6807_v37 = vpop.f32.mrf.mxu1 }
  0xf8   : > { %v6785_v28 = vpop.f32.mrf.mxu0  ;;  %v750_v14 = vadd.f32 %v6807_v37, %v6775_v24 }
  0xf9   : > { %v5615_v40 = vpop.f32.mrf.mxu1 }
  0xfa   : > { %v6797_v34 = vpop.f32.mrf.mxu0  ;;  %v761_v23 = vadd.f32 %v5615_v40, %v6785_v28 }
  0xfb   : > { %v752_v42 = vpop.f32.mrf.mxu1 }
  0xfc   : > { %v753_v18 = vadd.f32 %v752_v42, %v6797_v34 }
 0x10c   : > { %v5634_v38 = vpop.f32.mrf.mxu0 }
 0x10d   : > { %v5658_v44 = vpop.f32.mrf.mxu1  ;;  %v1043_v26 = vadd.f32 %v5634_v38, %v742_v21 }
 0x10e   : > { %v1010_v41 = vpop.f32.mrf.mxu0 }
 0x10f   : > { %v1180_v46 = vpop.f32.mrf.mxu1  ;;  %v1041_v32 = vadd.f32 %v1010_v41, %v734_v25  ;;  %v1213_v39 = vadd.f32 %v5658_v44, %v1043_v26 }
 0x110   : > { %v5635_v43 = vpop.f32.mrf.mxu0 }
 0x111   : > { %v5659_v48 = vpop.f32.mrf.mxu1  ;;  %v1044_v60 = vadd.f32 %v5635_v43, %v745_v30 }
 0x112   : > { %v1013_v45 = vpop.f32.mrf.mxu0 }
 0x113   : > { %v1183_v50 = vpop.f32.mrf.mxu1  ;;  %v1042_v10 = vadd.f32 %v1013_v45, %v737_v35  ;;  %v1214_v38 = vadd.f32 %v5659_v48, %v1044_v60 }
 0x114   : > { %v5638_v47 = vpop.f32.mrf.mxu0 }
 0x115   : > { %v5662_v52 = vpop.f32.mrf.mxu1  ;;  %v1047_v27 = vadd.f32 %v5638_v47, %v758_v11  ;;  %v1212_v43 = vadd.f32 %v1183_v50, %v1042_v10  ;;  %v6862_v11 = vld [vmem:[#allocation2] sm:$0xe] }
 0x116   : > { %v1026_v49 = vpop.f32.mrf.mxu0 }
 0x117   : > { %v1196_v54 = vpop.f32.mrf.mxu1  ;;  %v1217_v48 = vadd.f32 %v5662_v52, %v1047_v27  ;;  %v6845_v52 = vld [vmem:[%s7458_s5] ss:$0 sm:$0xff] }
 0x118   : > { %v5639_v51 = vpop.f32.mrf.mxu0 }
 0x119   : > { %v5663_v56 = vpop.f32.mrf.mxu1 }
 0x11a   : > { %v1029_v53 = vpop.f32.mrf.mxu0 }
 0x11b   : > { %v1199_v58 = vpop.f32.mrf.mxu1 }
 0x12c   : > { %v5682_v55 = vpop.f32.mrf.mxu0 }
 0x12d   : > { %v5706_v61 = vpop.f32.mrf.mxu1  ;;  %v1383_v15 = vadd.f32 %v5682_v55, %v1213_v39  ;;  %v1045_v39 = vadd.f32 %v1026_v49, %v750_v14  ;;  %v1046_v55 = vadd.f32 %v1029_v53, %v753_v18 }
 0x12e   : > { %v1350_v57 = vpop.f32.mrf.mxu0 }
 0x12f   : > { %v1632_v63 = vpop.f32.mrf.mxu1  ;;  %v1665_v44 = vadd.f32 %v5706_v61, %v1383_v15  ;;  %v1215_v37 = vadd.f32 %v1196_v54, %v1045_v39  ;;  %v1216_v40 = vadd.f32 %v1199_v58, %v1046_v55 }
 0x130   : > { %v5683_v59 = vpop.f32.mrf.mxu0 }
 0x131   : > { %v5707_v1 = vpop.f32.mrf.mxu1  ;;  %v1384_v45 = vadd.f32 %v5683_v59, %v1214_v38  ;;  %v2834_v59 = vld [vmem:[#allocation2] sm:$0xf] }
 0x132   : > { %v1353_v62 = vpop.f32.mrf.mxu0 }
 0x133   : > { %v1635_v3 = vpop.f32.mrf.mxu1  ;;  %v1382_v25 = vadd.f32 %v1353_v62, %v1212_v43 }
 0x134   : > { %v5686_v0 = vpop.f32.mrf.mxu0 }
 0x135   : > { %v6816_v5 = vpop.f32.mrf.mxu1  ;;  %v1387_v34 = vadd.f32 %v5686_v0, %v1217_v48  ;;  %v1664_v47 = vadd.f32 %v1635_v3, %v1382_v25  ;;  %v6851_v0 = vld [vmem:[%s7459_s6] ss:$0 sm:$0xff] }
 0x136   : > { %v1366_v2 = vpop.f32.mrf.mxu0 }
 0x137   : > { %v6818_v7 = vpop.f32.mrf.mxu1  ;;  %v1385_v49 = vadd.f32 %v1366_v2, %v1215_v37  ;;  %v1669_v58 = vadd.f32 %v6816_v5, %v1387_v34  ;;  %v2851_v2 = vshrl.u32 %v2834_v59, 16 }
 0x138   : > { %v5687_v4 = vpop.f32.mrf.mxu0 }
 0x139   : > { %v6820_v9 = vpop.f32.mrf.mxu1  ;;  %v1667_v5 = vadd.f32 %v6818_v7, %v1385_v49  ;;  %v6869_v39 = vrot.slane %v2851_v2, 4 }
 0x13a   : > { %v1369_v6 = vpop.f32.mrf.mxu0 }
 0x13b   : > { %v6822_v13 = vpop.f32.mrf.mxu1  ;;  %v1386_v53 = vadd.f32 %v1369_v6, %v1216_v40 }
 0x13c   : > { %7473 = vst [vmem:[#allocation6_spill] sm:$0xff] %v6822_v13  ;;  %v1211_v13 = vadd.f32 %v1180_v46, %v1041_v32  ;;  %v1048_v46 = vadd.f32 %v5639_v51, %v761_v23 }
 0x13e   : > { %v1381_v21 = vadd.f32 %v1350_v57, %v1211_v13  ;;  %v1666_v13 = vadd.f32 %v5707_v1, %v1384_v45  ;;  %v1218_v28 = vadd.f32 %v5663_v56, %v1048_v46  ;;  %v5108_v45 = vrot.slane %v6862_v11, 9 }
 0x140   : > { %v1663_v31 = vadd.f32 %v1632_v63, %v1381_v21  ;;  %v1388_v51 = vadd.f32 %v5687_v4, %v1218_v28 }
 0x14c   : > { %v5730_v8 = vpop.f32.mrf.mxu0 }
 0x14d   : > { %v5754_v17 = vpop.f32.mrf.mxu1  ;;  %v1836_v60 = vadd.f32 %v5730_v8, %v1665_v44  ;;  %v6854_v8 = vld [vmem:[#allocation2 + $0x4] sm:$0x1] }
 0x14e   : > { %v1803_v12 = vpop.f32.mrf.mxu0 }
 0x14f   : > { %v1974_v29 = vpop.f32.mrf.mxu1  ;;  %v1834_v24 = vadd.f32 %v1803_v12, %v1663_v31  ;;  %v2007_v50 = vadd.f32 %v5754_v17, %v1836_v60  ;;  %v2854_v12 = vshll.u32 %v2834_v59, 16  ;;  %v7474_v17 = vld [vmem:[#allocation6_spill] sm:$0xff] }
 0x150   : > { %v5731_v16 = vpop.f32.mrf.mxu0 }
 0x151   : > { %v5755_v36 = vpop.f32.mrf.mxu1  ;;  %v1837_v61 = vadd.f32 %v5731_v16, %v1666_v13  ;;  %v2005_v62 = vadd.f32 %v1974_v29, %v1834_v24  ;;  %v1670_v16 = vadd.f32 %v6820_v9, %v1388_v51  ;;  %v3145_v9 = vrot.slane %v6854_v8, 5 }
 0x152   : > { %v1806_v22 = vpop.f32.mrf.mxu0  ;;  %v6871_v46 = vrot.slane %v2854_v12, 5 }
 0x153   : > { %v1977_v41 = vpop.f32.mrf.mxu1  ;;  %v1835_v54 = vadd.f32 %v1806_v22, %v1664_v47  ;;  %v2008_v3 = vadd.f32 %v5755_v36, %v1837_v61  ;;  %v1668_v22 = vadd.f32 %v7474_v17, %v1386_v53 }
 0x154   : > { %v6830_v33 = vpop.f32.mrf.mxu0 }
 0x155   : > { %v5758_v57 = vpop.f32.mrf.mxu1  ;;  %v1840_v29 = vadd.f32 %v6830_v33, %v1669_v58  ;;  %v2006_v35 = vadd.f32 %v1977_v41, %v1835_v54  ;;  %v2479_v54 = vld [vmem:[#allocation2 + $0x1c] sm:$0x1] }
 0x156   : > { %v6836_v19 = vpop.f32.mrf.mxu0 }
 0x157   : > { %v1990_v26 = vpop.f32.mrf.mxu1  ;;  %v1838_v38 = vadd.f32 %v6836_v19, %v1667_v5  ;;  %v2011_v41 = vadd.f32 %v5758_v57, %v1840_v29  ;;  %v2860_v57 = vshll.u32 %v6854_v8, 16  ;;  %v2461_v5 = vld [vmem:[#allocation2 + $0x8] sm:$0xf] }
 0x158   : > { %v5735_v20 = vpop.f32.mrf.mxu0 }
 0x159   : > { %v5759_v30 = vpop.f32.mrf.mxu1  ;;  %v1841_v21 = vadd.f32 %v5735_v20, %v1670_v16  ;;  %v2009_v25 = vadd.f32 %v1990_v26, %v1838_v38  ;;  %v2467_v16 = vld [vmem:[#allocation2 + $0xc] sm:$0x1] }
 0x15a   : > { %v1822_v42 = vpop.f32.mrf.mxu0 }
 0x15b   : > { %v1839_v7 = vadd.f32 %v1822_v42, %v1668_v22  ;;  %v1993_v43 = vpop.f32.mrf.mxu1  ;;  %v2012_v60 = vadd.f32 %v5759_v30, %v1841_v21 }
 0x15d   : > { %v2010_v24 = vadd.f32 %v1993_v43, %v1839_v7 }
 0x16c   : > { %v5778_v63 = vpop.f32.mrf.mxu0 }
 0x16d   : > { %v2289_v56 = vadd.f32 %v5778_v63, %v2007_v50 }
 0x16e   : > { %v2256_v1 = vpop.f32.mrf.mxu0 }
 0x16f   : > { %v2304_v4 = vmul.f32 %v6845_v52, %v2289_v56  ;;  %v2287_v6 = vadd.f32 %v2256_v1, %v2005_v62  ;;  %v2476_v62 = vld [vmem:[#allocation2 + $0x18] sm:$0xf] }
 0x170   : > { %v5779_v32 = vpop.f32.mrf.mxu0 }
 0x171   : > { %v2319_v36 = vadd.f32 %v6851_v0, %v2304_v4  ;;  %v2302_v10 = vmul.f32 %v6845_v52, %v2287_v6  ;;  %v2290_v15 = vadd.f32 %v5779_v32, %v2008_v3 }
 0x172   : > { %v2259_v14 = vpop.f32.mrf.mxu0 }
 0x173   : > { %v2327_v23 = vmax.f32 %v2319_v36, 0.0  ;;  %v2317_v33 = vadd.f32 %v6851_v0, %v2302_v10  ;;  %v2305_v18 = vmul.f32 %v6845_v52, %v2290_v15  ;;  %v2288_v27 = vadd.f32 %v2259_v14, %v2006_v35 }
 0x174   : > { %v5782_v44 = vpop.f32.mrf.mxu0 }
 0x175   : > { %v5334_v19 = vpack.c.bf16 %v2327_v23, %v2327_v23  ;;  %v2325_v55 = vmax.f32 %v2317_v33, 0.0  ;;  %v2320_v20 = vadd.f32 %v6851_v0, %v2305_v18  ;;  %v2303_v31 = vmul.f32 %v6845_v52, %v2288_v27  ;;  %v2482_v18 = vld [vmem:[#allocation2 + $0x20] sm:$0xf]  ;;  %v2485_v27 = vld [vmem:[#allocation2 + $0x24] sm:$0x1] }
 0x176   : > { %v2293_v48 = vadd.f32 %v5782_v44, %v2011_v41  ;;  %v2272_v13 = vpop.f32.mrf.mxu0 }
 0x177   : > { %v2394_v37 = vshrl.u32 %v5334_v19, 16  ;;  %v5332_v28 = vpack.c.bf16 %v2325_v55, %v2325_v55  ;;  %v2328_v40 = vmax.f32 %v2320_v20, 0.0  ;;  %v2397_v34 = vshll.u32 %v5334_v19, 16 }
 0x178   : > { %v2318_v42 = vadd.f32 %v6851_v0, %v2303_v31  ;;  %v2308_v47 = vmul.f32 %v6845_v52, %v2293_v48  ;;  %v2291_v50 = vadd.f32 %v2272_v13, %v2009_v25  ;;  %v5783_v61 = vpop.f32.mrf.mxu0  ;;  %v2470_v31 = vld [vmem:[#allocation2 + $0x10] sm:$0xf]  ;;  %v2473_v25 = vld [vmem:[#allocation2 + $0x14] sm:$0x1] }
 0x179   : > { %v2396_v59 = vrot.slane %v2394_v37, 7  ;;  %v2378_v51 = vshrl.u32 %v5332_v28, 16  ;;  %v2381_v53 = vshll.u32 %v5332_v28, 16  ;;  %v5335_v26 = vpack.c.bf16 %v2328_v40, %v2328_v40 }
 0x17a   : > { %v2326_v56 = vmax.f32 %v2318_v42, 0.0  ;;  %v2323_v58 = vadd.f32 %v6851_v0, %v2308_v47  ;;  %v2306_v1 = vmul.f32 %v6845_v52, %v2291_v50  ;;  %v2294_v2 = vadd.f32 %v5783_v61, %v2012_v60  ;;  %v2275_v14 = vpop.f32.mrf.mxu0  ;;  %v2500_v47 = vld [vmem:[#allocation2 + $0x38] sm:$0xf] }
 0x17b   : > { %v2399_v3 = vor.u32 %v2397_v34, %v2396_v59  ;;  %v2400_v4 = vrot.slane %v2396_v59, 4  ;;  %v2380_v6 = vrot.slane %v2378_v51, 7  ;;  %v2402_v12 = vshrl.u32 %v5335_v26, 16  ;;  %v2503_v59 = vld [vmem:[#allocation2 + $0x3c] sm:$0x1] }
 0x17c   : > { %v2405_v17 = vshll.u32 %v5335_v26, 16  ;;  %v5333_v22 = vpack.c.bf16 %v2326_v56, %v2326_v56  ;;  %v2331_v29 = vmax.f32 %v2323_v58, 0.0  ;;  %v2321_v30 = vadd.f32 %v6851_v0, %v2306_v1  ;;  %v2488_v26 = vld [vmem:[#allocation2 + $0x28] sm:$0xf] }
 0x17d   : > { %v2477_v32 = vsel %vm6880_vm7, %v2399_v3, %v2476_v62  ;;  %v2480_v35 = vsel %vm6886_vm8, %v2400_v4, %v2479_v54  ;;  %v2383_v36 = vor.u32 %v2381_v53, %v2380_v6  ;;  %v2384_v10 = vrot.slane %v2380_v6, 4  ;;  %v2491_v62 = vld [vmem:[#allocation2 + $0x2c] sm:$0x1] }
 0x17e   : > { %2478 = vst [vmem:[#allocation2 + $0x18] sm:$0xf] %v2477_v32  ;;  %2481 = vst [vmem:[#allocation2 + $0x1c] sm:$0x1] %v2480_v35  ;;  %v2404_v15 = vrot.slane %v2402_v12, 7  ;;  %v2386_v38 = vshrl.u32 %v5333_v22, 16  ;;  %v5338_v7 = vpack.c.bf16 %v2331_v29, %v2331_v29  ;;  %v2309_v43 = vmul.f32 %v6845_v52, %v2294_v2 }
 0x17f   : > { %v2389_v21 = vshll.u32 %v5333_v22, 16  ;;  %v2462_v23 = vsel %vm6880_vm7, %v2383_v36, %v2461_v5  ;;  %v2468_v33 = vsel %vm6886_vm8, %v2384_v10, %v2467_v16  ;;  %v2329_v41 = vmax.f32 %v2321_v30, 0.0 }
 0x180   : > { %2463 = vst [vmem:[#allocation2 + $0x8] sm:$0xf] %v2462_v23  ;;  %2469 = vst [vmem:[#allocation2 + $0xc] sm:$0x1] %v2468_v33  ;;  %v2407_v44 = vor.u32 %v2405_v17, %v2404_v15  ;;  %v2408_v19 = vrot.slane %v2404_v15, 4  ;;  %v2388_v55 = vrot.slane %v2386_v38, 7  ;;  %v2324_v48 = vadd.f32 %v6851_v0, %v2309_v43 }
 0x181   : > { %v2426_v20 = vshrl.u32 %v5338_v7, 16  ;;  %v5336_v60 = vpack.c.bf16 %v2329_v41, %v2329_v41  ;;  %v2292_v13 = vadd.f32 %v2275_v14, %v2010_v24  ;;  %v2857_v37 = vor.u32 %v6871_v46, %v6869_v39  ;;  %v2506_v38 = vld [vmem:[#allocation2 + $0x40] sm:$0xf] }
 0x182   : > { %v2483_v28 = vsel %vm6880_vm7, %v2407_v44, %v2482_v18  ;;  %v2486_v40 = vsel %vm6886_vm8, %v2408_v19, %v2485_v27  ;;  %v2391_v34 = vor.u32 %v2389_v21, %v2388_v55  ;;  %v2392_v42 = vrot.slane %v2388_v55, 4  ;;  %v2509_v21 = vld [vmem:[#allocation2 + $0x44] sm:$0x1] }
 0x183   : > { %2484 = vst [vmem:[#allocation2 + $0x20] sm:$0xf] %v2483_v28  ;;  %2487 = vst [vmem:[#allocation2 + $0x24] sm:$0x1] %v2486_v40  ;;  %v2428_v50 = vrot.slane %v2426_v20, 7  ;;  %v2429_v61 = vshll.u32 %v5338_v7, 16  ;;  %v2307_v54 = vmul.f32 %v6845_v52, %v2292_v13  ;;  %v3146_v19 = vsel %vm6941_vm11, %v5108_v45, %v3145_v9 }
 0x184   : > { %v2410_v51 = vshrl.u32 %v5336_v60, 16  ;;  %v2332_v53 = vmax.f32 %v2324_v48, 0.0  ;;  %v2471_v24 = vsel %vm6880_vm7, %v2391_v34, %v2470_v31  ;;  %v2474_v39 = vsel %vm6886_vm8, %v2392_v42, %v2473_v25  ;;  %v6178_v28 = vld [vmem:[%s7460_s7 + $0x70] sm:$0xff]  }
 0x185   : > { %v2413_v46 = vshll.u32 %v5336_v60, 16  ;;  %2472 = vst [vmem:[#allocation2 + $0x10] sm:$0xf] %v2471_v24  ;;  %2475 = vst [vmem:[#allocation2 + $0x14] sm:$0x1] %v2474_v39  ;;  %v2431_v56 = vor.u32 %v2429_v61, %v2428_v50  ;;  %v2432_v58 = vrot.slane %v2428_v50, 4  ;;  %v2322_v4 = vadd.f32 %v6851_v0, %v2307_v54 }
 0x186   : > { %v2412_v1 = vrot.slane %v2410_v51, 7  ;;  %v5339_v2 = vpack.c.bf16 %v2332_v53, %v2332_v53  ;;  %v6914_v3 = vld [vmem:[#allocation2 + $0x1c] sm:$0x1]  ;;  %v6917_v6 = vld [vmem:[#allocation2 + $0x18] sm:$0xe]  ;;  %v6920_v5 = vrot.slane %v2857_v37, 4 }
 0x187   : > { %v3157_v12 = vrot.slane %v6914_v3, 5  ;;  %v6924_v16 = vrot.slane %v2860_v57, 5  ;;  %v2501_v52 = vsel %vm6880_vm7, %v2431_v56, %v2500_v47  ;;  %v2504_v17 = vsel %vm6886_vm8, %v2432_v58, %v2503_v59  ;;  %v6173_v30 = vld [vmem:[#allocation2] ss:$8 sps:$4 sm:$0xff]   ;;  %v6930_v36 = vld [vmem:[#allocation2 + $0xc] sm:$0x1] }
 0x188   : > { %v2415_v22 = vor.u32 %v2413_v46, %v2412_v1  ;;  %v2416_v29 = vrot.slane %v2412_v1, 4  ;;  %2502 = vst [vmem:[#allocation2 + $0x38] sm:$0xf] %v2501_v52  ;;  %2505 = vst [vmem:[#allocation2 + $0x3c] sm:$0x1] %v2504_v17  ;;  %v2434_v0 = vshrl.u32 %v5339_v2, 16  ;;  %5800 = vmatprep.mubr.bf16.mxu1 %v6173_v30 }
 0x189   : > { %v2437_v32 = vshll.u32 %v5339_v2, 16  ;;  %v2330_v35 = vmax.f32 %v2322_v4, 0.0  ;;  %v2902_v10 = vshll.u32 %v6914_v3, 16  ;;  %v3117_v7 = vld [vmem:[#allocation2 + $0x8] sm:$0xe]  ;;  %v3149_v14 = vrot.slane %v6930_v36, 5 }
 0x18a   : > { %v2489_v57 = vsel %vm6880_vm7, %v2415_v22, %v2488_v26  ;;  %v2492_v15 = vsel %vm6886_vm8, %v2416_v29, %v2491_v62  ;;  %v5111_v23 = vrot.slane %v6917_v6, 9  ;;  %v2836_v33 = vld [vmem:[#allocation2 + $0x8] sm:$0xf]  ;;  %v2436_v18 = vrot.slane %v2434_v0, 7  ;;  %v6952_v55 = vld [vmem:[#allocation2 + $0x24] sm:$0x1] }
 0x18b   : > { %2490 = vst [vmem:[#allocation2 + $0x28] sm:$0xf] %v2489_v57  ;;  %2493 = vst [vmem:[#allocation2 + $0x2c] sm:$0x1] %v2492_v15  ;;  %v5337_v27 = vpack.c.bf16 %v2330_v35, %v2330_v35  ;;  %v5109_v43 = vrot.slane %v3117_v7, 9  ;;  %v2874_v44 = vshll.u32 %v6930_v36, 16  ;;  %v2863_v36 = vsel %vm6433_vm2, %v6920_v5, %v6924_v16 }
 0x18c   : > { %v3120_v20 = vld [vmem:[#allocation2 + $0x20] sm:$0xe]  ;;  %v2865_v31 = vshrl.u32 %v2836_v33, 16  ;;  %v2868_v25 = vshll.u32 %v2836_v33, 16  ;;  %v2439_v60 = vor.u32 %v2437_v32, %v2436_v18  ;;  %v2440_v48 = vrot.slane %v2436_v18, 4  ;;  %v7481_v62 = vld [vmem:[#allocation4_spill] sm:$0xff] }
 0x18d   : > { %v2418_v13 = vshrl.u32 %v5337_v27, 16  ;;  %v2421_v37 = vshll.u32 %v5337_v27, 16  ;;  %v3150_v8 = vsel %vm6941_vm11, %v5109_v43, %v3149_v14  ;;  %v6176_v11 = vld [vmem:[#allocation2 + $0x10] ss:$8 sps:$4 sm:$0xff]   ;;  %v6959_v40 = vld [vmem:[#allocation2 + $0x14] sm:$0x1]  ;;  %v3158_v4 = vsel %vm6941_vm11, %v5111_v23, %v3157_v12 }
 0x18e   : > { %v3118_v9 = vld [vmem:[#allocation2 + $0x10] sm:$0xe]  ;;  %v2507_v45 = vsel %vm6880_vm7, %v2439_v60, %v2506_v38  ;;  %v2510_v34 = vsel %vm6886_vm8, %v2440_v48, %v2509_v21  ;;  %v2497_v50 = vld [vmem:[#allocation2 + $0x34] sm:$0x1]  ;;  %v5132_v61 = vcombine.low %v3146_v19, %v3150_v8  ;;  %5801 = vmatmul.mubr.bf16.vlgmr.msra.gmra.mxu1 %v6176_v11  ;;  %v3153_v51 = vrot.slane %v6959_v40, 5  ;;  %v6181_v54 = vld [vmem:[%s7460_s7 + $0x68] sm:$0xff]  }
 0x18f   : > { %v2420_v42 = vrot.slane %v2418_v13, 7  ;;  %v2494_v47 = vld [vmem:[#allocation2 + $0x30] sm:$0xf]  ;;  %2508 = vst [vmem:[#allocation2 + $0x40] sm:$0xf] %v2507_v45  ;;  %v5110_v59 = vrot.slane %v3118_v9, 9  ;;  %5833 = vmatpush3.bf16.msra.mxu1 %v7481_v62 }
 0x190   : > { %2511 = vst [vmem:[#allocation2 + $0x44] sm:$0x1] %v2510_v34  ;;  %v3161_v53 = vrot.slane %v6952_v55, 5  ;;  %v2867_v24 = vrot.slane %v2865_v31, 4  ;;  %v3499_v39 = vld [vmem:[#allocation2 + $0x8] sm:$0xf]  ;;  %5872 = vmatprep.mubr.bf16.mxu0 %v5132_v61  ;;  %5834 = vmatprep.subr.bf16.mxu1 %v6178_v28 }
 0x191   : > { %v2423_v46 = vor.u32 %v2421_v37, %v2420_v42  ;;  %v2424_v26 = vrot.slane %v2420_v42, 4  ;;  %v5112_v56 = vrot.slane %v3120_v20, 9  ;;  %v2870_v58 = vrot.slane %v2868_v25, 5  ;;  %v6971_v1 = vld [vmem:[#allocation2 + $0x38] sm:$0xe]  ;;  %v6180_v30 = vld [vmem:[%s7460_s7 + $0x130] sm:$0xff]  }
 0x192   : > { %v3154_v2 = vsel %vm6941_vm11, %v5110_v59, %v3153_v51  ;;  %v6179_v6 = vld [vmem:[#allocation2 + $0x20] ss:$8 sps:$4 sm:$0xff]   ;;  %v6979_v52 = vld [vmem:[#allocation2 + $0x2c] sm:$0x1]  ;;  %v3501_v35 = vld [vmem:[#allocation2 + $0x10] sm:$0xf] }
 0x193   : > { %v2495_v17 = vsel %vm6880_vm7, %v2423_v46, %v2494_v47  ;;  %v2498_v22 = vsel %vm6886_vm8, %v2424_v26, %v2497_v50  ;;  %v5133_v29 = vcombine.low %v3154_v2, %v3158_v4  ;;  %v3121_v0 = vld [vmem:[#allocation2 + $0x28] sm:$0xe]  ;;  %v3165_v32 = vrot.slane %v6979_v52, 5  ;;  %5804 = vmatprep.mubr.bf16.mxu1 %v6179_v6  ;;  %v6993_v15 = vld [vmem:[#allocation2 + $0x3c] sm:$0x1]  ;;  %5835 = vmatpush3.bf16.msra.mxu1 %v6178_v28  ;;  %v7483_v18 = vld [vmem:[#allocation5_spill] sm:$0xff] }
 0x194   : > { %2496 = vst [vmem:[#allocation2 + $0x30] sm:$0xf] %v2495_v17  ;;  %2499 = vst [vmem:[#allocation2 + $0x34] sm:$0x1] %v2498_v22  ;;  %v5113_v12 = vrot.slane %v3121_v0, 9  ;;  %v2871_v63 = vor.u32 %v2870_v58, %v2867_v24  ;;  %v2876_v57 = vrot.slane %v2874_v44, 5  ;;  %v3162_v21 = vsel %vm6941_vm11, %v5112_v56, %v3161_v53  ;;  %5836 = vmatprep.subr.bf16.mxu1 %v6181_v54 }
 0x195   : > { %v6995_v38 = vld [vmem:[#allocation2 + $0xc] sm:$0x1]  ;;  %5873 = vmatmul.mubr.bf16.vlgmr.msra.gmra.mxu0 %v5133_v29  ;;  %v6999_v7 = vld [vmem:[#allocation2 + $0x14] sm:$0x1]  ;;  %v3516_v14 = vshrl.u32 %v3499_v39, 16  ;;  %v3519_v23 = vshll.u32 %v3499_v39, 16 }
 0x196   : > { %v3530_v33 = vshrl.u32 %v3501_v35, 16  ;;  %5905 = vmatpush3.bf16.msra.mxu0 %v7483_v18  ;;  %v3166_v5 = vsel %vm6941_vm11, %v5113_v12, %v3165_v32  ;;  %v2872_v16 = vrot.slane %v2871_v63, 4  ;;  %v6184_v27 = vld [vmem:[%s7460_s7 + $0x60] sm:$0xff]   ;;  %v5115_v43 = vrot.slane %v6971_v1, 9  ;;  %v2838_v19 = vld [vmem:[#allocation2 + $0x10] sm:$0xf] }
 0x197   : > { %v3533_v44 = vshll.u32 %v3501_v35, 16  ;;  %5906 = vmatprep.subr.bf16.mxu0 %v6180_v30  ;;  %v5134_v20 = vcombine.low %v3162_v21, %v3166_v5  ;;  %v6183_v31 = vld [vmem:[%s7460_s7 + $0x128] sm:$0xff]   ;;  %v3173_v25 = vrot.slane %v6993_v15, 5  ;;  %v3518_v60 = vrot.slane %v3516_v14, 4  ;;  %v2840_v13 = vld [vmem:[#allocation2 + $0x18] sm:$0xf]  ;;  %5837 = vmatpush3.bf16.msra.mxu1 %v6181_v54 }
 0x198   : > { %v3521_v48 = vrot.slane %v3519_v23, 5  ;;  %v2877_v37 = vsel %vm6433_vm2, %v2872_v16, %v2876_v57  ;;  %v3532_v28 = vrot.slane %v3530_v33, 4  ;;  %v3539_v11 = vshll.u32 %v6999_v7, 16  ;;  %v6185_v34 = vld [vmem:[%s7460_s7 + $0x120] sm:$0xff]   ;;  %5838 = vmatprep.subr.bf16.mxu1 %v6184_v27  ;;  %v6186_v59 = vld [vmem:[%s7460_s7 + $0x58] sm:$0xff]  }
 0x199   : > { %v3535_v8 = vrot.slane %v3533_v44, 5  ;;  %5876 = vmatprep.mubr.bf16.mxu0 %v5134_v20  ;;  %v3525_v45 = vshll.u32 %v6995_v38, 16  ;;  %v2879_v42 = vshrl.u32 %v2838_v19, 16  ;;  %v2882_v47 = vshll.u32 %v2838_v19, 16  ;;  %v2842_v24 = vld [vmem:[#allocation2 + $0x20] sm:$0xf] }
 0x19a   : > { %v3522_v9 = vor.u32 %v3521_v48, %v3518_v60  ;;  %5907 = vmatpush3.bf16.msra.mxu0 %v6180_v30  ;;  %v3541_v61 = vrot.slane %v3539_v11, 5  ;;  %v2888_v51 = vshll.u32 %v6959_v40, 16  ;;  %v2893_v53 = vshrl.u32 %v2840_v13, 16  ;;  %v2844_v0 = vld [vmem:[#allocation2 + $0x28] sm:$0xf]  ;;  %v6187_v12 = vld [vmem:[%s7460_s7 + $0x118] sm:$0xff]  }
 0x19b   : > { %v3536_v50 = vor.u32 %v3535_v8, %v3532_v28  ;;  %v6182_v39 = vld [vmem:[#allocation2 + $0x30] ss:$8 sps:$4 sm:$0xff]   ;;  %v5096_v46 = vcombine.low %v2863_v36, %v2877_v37  ;;  %5908 = vmatprep.subr.bf16.mxu0 %v6183_v31  ;;  %v7023_v26 = vld [vmem:[#allocation2 + $0x34] sm:$0x1]  ;;  %v2881_v1 = vrot.slane %v2879_v42, 4  ;;  %v3174_v4 = vsel %vm6941_vm11, %v5115_v43, %v3173_v25  ;;  %5839 = vmatpush3.bf16.msra.mxu1 %v6184_v27  ;;  %v6188_v36 = vld [vmem:[%s7460_s7 + $0x50] sm:$0xff]  }
 0x19c   : > { %v3122_v62 = vld [vmem:[#allocation2 + $0x30] sm:$0xe]  ;;  %v3169_v54 = vrot.slane %v7023_v26, 5  ;;  %v3523_v56 = vrot.slane %v3522_v9, 4  ;;  %5805 = vmatmul.mubr.bf16.gmra.mxu1 %v6182_v39  ;;  %v3527_v6 = vrot.slane %v3525_v45, 5  ;;  %v2884_v40 = vrot.slane %v2882_v47, 5  ;;  %5840 = vmatprep.subr.bf16.mxu1 %v6186_v59 }
 0x19d   : > { %v3537_v58 = vrot.slane %v3536_v50, 4  ;;  %v5114_v2 = vrot.slane %v3122_v62, 9  ;;  %5848 = vmatprep.mubr.bf16.mxu1 %v5096_v46  ;;  %v7030_v22 = vrot.slane %v2888_v51, 5  ;;  %v2895_v29 = vrot.slane %v2893_v53, 4  ;;  %v3503_v21 = vld [vmem:[#allocation2 + $0x18] sm:$0xf] }
 0x19e   : > { %5909 = vmatpush3.bf16.msra.mxu0 %v6183_v31  ;;  %v2896_v30 = vshll.u32 %v2840_v13, 16  ;;  %v3528_v35 = vsel %vm6433_vm2, %v3523_v56, %v3527_v6  ;;  %v2885_v63 = vor.u32 %v2884_v40, %v2881_v1  ;;  %v2907_v57 = vshrl.u32 %v2842_v24, 16  ;;  %v7042_v5 = vld [vmem:[#allocation2 + $0x1c] sm:$0x1]  ;;  %v3505_v60 = vld [vmem:[#allocation2 + $0x20] sm:$0xf] }
 0x19f   : > { %v3542_v17 = vsel %vm6433_vm2, %v3537_v58, %v3541_v61  ;;  %v3170_v32 = vsel %vm6941_vm11, %v5114_v2, %v3169_v54  ;;  %5910 = vmatprep.subr.bf16.mxu0 %v6185_v34  ;;  %v2910_v18 = vshll.u32 %v2842_v24, 16  ;;  %v2921_v43 = vshrl.u32 %v2844_v0, 16  ;;  %v6189_v48 = vld [vmem:[%s7460_s7 + $0x110] sm:$0xff]   ;;  %5841 = vmatpush3.bf16.msra.mxu1 %v6186_v59  ;;  %v7054_v11 = vld [vmem:[#allocation2 + $0x24] sm:$0x1] }
 0x1a0   : > { %v5135_v14 = vcombine.low %v3170_v32, %v3174_v4  ;;  %v5188_v23 = vcombine.low %v3528_v35, %v3542_v17  ;;  %v2898_v33 = vrot.slane %v2896_v30, 5  ;;  %v2886_v16 = vrot.slane %v2885_v63, 4  ;;  %v3507_v45 = vld [vmem:[#allocation2 + $0x28] sm:$0xf]  ;;  %5842 = vmatprep.subr.bf16.mxu1 %v6188_v36  ;;  %v7060_v61 = vld [vmem:[#allocation2 + $0x2c] sm:$0x1] }
 0x1a1   : > { %v2909_v27 = vrot.slane %v2907_v57, 4  ;;  %v2924_v44 = vshll.u32 %v2844_v0, 16  ;;  %v2904_v20 = vrot.slane %v2902_v10, 5  ;;  %v2912_v31 = vrot.slane %v2910_v18, 5  ;;  %v3509_v39 = vld [vmem:[#allocation2 + $0x30] sm:$0xf] }
 0x1a2   : > { %5877 = vmatmul.mubr.bf16.gmra.mxu0 %v5135_v14  ;;  %v2899_v19 = vor.u32 %v2898_v33, %v2895_v29  ;;  %v2916_v25 = vshll.u32 %v6952_v55, 16  ;;  %v2923_v13 = vrot.slane %v2921_v43, 4  ;;  %v2930_v28 = vshll.u32 %v6979_v52, 16  ;;  %v6191_v46 = vld [vmem:[%s7460_s7 + $0x108] sm:$0xff]   ;;  %v7070_v40 = vld [vmem:[#allocation2 + $0x34] sm:$0x1] }
 0x1a3   : > { %5920 = vmatprep.mubr.bf16.mxu0 %v5188_v23  ;;  %5911 = vmatpush3.bf16.msra.mxu0 %v6185_v34  ;;  %v2926_v37 = vrot.slane %v2924_v44, 5  ;;  %v3544_v8 = vshrl.u32 %v3503_v21, 16  ;;  %v2891_v3 = vsel %vm6433_vm2, %v2886_v16, %v7030_v22  ;;  %v2913_v55 = vor.u32 %v2912_v31, %v2909_v27  ;;  %v6190_v34 = vld [vmem:[%s7460_s7 + $0x48] sm:$0xff]   ;;  %v6192_v17 = vld [vmem:[%s7460_s7 + $0x40] sm:$0xff]   ;;  %v2846_v63 = vld [vmem:[#allocation2 + $0x30] sm:$0xf] }
 0x1a4   : > { %5912 = vmatprep.subr.bf16.mxu0 %v6187_v12  ;;  %v2900_v10 = vrot.slane %v2899_v19, 4  ;;  %v3547_v9 = vshll.u32 %v3503_v21, 16  ;;  %v3553_v47 = vshll.u32 %v7042_v5, 16  ;;  %v3558_v50 = vshrl.u32 %v3505_v60, 16  ;;  %5843 = vmatpush3.bf16.msra.mxu1 %v6188_v36  ;;  %v6193_v57 = vld [vmem:[%s7460_s7 + $0x100] sm:$0xff]   ;;  %v6194_v44 = vld [vmem:[%s7460_s7 + $0xf8] sm:$0xff]  }
 0x1a5   : > { %v2927_v42 = vor.u32 %v2926_v37, %v2923_v13  ;;  %v3546_v52 = vrot.slane %v3544_v8, 4  ;;  %v2914_v59 = vrot.slane %v2913_v55, 4  ;;  %v2918_v51 = vrot.slane %v2916_v25, 5  ;;  %5844 = vmatprep.subr.bf16.mxu1 %v6190_v34  ;;  %v2848_v31 = vld [vmem:[#allocation2 + $0x38] sm:$0xf] }
 0x1a6   : > { %v3549_v53 = vrot.slane %v3547_v9, 5  ;;  %v3561_v24 = vshll.u32 %v3505_v60, 16  ;;  %v2905_v62 = vsel %vm6433_vm2, %v2900_v10, %v2904_v20  ;;  %v2932_v56 = vrot.slane %v2930_v28, 5  ;;  %v3511_v8 = vld [vmem:[#allocation2 + $0x38] sm:$0xf] }
 0x1a7   : > { %5913 = vmatpush3.bf16.msra.mxu0 %v6187_v12  ;;  %v2928_v54 = vrot.slane %v2927_v42, 4  ;;  %v3560_v58 = vrot.slane %v3558_v50, 4  ;;  %v7067_v1 = vcombine.low %v2891_v3, %v2905_v62  ;;  %v3567_v6 = vshll.u32 %v7054_v11, 16  ;;  %v6195_v3 = vld [vmem:[%s7460_s7 + $0x1b8] sm:$0xff]   ;;  %v4450_v49 = vld [vmem:[#allocation2 + $0x40] sm:$0xe] }
 0x1a8   : > { %5914 = vmatprep.subr.bf16.mxu0 %v6189_v48  ;;  %v3550_v2 = vor.u32 %v3549_v53, %v3546_v52  ;;  %v3563_v4 = vrot.slane %v3561_v24, 5  ;;  %v3555_v29 = vrot.slane %v3553_v47, 5  ;;  %v3572_v30 = vshrl.u32 %v3507_v45, 16  ;;  %5845 = vmatpush3.bf16.msra.mxu1 %v6190_v34  ;;  %v6196_v34 = vld [vmem:[%s7460_s7 + $0xf0] sm:$0xff]  }
 0x1a9   : > { %v2933_v22 = vsel %vm6433_vm2, %v2928_v54, %v2932_v56  ;;  %v3575_v0 = vshll.u32 %v3507_v45, 16  ;;  %v2919_v32 = vsel %vm6433_vm2, %v2914_v59, %v2918_v51  ;;  %v3581_v36 = vshll.u32 %v7060_v61, 16  ;;  %5846 = vmatprep.subr.bf16.mxu1 %v6192_v17  ;;  %v3513_v59 = vld [vmem:[#allocation2 + $0x40] sm:$0xf]  ;;  %v7099_v54 = vld [vmem:[#allocation2 + $0x3c] sm:$0x1] }
 0x1aa   : > { %v3551_v35 = vrot.slane %v3550_v2, 4  ;;  %v3564_v12 = vor.u32 %v3563_v4, %v3560_v58  ;;  %v5098_v21 = vcombine.low %v2919_v32, %v2933_v22  ;;  %v3574_v14 = vrot.slane %v3572_v30, 4  ;;  %v6197_v2 = vld [vmem:[%s7460_s7 + $0x1b0] sm:$0xff]  }
 0x1ab   : > { %5915 = vmatpush3.bf16.msra.mxu0 %v6189_v48  ;;  %v3577_v23 = vrot.slane %v3575_v0, 5  ;;  %v3586_v33 = vshrl.u32 %v3509_v39, 16  ;;  %v3569_v16 = vrot.slane %v3567_v6, 5  ;;  %v3589_v27 = vshll.u32 %v3509_v39, 16 }
 0x1ac   : > { %5916 = vmatprep.subr.bf16.mxu0 %v6191_v46  ;;  %v3565_v18 = vrot.slane %v3564_v12, 4  ;;  %v3595_v43 = vshll.u32 %v7070_v40, 16  ;;  %v2935_v25 = vshrl.u32 %v2846_v63, 16  ;;  %v2938_v60 = vshll.u32 %v2846_v63, 16  ;;  %5847 = vmatpush3.bf16.msra.mxu1 %v6192_v17 }
 0x1ad   : > { %v3578_v19 = vor.u32 %v3577_v23, %v3574_v14  ;;  %v3588_v20 = vrot.slane %v3586_v33, 4  ;;  %v3556_v48 = vsel %vm6433_vm2, %v3551_v35, %v3555_v29  ;;  %v3583_v37 = vrot.slane %v3581_v36, 5  ;;  %5880 = vmatprep.subr.bf16.mxu1 %v6194_v44  ;;  %v7109_v29 = vld [vmem:[#allocation2 + $0x44] sm:$0x1] }
 0x1ae   : > { %v3570_v13 = vsel %vm6433_vm2, %v3565_v18, %v3569_v16  ;;  %v3591_v28 = vrot.slane %v3589_v27, 5  ;;  %v2937_v55 = vrot.slane %v2935_v25, 4  ;;  %v2940_v9 = vrot.slane %v2938_v60, 5  ;;  %v6198_v35 = vld [vmem:[%s7460_s7 + $0xe8] sm:$0xff]  }
 0x1af   : > { %5917 = vmatpush3.bf16.msra.mxu0 %v6191_v46  ;;  %v3579_v10 = vrot.slane %v3578_v19, 4  ;;  %v2944_v45 = vshll.u32 %v7023_v26, 16  ;;  %v3597_v52 = vrot.slane %v3595_v43, 5  ;;  %v2949_v47 = vshrl.u32 %v2848_v31, 16  ;;  %5849 = vmatmul.mubr.bf16.vlgmr.msra.gmra.mxu1 %v7067_v1  ;;  %v6201_v19 = vld [vmem:[%s7460_s7 + $0xe0] sm:$0xff]  }
 0x1b0   : > { %5918 = vmatprep.subr.bf16.mxu0 %v6193_v57  ;;  %v3592_v42 = vor.u32 %v3591_v28, %v3588_v20  ;;  %v2952_v50 = vshll.u32 %v2848_v31, 16  ;;  %v5189_v51 = vcombine.low %v3556_v48, %v3570_v13  ;;  %v2941_v53 = vor.u32 %v2940_v9, %v2937_v55  ;;  %5852 = vmatprep.mubr.bf16.mxu1 %v5098_v21  ;;  %v6199_v20 = vld [vmem:[#allocation2 + $0x8] ss:$8 sps:$4 sm:$0xff]  }
 0x1b1   : > { %v2958_v24 = vshll.u32 %v6993_v15, 16  ;;  %v3600_v39 = vshrl.u32 %v3511_v8, 16  ;;  %v2951_v62 = vrot.slane %v2949_v47, 4  ;;  %v3603_v56 = vshll.u32 %v3511_v8, 16  ;;  %5881 = vmatpush3.bf16.msra.mxu1 %v6194_v44  ;;  %v6200_v44 = vld [vmem:[%s7460_s7 + $0x1a8] sm:$0xff]   ;;  %v6204_v8 = vld [vmem:[%s7460_s7 + $0xd8] sm:$0xff]  }
 0x1b2   : > { %v3593_v46 = vrot.slane %v3592_v42, 4  ;;  %v2954_v26 = vrot.slane %v2952_v50, 5  ;;  %v3584_v58 = vsel %vm6433_vm2, %v3579_v10, %v3583_v37  ;;  %v2942_v4 = vrot.slane %v2941_v53, 4  ;;  %5882 = vmatprep.subr.bf16.mxu1 %v6196_v34  ;;  %v6203_v37 = vld [vmem:[%s7460_s7 + $0x1a0] sm:$0xff]   ;;  %v6205_v10 = vld [vmem:[%s7460_s7 + $0x198] sm:$0xff]   ;;  %v6206_v55 = vld [vmem:[%s7460_s7 + $0xd0] sm:$0xff]  }
 0x1b3   : > { %5919 = vmatpush3.bf16.msra.mxu0 %v6193_v57  ;;  %v2946_v6 = vrot.slane %v2944_v45, 5  ;;  %v3602_v15 = vrot.slane %v3600_v39, 4  ;;  %v3605_v1 = vrot.slane %v3603_v56, 5  ;;  %v3614_v30 = vshrl.u32 %v3513_v59, 16  ;;  %v6207_v9 = vld [vmem:[%s7460_s7 + $0x190] sm:$0xff]   ;;  %v6208_v45 = vld [vmem:[%s7460_s7 + $0xc8] sm:$0xff]  }
 0x1b4   : > { %v3598_v17 = vsel %vm6433_vm2, %v3593_v46, %v3597_v52  ;;  %v2955_v22 = vor.u32 %v2954_v26, %v2951_v62  ;;  %5952 = vmatprep.subr.bf16.mxu0 %v6195_v3  ;;  %v2960_v32 = vrot.slane %v2958_v24, 5  ;;  %v3617_v12 = vshll.u32 %v3513_v59, 16  ;;  %v6210_v42 = vld [vmem:[%s7460_s7 + $0xc0] sm:$0xff]   ;;  %v6213_v47 = vld [vmem:[%s7460_s7 + $0x178] sm:$0xff]   ;;  %v6217_v53 = vld [vmem:[%s7460_s7 + $0x170] sm:$0xff]  }
 0x1b5   : > { %v5190_v0 = vcombine.low %v3584_v58, %v3598_v17  ;;  %v2947_v36 = vsel %vm6433_vm2, %v2942_v4, %v2946_v6  ;;  %v3606_v57 = vor.u32 %v3605_v1, %v3602_v15  ;;  %v3616_v21 = vrot.slane %v3614_v30, 4  ;;  %5883 = vmatpush3.bf16.msra.mxu1 %v6196_v34  ;;  %v6209_v34 = vld [vmem:[%s7460_s7 + $0x188] sm:$0xff]   ;;  %v6211_v52 = vld [vmem:[%s7460_s7 + $0x180] sm:$0xff]   ;;  %v3782_v50 = vld [vmem:[#allocation2 + $0x10] sm:$0xe] }
 0x1b6   : > { %5921 = vmatmul.mubr.bf16.vlgmr.msra.gmra.mxu0 %v5189_v51  ;;  %v2956_v63 = vrot.slane %v2955_v22, 4  ;;  %v3609_v14 = vshll.u32 %v7099_v54, 16  ;;  %v3619_v23 = vrot.slane %v3617_v12, 5  ;;  %v3623_v33 = vshll.u32 %v7109_v29, 16  ;;  %5884 = vmatprep.subr.bf16.mxu1 %v6198_v35  ;;  %v6212_v59 = vld [vmem:[#allocation2 + $0x18] ss:$8 sps:$4 sm:$0xff]  }
 0x1b7   : > { %5924 = vmatprep.mubr.bf16.mxu0 %v5190_v0  ;;  %5953 = vmatpush3.bf16.msra.mxu0 %v6195_v3  ;;  %v3607_v27 = vrot.slane %v3606_v57, 4  ;;  %v6202_v3 = vld [vmem:[#allocation2 + $0x10] ss:$8 sps:$4 sm:$0xff]   ;;  %v7171_v39 = vld [vmem:[%s7460_s7 + $0x230] sm:$0xff]   ;;  %v5201_v62 = vrot.slane %v3782_v50, 9  ;;  %v3811_v26 = vrot.slane %v6999_v7, 5 }
 0x1b8   : > { %5954 = vmatprep.subr.bf16.mxu0 %v6197_v2  ;;  %v2961_v18 = vsel %vm6433_vm2, %v2956_v63, %v2960_v32  ;;  %v3620_v43 = vor.u32 %v3619_v23, %v3616_v21  ;;  %v3611_v31 = vrot.slane %v3609_v14, 5  ;;  %v3625_v60 = vrot.slane %v3623_v33, 5  ;;  %v7163_v51 = vld [vmem:[%s7460_s7 + $0x238] sm:$0xff]   ;;  %v3781_v46 = vld [vmem:[#allocation2 + $0x8] sm:$0xe]  ;;  %v6221_v6 = vld [vmem:[%s7460_s7 + $0x168] sm:$0xff]  }
 0x1b9   : > { %v5099_v16 = vcombine.low %v2947_v36, %v2961_v18  ;;  %5885 = vmatpush3.bf16.msra.mxu1 %v6198_v35  ;;  %v6214_v24 = vld [vmem:[#allocation2 + $0x28] ss:$8 sps:$4 sm:$0xff]   ;;  %v7174_v56 = vld [vmem:[#allocation2 + $0x14] sm:$0x1]  ;;  %v5200_v15 = vrot.slane %v3781_v46, 9  ;;  %v3807_v17 = vrot.slane %v6995_v38, 5  ;;  %v3812_v0 = vsel %vm6941_vm11, %v5201_v62, %v3811_v26 }
 0x1ba   : > { %v3621_v25 = vrot.slane %v3620_v43, 4  ;;  %v3612_v48 = vsel %vm6433_vm2, %v3607_v27, %v3611_v31  ;;  %5886 = vmatprep.subr.bf16.mxu1 %v6201_v19  ;;  %v4444_v58 = vld [vmem:[#allocation2 + $0x10] sm:$0xe]  ;;  %v7181_v22 = vld [vmem:[#allocation2 + $0x1c] sm:$0x1]  ;;  %v4470_v30 = vrot.slane %v7174_v56, 5 }
 0x1bb   : > { %5853 = vmatmul.mubr.bf16.gmra.mxu1 %v5099_v16  ;;  %5955 = vmatpush3.bf16.msra.mxu0 %v6197_v2  ;;  %v6215_v2 = vld [vmem:[#allocation2 + $0x20] ss:$8 sps:$4 sm:$0xff]   ;;  %v6218_v4 = vld [vmem:[#allocation2 + $0x30] ss:$8 sps:$4 sm:$0xff]   ;;  %v5292_v1 = vrot.slane %v4444_v58, 9  ;;  %v4474_v35 = vrot.slane %v7181_v22, 5  ;;  %v3808_v12 = vsel %vm6941_vm11, %v5200_v15, %v3807_v17 }
 0x1bc   : > { %5896 = vmatprep.mubr.bf16.mxu1 %v6199_v20  ;;  %v3626_v13 = vsel %vm6433_vm2, %v3621_v25, %v3625_v60  ;;  %5956 = vmatprep.subr.bf16.mxu0 %v6200_v44  ;;  %v4445_v7 = vld [vmem:[#allocation2 + $0x18] sm:$0xe]  ;;  %v7194_v36 = vld [vmem:[%s7460_s7 + $0x228] sm:$0xff]   ;;  %v5224_v57 = vcombine.low %v3808_v12, %v3812_v0  ;;  %v6226_v16 = vld [vmem:[%s7460_s7 + $0x158] sm:$0xff]   ;;  %v3823_v62 = vrot.slane %v7060_v61, 5 }
 0x1bd   : > { %v5191_v28 = vcombine.low %v3612_v48, %v3626_v13  ;;  %5887 = vmatpush3.bf16.msra.mxu1 %v6201_v19  ;;  %v5293_v32 = vrot.slane %v4445_v7, 9  ;;  %v6220_v38 = vld [vmem:[#allocation2 + $0x38] ss:$8 sps:$4 sm:$0xff]   ;;  %v4471_v21 = vsel %vm6941_vm11, %v5292_v1, %v4470_v30  ;;  %v7218_v27 = vld [vmem:[%s7460_s7 + $0x218] sm:$0xff]   ;;  %v6228_v43 = vld [vmem:[%s7460_s7 + $0x150] sm:$0xff]  }
 0x1be   : > { %5888 = vmatprep.subr.bf16.mxu1 %v6204_v8  ;;  %v6224_v63 = vld [vmem:[%s7460_s7 + $0x160] sm:$0xff]   ;;  %v6222_v14 = vld [vmem:[#allocation2 + $0x40] ss:$8 sps:$4 sm:$0xff]   ;;  %v4162_v19 = vld [vmem:[#allocation2 + $0x10] sm:$0xf] }
 0x1bf   : > { %5957 = vmatpush3.bf16.msra.mxu0 %v6200_v44  ;;  %v4475_v23 = vsel %vm6941_vm11, %v5293_v32, %v4474_v35  ;;  %v7207_v33 = vld [vmem:[%s7460_s7 + $0x220] sm:$0xff]   ;;  %v7228_v44 = vld [vmem:[%s7460_s7 + $0x210] sm:$0xff]   ;;  %v6230_v20 = vld [vmem:[%s7460_s7 + $0x148] sm:$0xff]   ;;  %v4179_v48 = vshrl.u32 %v4162_v19, 16  ;;  %v4182_v13 = vshll.u32 %v4162_v19, 16  ;;  %v4202_v19 = vshll.u32 %v7181_v22, 16 }
 0x1c0   : > { %5925 = vmatmul.mubr.bf16.gmra.mxu0 %v5191_v28  ;;  %5958 = vmatprep.subr.bf16.mxu0 %v6203_v37  ;;  %v5316_v18 = vcombine.low %v4471_v21, %v4475_v23  ;;  %v3784_v31 = vld [vmem:[#allocation2 + $0x20] sm:$0xe]  ;;  %v4164_v25 = vld [vmem:[#allocation2 + $0x18] sm:$0xf]  ;;  %v7258_v26 = vld [vmem:[#allocation2 + $0x24] sm:$0x1] }
 0x1c1   : > { %5968 = vmatprep.mubr.bf16.mxu0 %v6202_v3  ;;  %5889 = vmatpush3.bf16.msra.mxu1 %v6204_v8  ;;  %v3783_v60 = vld [vmem:[#allocation2 + $0x18] sm:$0xe]  ;;  %v5203_v28 = vrot.slane %v3784_v31, 9  ;;  %v3819_v8 = vrot.slane %v7054_v11, 5  ;;  %v3786_v3 = vld [vmem:[#allocation2 + $0x30] sm:$0xe] }
 0x1c2   : > { %5890 = vmatprep.subr.bf16.mxu1 %v6206_v55  ;;  %v7251_v11 = vld [vmem:[%s7460_s7 + $0x200] sm:$0xff]   ;;  %v5205_v50 = vrot.slane %v3786_v3, 9  ;;  %v4446_v58 = vld [vmem:[#allocation2 + $0x20] sm:$0xe]  ;;  %v4478_v1 = vrot.slane %v7258_v26, 5  ;;  %v6235_v12 = vld [vmem:[%s7460_s7 + $0x1f0] sm:$0xff]  }
 0x1c3   : > { %5959 = vmatpush3.bf16.msra.mxu0 %v6203_v37  ;;  %v7238_v37 = vld [vmem:[%s7460_s7 + $0x208] sm:$0xff]   ;;  %v5294_v7 = vrot.slane %v4446_v58, 9  ;;  %v6237_v3 = vld [vmem:[%s7460_s7 + $0x1e0] sm:$0xff]  }
 0x1c4   : > { %5960 = vmatprep.subr.bf16.mxu0 %v6205_v10  ;;  %v3788_v30 = vld [vmem:[#allocation2 + $0x40] sm:$0xe] }
 0x1c5   : > { %5891 = vmatpush3.bf16.msra.mxu1 %v6206_v55  ;;  %v3785_v55 = vld [vmem:[#allocation2 + $0x28] sm:$0xe]  ;;  %v5207_v23 = vrot.slane %v3788_v30, 9 }
 0x1c6   : > { %5892 = vmatprep.subr.bf16.mxu1 %v6208_v45  ;;  %v5204_v46 = vrot.slane %v3785_v55, 9  ;;  %v4168_v55 = vld [vmem:[#allocation2 + $0x28] sm:$0xf] }
 0x1c7   : > { %5961 = vmatpush3.bf16.msra.mxu0 %v6205_v10  ;;  %v6232_v10 = vld [vmem:[%s7460_s7 + $0x140] sm:$0xff]  }
 0x1c8   : > { %5962 = vmatprep.subr.bf16.mxu0 %v6207_v9  ;;  %v3824_v35 = vsel %vm6941_vm11, %v5204_v46, %v3823_v62  ;;  %v6239_v46 = vld [vmem:[%s7460_s7 + $0x1d0] sm:$0xff]  }
 0x1c9   : > { %5893 = vmatpush3.bf16.msra.mxu1 %v6208_v45  ;;  %v4196_v45 = vshll.u32 %v4164_v25, 16 }
 0x1ca   : > { %5894 = vmatprep.subr.bf16.mxu1 %v6210_v42 }
 0x1cb   : > { %5963 = vmatpush3.bf16.msra.mxu0 %v6207_v9  ;;  %v4193_v9 = vshrl.u32 %v4164_v25, 16  ;;  %v4198_v15 = vrot.slane %v4196_v45, 5  ;;  %v6238_v45 = vld [vmem:[%s7460_s7 + $0x1d8] sm:$0xff]  }
 0x1cc   : > { %5964 = vmatprep.subr.bf16.mxu0 %v6209_v34 }
 0x1cd   : > { %5895 = vmatpush3.bf16.msra.mxu1 %v6210_v42  ;;  %v3815_v42 = vrot.slane %v7042_v5, 5  ;;  %v3820_v5 = vsel %vm6941_vm11, %v5203_v28, %v3819_v8 }
 0x1ce   : > { %5928 = vmatprep.subr.bf16.mxu1 %v6213_v47 }
 0x1cf   : > { %5965 = vmatpush3.bf16.msra.mxu0 %v6209_v34  ;;  %v5202_v34 = vrot.slane %v3783_v60, 9 }
 0x1d0   : > { %5966 = vmatprep.subr.bf16.mxu0 %v6211_v52  ;;  %5897 = vmatmul.mubr.bf16.vlgmr.msra.gmra.mxu1 %v6212_v59  ;;  %v3827_v59 = vrot.slane %v7070_v40, 5 }
 0x1d1   : > { %5900 = vmatprep.mubr.bf16.mxu1 %v6214_v24  ;;  %5929 = vmatpush3.bf16.msra.mxu1 %v6213_v47  ;;  %v4447_v47 = vld [vmem:[#allocation2 + $0x28] sm:$0xe]  ;;  %v4184_v24 = vrot.slane %v4182_v13, 5  ;;  %v3816_v17 = vsel %vm6941_vm11, %v5202_v34, %v3815_v42  ;;  %v4204_v13 = vrot.slane %v4202_v19, 5  ;;  %v4166_v34 = vld [vmem:[#allocation2 + $0x20] sm:$0xf] }
 0x1d2   : > { %5930 = vmatprep.subr.bf16.mxu1 %v6217_v53  ;;  %v5295_v40 = vrot.slane %v4447_v47, 9  ;;  %v3828_v61 = vsel %vm6941_vm11, %v5205_v50, %v3827_v59  ;;  %v5225_v32 = vcombine.low %v3816_v17, %v3820_v5  ;;  %v4221_v42 = vshrl.u32 %v4168_v55, 16  ;;  %v4172_v50 = vld [vmem:[#allocation2 + $0x38] sm:$0xf]  ;;  %v4174_v17 = vld [vmem:[#allocation2 + $0x40] sm:$0xf] }
 0x1d3   : > { %5967 = vmatpush3.bf16.msra.mxu0 %v6211_v52  ;;  %v7245_v52 = vld [vmem:[#allocation2 + $0x2c] sm:$0x1]  ;;  %v4224_v47 = vshll.u32 %v4168_v55, 16  ;;  %v4210_v5 = vshll.u32 %v4166_v34, 16  ;;  %v4249_v62 = vshrl.u32 %v4172_v50, 16  ;;  %v4252_v58 = vshll.u32 %v4172_v50, 16 }
 0x1d4   : > { %6000 = vmatprep.subr.bf16.mxu0 %v7163_v51 }
 0x1d5   : > { %5931 = vmatpush3.bf16.msra.mxu1 %v6217_v53  ;;  %v4181_v53 = vrot.slane %v4179_v48, 4  ;;  %v4251_v30 = vrot.slane %v4249_v62, 4 }
 0x1d6   : > { %5969 = vmatmul.mubr.bf16.vlgmr.msra.gmra.mxu0 %v6215_v2  ;;  %5932 = vmatprep.subr.bf16.mxu1 %v6221_v6  ;;  %v6234_v2 = vld [vmem:[%s7460_s7 + $0x1f8] sm:$0xff]  }
 0x1d7   : > { %5972 = vmatprep.mubr.bf16.mxu0 %v6218_v4  ;;  %6001 = vmatpush3.bf16.msra.mxu0 %v7163_v51  ;;  %v4482_v4 = vrot.slane %v7245_v52, 5  ;;  %v4185_v0 = vor.u32 %v4184_v24, %v4181_v53  ;;  %v4207_v24 = vshrl.u32 %v4166_v34, 16 }
 0x1d8   : > { %6002 = vmatprep.subr.bf16.mxu0 %v7171_v39  ;;  %5901 = vmatmul.mubr.bf16.gmra.mxu1 %v6220_v38 }
 0x1d9   : > { %5933 = vmatpush3.bf16.msra.mxu1 %v6221_v6  ;;  %5944 = vmatprep.mubr.bf16.mxu1 %v5224_v57  ;;  %v4195_v6 = vrot.slane %v4193_v9, 4  ;;  %v4483_v38 = vsel %vm6941_vm11, %v5295_v40, %v4482_v4  ;;  %v4188_v57 = vshll.u32 %v7174_v56, 16  ;;  %v3831_v56 = vrot.slane %v7099_v54, 5  ;;  %v4170_v9 = vld [vmem:[#allocation2 + $0x30] sm:$0xf] }
 0x1da   : > { %5934 = vmatprep.subr.bf16.mxu1 %v6224_v63  ;;  %v4235_v59 = vshrl.u32 %v4170_v9, 16  ;;  %v4238_v53 = vshll.u32 %v4170_v9, 16  ;;  %v4226_v40 = vrot.slane %v4224_v47, 5  ;;  %v4176_v4 = vld [vmem:[#allocation2 + $0x48] sm:$0xf] }
 0x1db   : > { %6003 = vmatpush3.bf16.msra.mxu0 %v7171_v39  ;;  %v4199_v21 = vor.u32 %v4198_v15, %v4195_v6  ;;  %v4190_v25 = vrot.slane %v4188_v57, 5  ;;  %v4266_v57 = vshll.u32 %v4174_v17, 16 }
 0x1dc   : > { %6004 = vmatprep.subr.bf16.mxu0 %v7194_v36  ;;  %v4237_v6 = vrot.slane %v4235_v59, 4  ;;  %v4240_v15 = vrot.slane %v4238_v53, 5  ;;  %v4448_v59 = vld [vmem:[#allocation2 + $0x30] sm:$0xe] }
 0x1dd   : > { %5935 = vmatpush3.bf16.msra.mxu1 %v6224_v63  ;;  %v3787_v63 = vld [vmem:[#allocation2 + $0x38] sm:$0xe]  ;;  %v4200_v60 = vrot.slane %v4199_v21, 4 }
 0x1de   : > { %5973 = vmatmul.mubr.bf16.gmra.mxu0 %v6222_v14  ;;  %5936 = vmatprep.subr.bf16.mxu1 %v6226_v16  ;;  %v5226_v14 = vcombine.low %v3824_v35, %v3828_v61  ;;  %v5206_v31 = vrot.slane %v3787_v63, 9  ;;  %v4209_v61 = vrot.slane %v4207_v24, 4  ;;  %v4280_v35 = vshll.u32 %v4176_v4, 16 }
 0x1df   : > { %6005 = vmatpush3.bf16.msra.mxu0 %v7194_v36  ;;  %6016 = vmatprep.mubr.bf16.mxu0 %v5316_v18  ;;  %v3835_v18 = vrot.slane %v7109_v29, 5  ;;  %v6236_v29 = vld [vmem:[%s7460_s7 + $0x1e8] sm:$0xff]   ;;  %v4205_v8 = vsel %vm6433_vm2, %v4200_v60, %v4204_v13  ;;  %v4263_v63 = vshrl.u32 %v4174_v17, 16  ;;  %v4241_v21 = vor.u32 %v4240_v15, %v4237_v6 }
 0x1e0   : > { %6006 = vmatprep.subr.bf16.mxu0 %v7207_v33  ;;  %v3832_v28 = vsel %vm6941_vm11, %v5206_v31, %v3831_v56  ;;  %v4282_v31 = vrot.slane %v4280_v35, 5  ;;  %v4216_v56 = vshll.u32 %v7258_v26, 16  ;;  %v4268_v60 = vrot.slane %v4266_v57, 5 }
 0x1e1   : > { %5937 = vmatpush3.bf16.msra.mxu1 %v6226_v16  ;;  %v4479_v16 = vsel %vm6941_vm11, %v5294_v7, %v4478_v1  ;;  %v3836_v48 = vsel %vm6941_vm11, %v5207_v23, %v3835_v18  ;;  %v4212_v7 = vrot.slane %v4210_v5, 5  ;;  %v6240_v1 = vld [vmem:[%s7460_s7 + $0x1c8] sm:$0xff]   ;;  %v4230_v23 = vshll.u32 %v7245_v52, 16  ;;  %v4173_v18 = vld [vmem:[#allocation2 + $0x3c] sm:$0x1] }
 0x1e2   : > { %5938 = vmatprep.subr.bf16.mxu1 %v6228_v43  ;;  %v5227_v54 = vcombine.low %v3832_v28, %v3836_v48  ;;  %v4242_v48 = vrot.slane %v4241_v21, 4  ;;  %v4218_v55 = vrot.slane %v4216_v56, 5  ;;  %v4490_v17 = vrot.slane %v4173_v18, 5 }
 0x1e3   : > { %6007 = vmatpush3.bf16.msra.mxu0 %v7207_v33  ;;  %v4232_v52 = vrot.slane %v4230_v23, 5 }
 0x1e4   : > { %6008 = vmatprep.subr.bf16.mxu0 %v7218_v27 }
 0x1e5   : > { %5939 = vmatpush3.bf16.msra.mxu1 %v6228_v43  ;;  %v4186_v43 = vrot.slane %v4185_v0, 4  ;;  %v4254_v0 = vrot.slane %v4252_v58, 5 }
 0x1e6   : > { %5940 = vmatprep.subr.bf16.mxu1 %v6230_v20 }
 0x1e7   : > { %6009 = vmatpush3.bf16.msra.mxu0 %v7218_v27  ;;  %v4191_v22 = vsel %vm6433_vm2, %v4186_v43, %v4190_v25  ;;  %v4255_v19 = vor.u32 %v4254_v0, %v4251_v30  ;;  %v4265_v25 = vrot.slane %v4263_v63, 4 }
 0x1e8   : > { %6010 = vmatprep.subr.bf16.mxu0 %v7228_v44 }
 0x1e9   : > { %5941 = vmatpush3.bf16.msra.mxu1 %v6230_v20  ;;  %v5317_v20 = vcombine.low %v4479_v16, %v4483_v38  ;;  %v6241_v16 = vld [vmem:[%s7460_s7 + $0x1c0] sm:$0xff]  }
 0x1ea   : > { %5942 = vmatprep.subr.bf16.mxu1 %v6232_v10 }
 0x1eb   : > { %6011 = vmatpush3.bf16.msra.mxu0 %v7228_v44 }
 0x1ec   : > { %6012 = vmatprep.subr.bf16.mxu0 %v7238_v37 }
 0x1ed   : > { %5943 = vmatpush3.bf16.msra.mxu1 %v6232_v10  ;;  %v5280_v10 = vcombine.low %v4191_v22, %v4205_v8  ;;  %v4258_v22 = vshll.u32 %v4173_v18, 16  ;;  %v4175_v8 = vld [vmem:[#allocation2 + $0x44] sm:$0x1] }
 0x1ee   : > { %5976 = vmatprep.subr.bf16.mxu1 %v6234_v2  ;;  %v4272_v50 = vshll.u32 %v4175_v8, 16 }
 0x1ef   : > { %6013 = vmatpush3.bf16.msra.mxu0 %v7238_v37 }
 0x1f0   : > { %6014 = vmatprep.subr.bf16.mxu0 %v7251_v11  ;;  %5945 = vmatmul.mubr.bf16.vlgmr.msra.gmra.mxu1 %v5225_v32  ;;  %v4277_v32 = vshrl.u32 %v4176_v4, 16  ;;  %v4274_v6 = vrot.slane %v4272_v50, 5 }
 0x1f1   : > { %5948 = vmatprep.mubr.bf16.mxu1 %v5226_v14  ;;  %5977 = vmatpush3.bf16.msra.mxu1 %v6234_v2  ;;  %v4223_v2 = vrot.slane %v4221_v42, 4  ;;  %v4213_v14 = vor.u32 %v4212_v7, %v4209_v61  ;;  %v4260_v42 = vrot.slane %v4258_v22, 5 }
 0x1f2   : > { %5978 = vmatprep.subr.bf16.mxu1 %v6235_v12 }
 0x1f3   : > { %6015 = vmatpush3.bf16.msra.mxu0 %v7251_v11  ;;  %v4227_v38 = vor.u32 %v4226_v40, %v4223_v2  ;;  %v4214_v13 = vrot.slane %v4213_v14, 4  ;;  %v4449_v2 = vld [vmem:[#allocation2 + $0x38] sm:$0xe]  ;;  %v5296_v40 = vrot.slane %v4448_v59, 9 }
 0x1f4   : > { %v5297_v15 = vrot.slane %v4449_v2, 9 }
 0x1f5   : > { %5979 = vmatpush3.bf16.msra.mxu1 %v6235_v12  ;;  %v4171_v12 = vld [vmem:[#allocation2 + $0x34] sm:$0x1]  ;;  %v4219_v47 = vsel %vm6433_vm2, %v4214_v13, %v4218_v55 }
 0x1f6   : > { %6017 = vmatmul.mubr.bf16.vlgmr.msra.gmra.mxu0 %v5317_v20  ;;  %5980 = vmatprep.subr.bf16.mxu1 %v6236_v29  ;;  %v4244_v43 = vshll.u32 %v4171_v12, 16  ;;  %v4279_v20 = vrot.slane %v4277_v32, 4  ;;  %v4486_v4 = vrot.slane %v4171_v12, 5  ;;  %v4494_v32 = vrot.slane %v4175_v8, 5 }
 0x1f8   : > { %5949 = vmatmul.mubr.bf16.gmra.mxu1 %v5227_v54  ;;  %v4246_v28 = vrot.slane %v4244_v43, 5  ;;  %v4256_v54 = vrot.slane %v4255_v19, 4 }
 0x1f9   : > { %5981 = vmatpush3.bf16.msra.mxu1 %v6236_v29  ;;  %5992 = vmatprep.mubr.bf16.mxu1 %v5280_v10  ;;  %v4228_v29 = vrot.slane %v4227_v38, 4  ;;  %v4283_v10 = vor.u32 %v4282_v31, %v4279_v20 }
 0x1fa   : > { %5982 = vmatprep.subr.bf16.mxu1 %v6237_v3  ;;  %v4247_v34 = vsel %vm6433_vm2, %v4242_v48, %v4246_v28  ;;  %v4261_v24 = vsel %vm6433_vm2, %v4256_v54, %v4260_v42 }
 0x1fb   : > { %v4233_v9 = vsel %vm6433_vm2, %v4228_v29, %v4232_v52  ;;  %v5282_v5 = vcombine.low %v4247_v34, %v4261_v24  ;;  %v4284_v62 = vrot.slane %v4283_v10, 4 }
 0x1fc   : > { %v5281_v53 = vcombine.low %v4219_v47, %v4233_v9 }
 0x1fd   : > { %5983 = vmatpush3.bf16.msra.mxu1 %v6237_v3  ;;  %v4177_v3 = vld [vmem:[#allocation2 + $0x4c] sm:$0x1] }
 0x1fe   : > { %5984 = vmatprep.subr.bf16.mxu1 %v6238_v45  ;;  %v4286_v26 = vshll.u32 %v4177_v3, 16  ;;  %v4498_v35 = vrot.slane %v4177_v3, 5 }
 0x200   : > { %v4288_v58 = vrot.slane %v4286_v26, 5 }
 0x201   : > { %5985 = vmatpush3.bf16.msra.mxu1 %v6238_v45  ;;  %v4269_v45 = vor.u32 %v4268_v60, %v4265_v25 }
 0x202   : > { %5986 = vmatprep.subr.bf16.mxu1 %v6239_v46  ;;  %v4289_v7 = vsel %vm6433_vm2, %v4284_v62, %v4288_v58 }
 0x205   : > { %5987 = vmatpush3.bf16.msra.mxu1 %v6239_v46  ;;  %v4270_v46 = vrot.slane %v4269_v45, 4 }
 0x206   : > { %5988 = vmatprep.subr.bf16.mxu1 %v6240_v1 }
 0x207   : > { %v4275_v61 = vsel %vm6433_vm2, %v4270_v46, %v4274_v6 }
 0x208   : > { %v5283_v30 = vcombine.low %v4275_v61, %v4289_v7 }
 0x209   : > { %5989 = vmatpush3.bf16.msra.mxu1 %v6240_v1  ;;  %v4487_v1 = vsel %vm6941_vm11, %v5296_v40, %v4486_v4 }
 0x20a   : > { %5990 = vmatprep.subr.bf16.mxu1 %v6241_v16 }
 0x20d   : > { %5991 = vmatpush3.bf16.msra.mxu1 %v6241_v16 }
 0x20e   : > { %6024 = vmatprep.subr.bf16.mxu1 %v7163_v51 }
 0x210   : > { %5993 = vmatmul.mubr.bf16.vlgmr.msra.gmra.mxu1 %v5281_v53 }
 0x211   : > { %5996 = vmatprep.mubr.bf16.mxu1 %v5282_v5  ;;  %6032 = vmatpush3.bf16.msra.mxu1 %v7163_v51  ;;  %v4491_v51 = vsel %vm6941_vm11, %v5297_v15, %v4490_v17 }
 0x212   : > { %6025 = vmatprep.subr.bf16.mxu1 %v7171_v39  ;;  %v5318_v0 = vcombine.low %v4487_v1, %v4491_v51 }
 0x215   : > { %6033 = vmatpush3.bf16.msra.mxu1 %v7171_v39  ;;  %v4451_v39 = vld [vmem:[#allocation2 + $0x48] sm:$0xe] }
 0x216   : > { %6026 = vmatprep.subr.bf16.mxu1 %v7194_v36  ;;  %v5299_v38 = vrot.slane %v4451_v39, 9 }
 0x218   : > { %5997 = vmatmul.mubr.bf16.gmra.mxu1 %v5283_v30 }
 0x219   : > { %6034 = vmatpush3.bf16.msra.mxu1 %v7194_v36  ;;  %6020 = vmatprep.mubr.bf16.mxu1 %v5318_v0  ;;  %v5298_v36 = vrot.slane %v4450_v49, 9 }
 0x21a   : > { %6027 = vmatprep.subr.bf16.mxu1 %v7207_v33 }
 0x21d   : > { %6035 = vmatpush3.bf16.msra.mxu1 %v7207_v33  ;;  %v4495_v33 = vsel %vm6941_vm11, %v5298_v36, %v4494_v32 }
 0x21e   : > { %6028 = vmatprep.subr.bf16.mxu1 %v7218_v27 }
 0x221   : > { %6036 = vmatpush3.bf16.msra.mxu1 %v7218_v27  ;;  %v4499_v27 = vsel %vm6941_vm11, %v5299_v38, %v4498_v35 }
 0x222   : > { %6029 = vmatprep.subr.bf16.mxu1 %v7228_v44  ;;  %v5319_v12 = vcombine.low %v4495_v33, %v4499_v27 }
 0x225   : > { %6037 = vmatpush3.bf16.msra.mxu1 %v7228_v44  ;;  %v5826_v44 = vpop.f32.mrf.mxu0 }
 0x226   : > { %6030 = vmatprep.subr.bf16.mxu1 %v7238_v37 }
 0x227   : > { %v2803_v63 = vpop.f32.mrf.mxu0 }
 0x229   : > { %6038 = vmatpush3.bf16.msra.mxu1 %v7238_v37  ;;  %v5827_v57 = vpop.f32.mrf.mxu0 }
 0x22a   : > { %6031 = vmatprep.subr.bf16.mxu1 %v7251_v11 }
 0x22b   : > { %v2806_v23 = vpop.f32.mrf.mxu0 }
 0x22d   : > { %6039 = vmatpush3.bf16.msra.mxu1 %v7251_v11  ;;  %v7349_v37 = vpop.f32.mrf.mxu0 }
 0x22f   : > { %v7351_v43 = vpop.f32.mrf.mxu0 }
 0x230   : > { %6021 = vmatmul.mubr.bf16.vlgmr.msra.gmra.mxu1 %v5319_v12 }
 0x231   : > { %v7355_v41 = vpop.f32.mrf.mxu0 }
 0x233   : > { %v2822_v31 = vpop.f32.mrf.mxu0 }
 0x24e   : > { %v5802_v21 = vpop.f32.mrf.mxu1 }
 0x24f   : > { %v2812_v39 = vadd.f32 %v5826_v44, %v5802_v21 }
 0x250   : > { %v2666_v14 = vpop.f32.mrf.mxu1 }
 0x251   : > { %v2804_v36 = vadd.f32 %v2803_v63, %v2666_v14 }
 0x252   : > { %v5803_v18 = vpop.f32.mrf.mxu1 }
 0x253   : > { %v2815_v33 = vadd.f32 %v5827_v57, %v5803_v18 }
 0x254   : > { %v2669_v16 = vpop.f32.mrf.mxu1 }
 0x255   : > { %v5874_v25 = vpop.f32.mrf.mxu0 }
 0x257   : > { %v3290_v60 = vpop.f32.mrf.mxu0 }
 0x259   : > { %v5875_v22 = vpop.f32.mrf.mxu0 }
 0x25b   : > { %v3293_v52 = vpop.f32.mrf.mxu0 }
 0x25c   : > { %v7353_v19 = vpop.f32.mrf.mxu1 }
 0x25e   : > { %v7357_v20 = vpop.f32.mrf.mxu1 }
 0x260   : > { %v7359_v11 = vpop.f32.mrf.mxu1 }
 0x262   : > { %v2685_v56 = vpop.f32.mrf.mxu1  ;;  %v7363_v54 = vpop.f32.mrf.mxu0 }
 0x263   : > { %v7361_v29 = vadd.f32 %v2822_v31, %v2685_v56  ;;  %v2807_v56 = vadd.f32 %v2806_v23, %v2669_v16 }
 0x264   : > { %v7365_v3 = vpop.f32.mrf.mxu0 }
 0x266   : > { %v7369_v55 = vpop.f32.mrf.mxu0 }
 0x268   : > { %v7373_v45 = vpop.f32.mrf.mxu0 }
 0x269   : > { %7484 = vst [vmem:[#allocation6_spill] sm:$0xff] %v7373_v45 }
 0x26f   : > { %v5850_v48 = vpop.f32.mrf.mxu1 }
 0x270   : > { %v3110_v38 = vadd.f32 %v5850_v48, %v2812_v39 }
 0x271   : > { %v3077_v13 = vpop.f32.mrf.mxu1 }
 0x272   : > { %v3108_v27 = vadd.f32 %v3077_v13, %v2804_v36 }
 0x273   : > { %v5851_v28 = vpop.f32.mrf.mxu1 }
 0x275   : > { %v3080_v8 = vpop.f32.mrf.mxu1 }
 0x276   : > { %v5922_v34 = vpop.f32.mrf.mxu0 }
 0x278   : > { %v3742_v47 = vpop.f32.mrf.mxu0 }
 0x27a   : > { %v5923_v59 = vpop.f32.mrf.mxu0 }
 0x27b   : > { %v7367_v10 = vpop.f32.mrf.mxu1 }
 0x27c   : > { %v3745_v24 = vpop.f32.mrf.mxu0 }
 0x27d   : > { %v7371_v9 = vpop.f32.mrf.mxu1 }
 0x27f   : > { %v7375_v26 = vpop.f32.mrf.mxu1 }
 0x280   : > { %v7379_v46 = vpop.f32.mrf.mxu0 }
 0x281   : > { %v7377_v42 = vpop.f32.mrf.mxu1  ;;  %7485 = vst [vmem:[#allocation4_spill] sm:$0xff] %v7379_v46  ;;  %v3321_v46 = vadd.f32 %v3290_v60, %v3108_v27  ;;  %v2831_v27 = vadd.f32 %v7355_v41, %v7359_v11  ;;  %v7490_v11 = vld [vmem:[#allocation6_spill] sm:$0xff] }
 0x282   : > { %v7381_v58 = vpop.f32.mrf.mxu0 }
 0x283   : > { %7486 = vst [vmem:[#allocation3_spill] sm:$0xff] %v7381_v58  ;;  %v3109_v58 = vadd.f32 %v3080_v8, %v2807_v56  ;;  %v3115_v56 = vadd.f32 %v7375_v26, %v2831_v27 }
 0x284   : > { %v7385_v40 = vpop.f32.mrf.mxu0 }
 0x285   : > { %7487 = vst [vmem:[#allocation5_spill] sm:$0xff] %v7385_v40  ;;  %v3323_v40 = vadd.f32 %v5874_v25, %v3110_v38  ;;  %v3322_v57 = vadd.f32 %v3293_v52, %v3109_v58  ;;  %v2828_v38 = vadd.f32 %v7349_v37, %v7353_v19 }
 0x286   : > { %v7389_v6 = vpop.f32.mrf.mxu0 }
 0x287   : > { %7488 = vst [vmem:[#allocation7_spill] sm:$0xff] %v7389_v6  ;;  %v3111_v6 = vadd.f32 %v5851_v28, %v2815_v33  ;;  %v3114_v33 = vadd.f32 %v7367_v10, %v2828_v38 }
 0x288   : > { %v7491_v26 = vld [vmem:[#allocation4_spill] sm:$0xff] }
 0x289   : > { %v3324_v63 = vadd.f32 %v5875_v22, %v3111_v6 }
 0x290   : > { %v5898_v50 = vpop.f32.mrf.mxu1 }
 0x292   : > { %v3460_v53 = vpop.f32.mrf.mxu1 }
 0x293   : > { %v3491_v21 = vadd.f32 %v3460_v53, %v3321_v46 }
 0x294   : > { %v5899_v5 = vpop.f32.mrf.mxu1 }
 0x295   : > { %v3494_v14 = vadd.f32 %v5899_v5, %v3324_v63  ;;  %v3773_v16 = vadd.f32 %v3742_v47, %v3491_v21  ;;  %v3327_v21 = vadd.f32 %v7363_v54, %v3114_v33 }
 0x296   : > { %v3463_v62 = vpop.f32.mrf.mxu1  ;;  %v5970_v17 = vpop.f32.mrf.mxu0 }
 0x297   : > { %v3492_v39 = vadd.f32 %v3463_v62, %v3322_v57  ;;  %v3776_v8 = vadd.f32 %v5923_v59, %v3494_v14  ;;  %v3113_v14 = vadd.f32 %v7377_v42, %v7361_v29  ;;  %v7493_v29 = vld [vmem:[#allocation3_spill] sm:$0xff] }
 0x298   : > { %v7383_v2 = vpop.f32.mrf.mxu1  ;;  %v4123_v7 = vpop.f32.mrf.mxu0 }
 0x299   : > { %v3497_v37 = vadd.f32 %v7383_v2, %v3327_v21 }
 0x29a   : > { %v7387_v4 = vpop.f32.mrf.mxu1  ;;  %v5971_v30 = vpop.f32.mrf.mxu0 }
 0x29b   : > { %v3779_v57 = vadd.f32 %v7491_v26, %v3497_v37 }
 0x29c   : > { %v7391_v15 = vpop.f32.mrf.mxu1  ;;  %v4126_v0 = vpop.f32.mrf.mxu0 }
 0x29e   : > { %v7393_v61 = vpop.f32.mrf.mxu1  ;;  %v7395_v32 = vpop.f32.mrf.mxu0 }
 0x29f   : > { %7489 = vst [vmem:[#allocation8_spill] sm:$0xff] %v7393_v61  ;;  %v3493_v61 = vadd.f32 %v5898_v50, %v3323_v40  ;;  %v3774_v40 = vadd.f32 %v3745_v24, %v3492_v39 }
 0x2a0   : > { %v7397_v12 = vpop.f32.mrf.mxu0 }
 0x2a1   : > { %v3775_v18 = vadd.f32 %v5922_v34, %v3493_v61 }
 0x2a2   : > { %v7401_v45 = vpop.f32.mrf.mxu0 }
 0x2a4   : > { %v7405_v48 = vpop.f32.mrf.mxu0 }
 0x2a6   : > { %v7492_v54 = vld [vmem:[#allocation8_spill] sm:$0xff] }
 0x2b0   : > { %v5946_v1 = vpop.f32.mrf.mxu1 }
 0x2b1   : > { %v3985_v23 = vadd.f32 %v5946_v1, %v3775_v18 }
 0x2b2   : > { %v3952_v51 = vpop.f32.mrf.mxu1 }
 0x2b3   : > { %v3983_v28 = vadd.f32 %v3952_v51, %v3773_v16  ;;  %v4156_v36 = vadd.f32 %v5970_v17, %v3985_v23  ;;  %v7494_v23 = vld [vmem:[#allocation5_spill] sm:$0xff]  ;;  %v7495_v16 = vld [vmem:[#allocation7_spill] sm:$0xff] }
 0x2b4   : > { %v5947_v49 = vpop.f32.mrf.mxu1 }
 0x2b5   : > { %v3986_v50 = vadd.f32 %v5947_v49, %v3776_v8  ;;  %v4154_v52 = vadd.f32 %v4123_v7, %v3983_v28 }
 0x2b6   : > { %v3955_v35 = vpop.f32.mrf.mxu1  ;;  %v6018_v25 = vpop.f32.mrf.mxu0 }
 0x2b7   : > { %v3984_v22 = vadd.f32 %v3955_v35, %v3774_v40  ;;  %v4157_v24 = vadd.f32 %v5971_v30, %v3986_v50  ;;  %v2820_v30 = vadd.f32 %v7351_v43, %v7357_v20  ;;  %v3328_v20 = vadd.f32 %v7369_v55, %v3115_v56 }
 0x2b8   : > { %v7399_v31 = vpop.f32.mrf.mxu1  ;;  %v4615_v53 = vpop.f32.mrf.mxu0 }
 0x2b9   : > { %v4155_v61 = vadd.f32 %v4126_v0, %v3984_v22  ;;  %v3112_v0 = vadd.f32 %v7371_v9, %v2820_v30  ;;  %v3498_v41 = vadd.f32 %v7391_v15, %v3328_v20  ;;  %v3326_v9 = vadd.f32 %v7490_v11, %v3113_v14 }
 0x2ba   : > { %v7403_v44 = vpop.f32.mrf.mxu1  ;;  %v6019_v62 = vpop.f32.mrf.mxu0  ;;  %v3989_v39 = vadd.f32 %v7399_v31, %v3779_v57 }
 0x2bb   : > { %v3325_v19 = vadd.f32 %v7365_v3, %v3112_v0  ;;  %v3496_v18 = vadd.f32 %v7492_v54, %v3326_v9 }
 0x2bc   : > { %v5951_v13 = vpop.f32.mrf.mxu1  ;;  %v4618_v49 = vpop.f32.mrf.mxu0  ;;  %v4160_v15 = vadd.f32 %v7395_v32, %v3989_v39 }
 0x2bd   : > { %v3495_v43 = vadd.f32 %v7387_v4, %v3325_v19  ;;  %v3780_v4 = vadd.f32 %v7494_v23, %v3498_v41 }
 0x2be   : > { %v3971_v60 = vpop.f32.mrf.mxu1 }
 0x2bf   : > { %v3777_v42 = vadd.f32 %v7493_v29, %v3495_v43  ;;  %v3990_v55 = vadd.f32 %v5951_v13, %v3780_v4 }
 0x2c1   : > { %v3987_v3 = vadd.f32 %v7403_v44, %v3777_v42  ;;  %v4161_v44 = vadd.f32 %v7401_v45, %v3990_v55 }
 0x2c3   : > { %v4158_v31 = vadd.f32 %v7397_v12, %v3987_v3 }
 0x2d0   : > { %v5994_v46 = vpop.f32.mrf.mxu1 }
 0x2d1   : > { %v4438_v5 = vadd.f32 %v5994_v46, %v4156_v36 }
 0x2d2   : > { %v4405_v34 = vpop.f32.mrf.mxu1 }
 0x2d3   : > { %v4648_v47 = vadd.f32 %v6018_v25, %v4438_v5  ;;  %v4436_v59 = vadd.f32 %v4405_v34, %v4154_v52  ;;  %v3778_v25 = vadd.f32 %v7495_v16, %v3496_v18 }
 0x2d4   : > { %v5995_v58 = vpop.f32.mrf.mxu1 }
 0x2d5   : > { %4656 = vst [vmem:[%s7411_s20 + $0x10] sm:$0xff] %v4648_v47  ;;  %v4646_v6 = vadd.f32 %v4615_v53, %v4436_v59  ;;  %v4439_v17 = vadd.f32 %v5995_v58, %v4157_v24  ;;  %v3988_v8 = vadd.f32 %v3971_v60, %v3778_v25 }
 0x2d6   : > { %v4408_v7 = vpop.f32.mrf.mxu1 }
 0x2d7   : > { %4654 = vst [vmem:[%s7411_s20] sm:$0xff] %v4646_v6  ;;  %v4649_v1 = vadd.f32 %v6019_v62, %v4439_v17  ;;  %v4437_v51 = vadd.f32 %v4408_v7, %v4155_v61  ;;  %v4159_v13 = vadd.f32 %v7405_v48, %v3988_v8 }
 0x2d8   : > { %v5998_v63 = vpop.f32.mrf.mxu1 }
 0x2d9   : > { %4657 = vst [vmem:[%s7411_s20 + $0x18] sm:$0xff] %v4649_v1  ;;  %v4647_v35 = vadd.f32 %v4618_v49, %v4437_v51  ;;  %v4442_v50 = vadd.f32 %v5998_v63, %v4160_v15 }
 0x2da   : > { %v4421_v10 = vpop.f32.mrf.mxu1 }
 0x2db   : > { %4655 = vst [vmem:[%s7411_s20 + $0x8] sm:$0xff] %v4647_v35  ;;  %v4440_v36 = vadd.f32 %v4421_v10, %v4158_v31 }
 0x2dc   : > { %v5999_v2 = vpop.f32.mrf.mxu1 }
 0x2dd   : > { %v4443_v22 = vadd.f32 %v5999_v2, %v4161_v44 }
 0x2de   : > { %v4424_v28 = vpop.f32.mrf.mxu1 }
 0x2df   : > { %v4441_v52 = vadd.f32 %v4424_v28, %v4159_v13 }
 0x2f0   : > { %v6022_v40 = vpop.f32.mrf.mxu1 }
 0x2f1   : > { %v4652_v53 = vadd.f32 %v6022_v40, %v4442_v50 }
 0x2f2   : > { %v4631_v46 = vpop.f32.mrf.mxu1 }
 0x2f3   : > { %4660 = vst [vmem:[%s7411_s20 + $0x30] sm:$0xff] %v4652_v53  ;;  %v4650_v5 = vadd.f32 %v4631_v46, %v4440_v36 }
 0x2f4   : > { %v6023_v32 = vpop.f32.mrf.mxu1 }
 0x2f5   : > { %4658 = vst [vmem:[%s7411_s20 + $0x20] sm:$0xff] %v4650_v5  ;;  %v4653_v60 = vadd.f32 %v6023_v32, %v4443_v22 }
 0x2f6   : > { %v4634_v34 = vpop.f32.mrf.mxu1 }
 0x2f7   : > { %4661 = vst [vmem:[%s7411_s20 + $0x38] sm:$0xff] %v4653_v60  ;;  %v4651_v47 = vadd.f32 %v4634_v34, %v4441_v52 }
 0x2f9   : > { %4659 = vst [vmem:[%s7411_s20 + $0x28] sm:$0xff] %v4651_v47 }
 0x2fa PF: > { %s20_s13 = sadd.s32 1, %s6248_s13  }
 0x2fb   : > { %p17_p4 = scmp.ge.s32.totalorder %s20_s13, 4  }
 0x2fd   :  { %19 = sbr.rel (!%p17_p4) target bundleno = 1 (0x1), region = 122 }

</bundles_post_ra>
